<compile_context>
chip_gen: v7x
topology: tpu7x:2x2x1
jax: 0.10.0
libtpu: 0.0.40
codegen_flags: <defaults>
</compile_context>

<pallas_src>
import math

import jax
import jax.numpy as jnp
from jax.experimental import pallas as pl
from jax.experimental.pallas import tpu as pltpu


def _bf16(x):
    return x.astype(jnp.bfloat16)


# -----------------------------------------------------------------------------
# Pallas kernel: one Actor_Critic step per grid iteration, weights resident.
# -----------------------------------------------------------------------------
def actor_critic_step_kernel(
    # per-step activations (f32); leading T axis squeezed by the BlockSpec
    word_pre_ref,        # (B, 256) = embedding @ target_att_linear (pre-sigmoid)
    img_ref,             # (B, 256)
    query_ref,           # (B, 256)
    # initial recurrent state (only read at t == 0)
    hx0_ref,             # (B, 256)
    cx0_ref,             # (B, 256)
    # parameters (weights bf16, biases f32); constant block index -> DMA'd once
    wih_a_ref, wih_b_ref, blstm_ref,   # lstm W_ih split (256,1024)x2, bias_ih+bias_hh (1,1024)
    whh_ref,                           # lstm W_hh (256,1024)
    wbef_a_ref, wbef_b_ref, bbef_ref,  # before_attn split (256,512)x2, (1,512)
    wq_ref, bq_ref,                    # layer_query (256,256),(1,256)
    wk_ref, bk_ref,                    # layer_key   (256,256),(1,256)
    wat_a_ref, wat_b_ref, bat_ref,     # attn split (256,256)x2,(1,256)
    wh1_ref, bh1_ref,                  # fused heads L1 (256,256),(1,256)  [wp1 | wv1 | 0]
    wh2_ref, bh2_ref,                  # fused heads L2 (256,128),(1,128)  block-diag(wp2, wv2)
    wh3_ref, bh3_ref,                  # fused heads L3 (128,128),(1,128)  block-diag(wpo, wva)
    # outputs
    slab_out_ref,        # (B, 128) per step: [policy(0:3) | value(3:4) | zeros]
    hx_out_ref,          # (B, 256)  final hx (constant block -> flushed once)
    cx_out_ref,          # (B, 256)  final cx
    # scratch: recurrent state resident in VMEM across the T grid axis
    hx_sc, cx_sc,        # (B, 256) f32 each
):
    t = pl.program_id(0)

    @pl.when(t == 0)
    def _():
        hx_sc[...] = hx0_ref[...]
        cx_sc[...] = cx0_ref[...]

    def dot(x_b, w_ref):
        return jnp.dot(x_b, w_ref[...], preferred_element_type=jnp.float32)

    # --- gated attention fusion -------------------------------------------
    gated_att = jax.nn.sigmoid(word_pre_ref[...])            # (B, 256)
    gated_fusion = img_ref[...] * gated_att                   # (B, 256)
    gf_b, ga_b = _bf16(gated_fusion), _bf16(gated_att)
    hx_prev_b = _bf16(hx_sc[...])

    # --- LSTMCell(512, 256): cat([gated_fusion, gated_att]) via split W_ih --
    gates = (dot(gf_b, wih_a_ref) + dot(ga_b, wih_b_ref)
             + dot(hx_prev_b, whh_ref) + blstm_ref[...])       # (B, 1024)
    i_g, f_g, g_g, o_g = jnp.split(gates, 4, axis=1)           # (B, 256) each
    cx = jax.nn.sigmoid(f_g) * cx_sc[...] + jax.nn.sigmoid(i_g) * jnp.tanh(g_g)
    hx = jax.nn.sigmoid(o_g) * jnp.tanh(cx)
    hx_b = _bf16(hx)

    # --- attention block: cat([gated_fusion, hx]) via split weights ---------
    mlp_attn = jax.nn.relu(dot(gf_b, wbef_a_ref) + dot(hx_b, wbef_b_ref)
                           + bbef_ref[...])                    # (B, 512)
    key, value = jnp.split(mlp_attn, 2, axis=1)                # (B, 256) each
    w_q = jax.nn.relu(dot(_bf16(query_ref[...]), wq_ref) + bq_ref[...])
    w_k = jax.nn.relu(dot(_bf16(key), wk_ref) + bk_ref[...])
    u_t = jnp.tanh(w_q + w_k)
    attention_vector = u_t * value

    # cat([attention_vector, hx]) via split weights
    attn_weight = jax.nn.relu(dot(_bf16(attention_vector), wat_a_ref)
                              + dot(hx_b, wat_b_ref) + bat_ref[...])  # (B, 256)

    # --- fused policy + value heads (lane-padded block-diagonal weights) ----
    h1 = jax.nn.relu(dot(_bf16(attn_weight), wh1_ref) + bh1_ref[...])   # (B, 256)
    h2 = jax.nn.relu(dot(_bf16(h1), wh2_ref) + bh2_ref[...])            # (B, 128)
    slab = dot(_bf16(h2), wh3_ref) + bh3_ref[...]                       # (B, 128)

    slab_out_ref[...] = slab
    hx_sc[...] = hx
    cx_sc[...] = cx
    hx_out_ref[...] = hx
    cx_out_ref[...] = cx


# -----------------------------------------------------------------------------
# Wrappers: one pallas_call per rollout; weights DMA'd once, state in scratch.
# -----------------------------------------------------------------------------
@jax.jit
def actor_critic_rollout(fused_table, kernel_params, img_seq, instr_seq,
                         hx0, cx0, query_seq):
    """T recurrent steps in one kernel. img_seq/query_seq: (T,B,256),
    instr_seq: (T,B,1). Returns (values (T,B,1), policies (T,B,3), hx, cx)."""
    T, B = img_seq.shape[0], img_seq.shape[1]

    # Embedding + target_att_linear folded; one gather per rollout (amortized).
    word_pre = fused_table[instr_seq.reshape(T * B)].reshape(T, B, 256)

    step_spec = pl.BlockSpec((None, B, 256), lambda t: (t, 0, 0))
    state_spec = pl.BlockSpec((B, 256), lambda t: (0, 0))
    param_specs = [pl.BlockSpec(p.shape, lambda t: (0, 0)) for p in kernel_params]

    inputs = (word_pre, img_seq, query_seq, hx0, cx0) + tuple(kernel_params)

    out_shapes = (
        jax.ShapeDtypeStruct((T, B, 128), jnp.float32),   # per-step [policy|value|0]
        jax.ShapeDtypeStruct((B, 256), jnp.float32),      # final hx
        jax.ShapeDtypeStruct((B, 256), jnp.float32),      # final cx
    )
    out_specs = (
        pl.BlockSpec((None, B, 128), lambda t: (t, 0, 0)),
        state_spec,
        state_spec,
    )

    # Advisory cost hint (per-row MACs of the split/fused matmul chain).
    macs_per_row = (3 * 256 * 1024          # lstm: wih_a + wih_b + whh
                    + 2 * 256 * 512         # before_attn split
                    + 2 * 256 * 256         # layer_query + layer_key
                    + 2 * 256 * 256         # attn split
                    + 256 * 256 + 256 * 128 + 128 * 128)   # fused heads
    weight_bytes = sum(int(p.size) * p.dtype.itemsize for p in kernel_params)
    act_bytes = (3 * T * B * 256 + 2 * B * 256) * 4
    out_bytes = (T * B * 128 + 2 * B * 256) * 4

    slab, hx_out, cx_out = pl.pallas_call(
        actor_critic_step_kernel,
        out_shape=out_shapes,
        grid_spec=pltpu.PrefetchScalarGridSpec(
            num_scalar_prefetch=0,
            grid=(T,),
            in_specs=[step_spec, step_spec, step_spec, state_spec, state_spec]
                     + param_specs,
            out_specs=out_specs,
            scratch_shapes=[pltpu.VMEM((B, 256), jnp.float32),
                            pltpu.VMEM((B, 256), jnp.float32)]),
        # hx0 -> hx_out, cx0 -> cx_out (same shape/dtype/blocking); free reuse
        # of the recurrent-state buffers when the caller donates them.
        input_output_aliases={3: 1, 4: 2},
        compiler_params=pltpu.CompilerParams(
            dimension_semantics=("arbitrary",),        # recurrent axis
            vmem_limit_bytes=32 * 1024 * 1024),
        cost_estimate=pl.CostEstimate(
            flops=2 * T * B * macs_per_row,
            transcendentals=1792 * T * B,
            bytes_accessed=weight_bytes + act_bytes + out_bytes),
    )(*inputs)

    policies = slab[:, :, 0:3]
    values = slab[:, :, 3:4]
    return values, policies, hx_out, cx_out


def actor_critic_forward(fused_table, kernel_params, img_feat, instruction_idx,
                         hx, cx, query):
    """Exact single-step nn.Module forward: returns (value, policy, hx, cx)."""
    values, policies, hx_out, cx_out = actor_critic_rollout(
        fused_table, kernel_params,
        img_feat[None], instruction_idx[None], hx, cx, query[None])
    return values[0], policies[0], hx_out, cx_out


# -----------------------------------------------------------------------------
# Deterministic parameter construction (shapes from the module's __init__).
# Large weights stored bf16; biases / tiny embedding path in f32.
# -----------------------------------------------------------------------------
def init_params(key):
    keys = iter(jax.random.split(key, 64))

    def linear(fan_in, fan_out, w_dtype=jnp.bfloat16):
        bound = 1.0 / math.sqrt(fan_in)
        w = jax.random.uniform(next(keys), (fan_in, fan_out),
                               minval=-bound, maxval=bound, dtype=jnp.float32)
        b = jax.random.uniform(next(keys), (1, fan_out),
                               minval=-bound, maxval=bound, dtype=jnp.float32)
        return w.astype(w_dtype), b

    p = {}
    p['emb'] = jax.random.normal(next(keys), (4, 25), dtype=jnp.float32)
    p['wt'], p['bt'] = linear(25, 256, jnp.float32)   # target_att_linear (f32, folded)
    p['wih'], p['bih'] = linear(512, 1024)            # lstm W_ih^T / bias_ih (gate order i,f,g,o)
    p['whh'], p['bhh'] = linear(256, 1024)            # lstm W_hh^T / bias_hh
    p['wbef'], p['bbef'] = linear(512, 512)           # before_attn
    p['wq'], p['bq'] = linear(256, 256)               # layer_query
    p['wk'], p['bk'] = linear(256, 256)               # layer_key
    p['wat'], p['bat'] = linear(512, 256)             # attn
    p['wp1'], p['bp1'] = linear(256, 128)             # mlp_policy1
    p['wp2'], p['bp2'] = linear(128, 64)              # mlp_policy2
    p['wpo'], p['bpo'] = linear(64, 3)                # policy
    p['wv1'], p['bv1'] = linear(256, 64)              # mlp_value1
    p['wv2'], p['bv2'] = linear(64, 32)               # mlp_value2
    p['wva'], p['bva'] = linear(32, 1)                # value
    return p


def prepare_params(p):
    """One-time prep: fold embedding path, split concat-weights, build
    lane-padded block-diagonal fused head weights."""
    bf, f32 = jnp.bfloat16, jnp.float32

    # embedding + target_att_linear -> (4, 256) table (f32, exact fold).
    fused_table = p['emb'] @ p['wt'] + p['bt']

    # split weights that previously consumed a lane-axis concatenation
    wih_a, wih_b = p['wih'][:256], p['wih'][256:]
    wbef_a, wbef_b = p['wbef'][:256], p['wbef'][256:]
    wat_a, wat_b = p['wat'][:256], p['wat'][256:]
    blstm = p['bih'] + p['bhh']

    # fused policy/value heads, zero-padded to lane-dense shapes (exact in bf16)
    wh1 = (jnp.zeros((256, 256), bf)
           .at[:, 0:128].set(p['wp1'])
           .at[:, 128:192].set(p['wv1']))
    bh1 = (jnp.zeros((1, 256), f32)
           .at[:, 0:128].set(p['bp1'])
           .at[:, 128:192].set(p['bv1']))
    wh2 = (jnp.zeros((256, 128), bf)
           .at[0:128, 0:64].set(p['wp2'])
           .at[128:192, 64:96].set(p['wv2']))
    bh2 = (jnp.zeros((1, 128), f32)
           .at[:, 0:64].set(p['bp2'])
           .at[:, 64:96].set(p['bv2']))
    wh3 = (jnp.zeros((128, 128), bf)
           .at[0:64, 0:3].set(p['wpo'])
           .at[64:96, 3:4].set(p['wva']))
    bh3 = (jnp.zeros((1, 128), f32)
           .at[:, 0:3].set(p['bpo'])
           .at[:, 3:4].set(p['bva']))

    kernel_params = (wih_a, wih_b, blstm, p['whh'],
                     wbef_a, wbef_b, p['bbef'],
                     p['wq'], p['bq'], p['wk'], p['bk'],
                     wat_a, wat_b, p['bat'],
                     wh1, bh1, wh2, bh2, wh3, bh3)
    return fused_table, kernel_params


# -----------------------------------------------------------------------------
# Pure-JAX reference (original module structure, same bf16 weight precision).
# -----------------------------------------------------------------------------
def reference_forward(p, img_feat, instruction_idx, hx0, cx0, query):
    def mm(x, w):  # mirror the kernel: bf16 operands, f32 accumulation
        return jnp.dot(x.astype(jnp.bfloat16), w, preferred_element_type=jnp.float32)

    B = img_feat.shape[0]
    we = p['emb'][instruction_idx.reshape(B)]                 # (B, 25)
    we = we @ p['wt'] + p['bt']                               # f32 path
    gated_att = jax.nn.sigmoid(we)
    gated_fusion = img_feat * gated_att
    lstm_in = jnp.concatenate([gated_fusion, gated_att], axis=1)
    gates = mm(lstm_in, p['wih']) + p['bih'] + mm(hx0, p['whh']) + p['bhh']
    i_g, f_g, g_g, o_g = jnp.split(gates, 4, axis=1)
    cx = jax.nn.sigmoid(f_g) * cx0 + jax.nn.sigmoid(i_g) * jnp.tanh(g_g)
    hx = jax.nn.sigmoid(o_g) * jnp.tanh(cx)
    mlp_attn = jax.nn.relu(
        mm(jnp.concatenate([gated_fusion, hx], axis=1), p['wbef']) + p['bbef'])
    key, value = jnp.split(mlp_attn, 2, axis=1)
    u_t = jnp.tanh(jax.nn.relu(mm(query, p['wq']) + p['bq'])
                   + jax.nn.relu(mm(key, p['wk']) + p['bk']))
    attn_weight = jax.nn.relu(
        mm(jnp.concatenate([u_t * value, hx], axis=1), p['wat']) + p['bat'])
    pol = jax.nn.relu(mm(attn_weight, p['wp1']) + p['bp1'])
    pol = jax.nn.relu(mm(pol, p['wp2']) + p['bp2'])
    pol = mm(pol, p['wpo']) + p['bpo']
    val = jax.nn.relu(mm(attn_weight, p['wv1']) + p['bv1'])
    val = jax.nn.relu(mm(val, p['wv2']) + p['bv2'])
    val = mm(val, p['wva']) + p['bva']
    return val, pol, hx, cx


if __name__ == "__main__":
    root = jax.random.PRNGKey(0)
    k_in, k_par = jax.random.split(root)
    k_img, k_idx, k_hx, k_cx, k_q = jax.random.split(k_in, 5)

    B, T = 2, 6
    img_seq = jax.random.normal(k_img, (T, B, 256), dtype=jnp.float32)
    instr_seq = jax.random.randint(k_idx, (T, B, 1), 0, 4, dtype=jnp.int32)
    hx0 = jax.random.normal(k_hx, (B, 256), dtype=jnp.float32)
    cx0 = jax.random.normal(k_cx, (B, 256), dtype=jnp.float32)
    query_seq = jax.random.normal(k_q, (T, B, 256), dtype=jnp.float32)

    raw_params = init_params(k_par)
    fused_table, kernel_params = prepare_params(raw_params)

    # Pure-JAX reference rollout (computed before the kernel call).
    ref_vals, ref_pols = [], []
    hx_r, cx_r = hx0, cx0
    for t in range(T):
        v_r, p_r, hx_r, cx_r = reference_forward(
            raw_params, img_seq[t], instr_seq[t], hx_r, cx_r, query_seq[t])
        ref_vals.append(v_r)
        ref_pols.append(p_r)
    ref = (jnp.stack(ref_vals), jnp.stack(ref_pols), hx_r, cx_r)

    # Kernel rollout: weights DMA'd once, T recurrent steps in one pallas_call.
    out = actor_critic_rollout(fused_table, kernel_params,
                               img_seq, instr_seq, hx0, cx0, query_seq)
    out = jax.block_until_ready(out)

    for got, want in zip(out, ref):
        assert got.shape == want.shape and got.dtype == want.dtype
        assert jnp.allclose(got, want, atol=3e-3, rtol=3e-3), "rollout mismatch"

    # Single-step path: exact nn.Module forward semantics.
    step_out = actor_critic_forward(fused_table, kernel_params,
                                    img_seq[0], instr_seq[0], hx0, cx0, query_seq[0])
    step_out = jax.block_until_ready(step_out)
    step_ref = reference_forward(raw_params, img_seq[0], instr_seq[0],
                                 hx0, cx0, query_seq[0])
    for got, want in zip(step_out, step_ref):
        assert got.shape == want.shape and got.dtype == want.dtype
        assert jnp.allclose(got, want, atol=3e-3, rtol=3e-3), "step mismatch"

    print("KERNEL_OK")
</pallas_src>

<mosaic_0001>
module attributes {stable_mosaic.version = 11 : i64} {
  func.func @actor_critic_step_kernel(%arg0: i32, %arg1: memref<1x2x256xf32, #tpu.memory_space<vmem>>, %arg2: memref<1x2x256xf32, #tpu.memory_space<vmem>>, %arg3: memref<1x2x256xf32, #tpu.memory_space<vmem>>, %arg4: memref<2x256xf32, #tpu.memory_space<vmem>>, %arg5: memref<2x256xf32, #tpu.memory_space<vmem>>, %arg6: memref<256x1024xbf16, #tpu.memory_space<vmem>>, %arg7: memref<256x1024xbf16, #tpu.memory_space<vmem>>, %arg8: memref<1x1024xf32, #tpu.memory_space<vmem>>, %arg9: memref<256x1024xbf16, #tpu.memory_space<vmem>>, %arg10: memref<256x512xbf16, #tpu.memory_space<vmem>>, %arg11: memref<256x512xbf16, #tpu.memory_space<vmem>>, %arg12: memref<1x512xf32, #tpu.memory_space<vmem>>, %arg13: memref<256x256xbf16, #tpu.memory_space<vmem>>, %arg14: memref<1x256xf32, #tpu.memory_space<vmem>>, %arg15: memref<256x256xbf16, #tpu.memory_space<vmem>>, %arg16: memref<1x256xf32, #tpu.memory_space<vmem>>, %arg17: memref<256x256xbf16, #tpu.memory_space<vmem>>, %arg18: memref<256x256xbf16, #tpu.memory_space<vmem>>, %arg19: memref<1x256xf32, #tpu.memory_space<vmem>>, %arg20: memref<256x256xbf16, #tpu.memory_space<vmem>>, %arg21: memref<1x256xf32, #tpu.memory_space<vmem>>, %arg22: memref<256x128xbf16, #tpu.memory_space<vmem>>, %arg23: memref<1x128xf32, #tpu.memory_space<vmem>>, %arg24: memref<128x128xbf16, #tpu.memory_space<vmem>>, %arg25: memref<1x128xf32, #tpu.memory_space<vmem>>, %arg26: memref<1x2x128xf32, #tpu.memory_space<vmem>>, %arg27: memref<2x256xf32, #tpu.memory_space<vmem>>, %arg28: memref<2x256xf32, #tpu.memory_space<vmem>>, %arg29: memref<2x256xf32, #tpu.memory_space<vmem>>, %arg30: memref<2x256xf32, #tpu.memory_space<vmem>>) attributes {dimension_semantics = [#tpu.dimension_semantics<arbitrary>], iteration_bounds = array<i64: 6>, scalar_prefetch = 0 : i64, scratch_operands = 2 : i64, tpu.core_type = #tpu.core_type<tc>, window_params = [{transform_indices = @transform_0, window_bounds = array<i64: 1, 2, 256>}, {transform_indices = @transform_1, window_bounds = array<i64: 1, 2, 256>}, {transform_indices = @transform_2, window_bounds = array<i64: 1, 2, 256>}, {pipeline_mode = #tpu.pipeline_mode<synchronous>, transform_indices = @transform_3, window_bounds = array<i64: 2, 256>}, {pipeline_mode = #tpu.pipeline_mode<synchronous>, transform_indices = @transform_4, window_bounds = array<i64: 2, 256>}, {pipeline_mode = #tpu.pipeline_mode<synchronous>, transform_indices = @transform_5, window_bounds = array<i64: 256, 1024>}, {pipeline_mode = #tpu.pipeline_mode<synchronous>, transform_indices = @transform_6, window_bounds = array<i64: 256, 1024>}, {pipeline_mode = #tpu.pipeline_mode<synchronous>, transform_indices = @transform_7, window_bounds = array<i64: 1, 1024>}, {pipeline_mode = #tpu.pipeline_mode<synchronous>, transform_indices = @transform_8, window_bounds = array<i64: 256, 1024>}, {pipeline_mode = #tpu.pipeline_mode<synchronous>, transform_indices = @transform_9, window_bounds = array<i64: 256, 512>}, {pipeline_mode = #tpu.pipeline_mode<synchronous>, transform_indices = @transform_10, window_bounds = array<i64: 256, 512>}, {pipeline_mode = #tpu.pipeline_mode<synchronous>, transform_indices = @transform_11, window_bounds = array<i64: 1, 512>}, {pipeline_mode = #tpu.pipeline_mode<synchronous>, transform_indices = @transform_12, window_bounds = array<i64: 256, 256>}, {pipeline_mode = #tpu.pipeline_mode<synchronous>, transform_indices = @transform_13, window_bounds = array<i64: 1, 256>}, {pipeline_mode = #tpu.pipeline_mode<synchronous>, transform_indices = @transform_14, window_bounds = array<i64: 256, 256>}, {pipeline_mode = #tpu.pipeline_mode<synchronous>, transform_indices = @transform_15, window_bounds = array<i64: 1, 256>}, {pipeline_mode = #tpu.pipeline_mode<synchronous>, transform_indices = @transform_16, window_bounds = array<i64: 256, 256>}, {pipeline_mode = #tpu.pipeline_mode<synchronous>, transform_indices = @transform_17, window_bounds = array<i64: 256, 256>}, {pipeline_mode = #tpu.pipeline_mode<synchronous>, transform_indices = @transform_18, window_bounds = array<i64: 1, 256>}, {pipeline_mode = #tpu.pipeline_mode<synchronous>, transform_indices = @transform_19, window_bounds = array<i64: 256, 256>}, {pipeline_mode = #tpu.pipeline_mode<synchronous>, transform_indices = @transform_20, window_bounds = array<i64: 1, 256>}, {pipeline_mode = #tpu.pipeline_mode<synchronous>, transform_indices = @transform_21, window_bounds = array<i64: 256, 128>}, {pipeline_mode = #tpu.pipeline_mode<synchronous>, transform_indices = @transform_22, window_bounds = array<i64: 1, 128>}, {pipeline_mode = #tpu.pipeline_mode<synchronous>, transform_indices = @transform_23, window_bounds = array<i64: 128, 128>}, {pipeline_mode = #tpu.pipeline_mode<synchronous>, transform_indices = @transform_24, window_bounds = array<i64: 1, 128>}, {transform_indices = @transform_25, window_bounds = array<i64: 1, 2, 128>}, {pipeline_mode = #tpu.pipeline_mode<synchronous>, transform_indices = @transform_26, window_bounds = array<i64: 2, 256>}, {pipeline_mode = #tpu.pipeline_mode<synchronous>, transform_indices = @transform_27, window_bounds = array<i64: 2, 256>}]} {
    %c0_i32 = arith.constant 0 : i32
    %0 = arith.cmpi eq, %arg0, %c0_i32 : i32
    %1 = arith.extui %0 : i1 to i32
    %c0_i32_0 = arith.constant 0 : i32
    %2 = arith.cmpi ne, %1, %c0_i32_0 : i32
    scf.if %2 {
      %c0_85 = arith.constant 0 : index
      %c0_86 = arith.constant 0 : index
      %128 = vector.load %arg4[%c0_85, %c0_86] : memref<2x256xf32, #tpu.memory_space<vmem>>, vector<2x256xf32>
      %c0_87 = arith.constant 0 : index
      %c0_88 = arith.constant 0 : index
      %129 = vector.load %arg29[%c0_87, %c0_88] : memref<2x256xf32, #tpu.memory_space<vmem>>, vector<2x256xf32>
      tpu.vector_store %arg29[%c0_87, %c0_88], %128 {strides = array<i32>} : memref<2x256xf32, #tpu.memory_space<vmem>>, vector<2x256xf32>,
      %c0_89 = arith.constant 0 : index
      %c0_90 = arith.constant 0 : index
      %130 = vector.load %arg5[%c0_89, %c0_90] : memref<2x256xf32, #tpu.memory_space<vmem>>, vector<2x256xf32>
      %c0_91 = arith.constant 0 : index
      %c0_92 = arith.constant 0 : index
      %131 = vector.load %arg30[%c0_91, %c0_92] : memref<2x256xf32, #tpu.memory_space<vmem>>, vector<2x256xf32>
      tpu.vector_store %arg30[%c0_91, %c0_92], %130 {strides = array<i32>} : memref<2x256xf32, #tpu.memory_space<vmem>>, vector<2x256xf32>,
    } else {
    }
    %c0 = arith.constant 0 : index
    %c0_1 = arith.constant 0 : index
    %c0_2 = arith.constant 0 : index
    %3 = vector.load %arg1[%c0, %c0_1, %c0_2] : memref<1x2x256xf32, #tpu.memory_space<vmem>>, vector<1x2x256xf32>
    %4 = vector.shape_cast %3 : vector<1x2x256xf32> to vector<2x256xf32>
    %5 = arith.negf %4 : vector<2x256xf32>
    %6 = math.exp %5 : vector<2x256xf32>
    %cst = arith.constant 1.000000e+00 : f32
    %7 = vector.broadcast %cst : f32 to vector<2x256xf32>
    %8 = arith.addf %7, %6 : vector<2x256xf32>
    %9 = arith.divf %7, %8 : vector<2x256xf32>
    %c0_3 = arith.constant 0 : index
    %c0_4 = arith.constant 0 : index
    %c0_5 = arith.constant 0 : index
    %10 = vector.load %arg2[%c0_3, %c0_4, %c0_5] : memref<1x2x256xf32, #tpu.memory_space<vmem>>, vector<1x2x256xf32>
    %11 = vector.shape_cast %10 : vector<1x2x256xf32> to vector<2x256xf32>
    %12 = arith.mulf %11, %9 : vector<2x256xf32>
    %13 = arith.truncf %12 : vector<2x256xf32> to vector<2x256xbf16>
    %14 = arith.truncf %9 : vector<2x256xf32> to vector<2x256xbf16>
    %c0_6 = arith.constant 0 : index
    %c0_7 = arith.constant 0 : index
    %15 = vector.load %arg29[%c0_6, %c0_7] : memref<2x256xf32, #tpu.memory_space<vmem>>, vector<2x256xf32>
    %16 = arith.truncf %15 : vector<2x256xf32> to vector<2x256xbf16>
    %c0_8 = arith.constant 0 : index
    %c0_9 = arith.constant 0 : index
    %17 = vector.load %arg6[%c0_8, %c0_9] : memref<256x1024xbf16, #tpu.memory_space<vmem>>, vector<256x1024xbf16>
    %cst_10 = arith.constant dense<0.000000e+00> : vector<2x1024xf32>
    %18 = tpu.matmul %13, %17, %cst_10 {dimension_numbers = #tpu.dot_dimension_numbers<[1], [0], [0], [1], [0, 0, 1, 1], [], []>} : vector<2x256xbf16>, vector<256x1024xbf16>, vector<2x1024xf32> -> vector<2x1024xf32>
    %c0_11 = arith.constant 0 : index
    %c0_12 = arith.constant 0 : index
    %19 = vector.load %arg7[%c0_11, %c0_12] : memref<256x1024xbf16, #tpu.memory_space<vmem>>, vector<256x1024xbf16>
    %cst_13 = arith.constant dense<0.000000e+00> : vector<2x1024xf32>
    %20 = tpu.matmul %14, %19, %cst_13 {dimension_numbers = #tpu.dot_dimension_numbers<[1], [0], [0], [1], [0, 0, 1, 1], [], []>} : vector<2x256xbf16>, vector<256x1024xbf16>, vector<2x1024xf32> -> vector<2x1024xf32>
    %21 = arith.addf %18, %20 : vector<2x1024xf32>
    %c0_14 = arith.constant 0 : index
    %c0_15 = arith.constant 0 : index
    %22 = vector.load %arg9[%c0_14, %c0_15] : memref<256x1024xbf16, #tpu.memory_space<vmem>>, vector<256x1024xbf16>
    %cst_16 = arith.constant dense<0.000000e+00> : vector<2x1024xf32>
    %23 = tpu.matmul %16, %22, %cst_16 {dimension_numbers = #tpu.dot_dimension_numbers<[1], [0], [0], [1], [0, 0, 1, 1], [], []>} : vector<2x256xbf16>, vector<256x1024xbf16>, vector<2x1024xf32> -> vector<2x1024xf32>
    %24 = arith.addf %21, %23 : vector<2x1024xf32>
    %c0_17 = arith.constant 0 : index
    %c0_18 = arith.constant 0 : index
    %25 = vector.load %arg8[%c0_17, %c0_18] : memref<1x1024xf32, #tpu.memory_space<vmem>>, vector<1x1024xf32>
    %26 = vector.broadcast %25 : vector<1x1024xf32> to vector<2x1024xf32>
    %27 = arith.addf %24, %26 : vector<2x1024xf32>
    %28 = vector.extract_strided_slice %27 {offsets = [0, 0], sizes = [2, 256], strides = [1, 1]} : vector<2x1024xf32> to vector<2x256xf32>
    %29 = vector.extract_strided_slice %27 {offsets = [0, 256], sizes = [2, 256], strides = [1, 1]} : vector<2x1024xf32> to vector<2x256xf32>
    %30 = vector.extract_strided_slice %27 {offsets = [0, 512], sizes = [2, 256], strides = [1, 1]} : vector<2x1024xf32> to vector<2x256xf32>
    %31 = vector.extract_strided_slice %27 {offsets = [0, 768], sizes = [2, 256], strides = [1, 1]} : vector<2x1024xf32> to vector<2x256xf32>
    %32 = arith.negf %29 : vector<2x256xf32>
    %33 = math.exp %32 : vector<2x256xf32>
    %cst_19 = arith.constant 1.000000e+00 : f32
    %34 = vector.broadcast %cst_19 : f32 to vector<2x256xf32>
    %35 = arith.addf %34, %33 : vector<2x256xf32>
    %36 = arith.divf %34, %35 : vector<2x256xf32>
    %c0_20 = arith.constant 0 : index
    %c0_21 = arith.constant 0 : index
    %37 = vector.load %arg30[%c0_20, %c0_21] : memref<2x256xf32, #tpu.memory_space<vmem>>, vector<2x256xf32>
    %38 = arith.mulf %36, %37 : vector<2x256xf32>
    %39 = arith.negf %28 : vector<2x256xf32>
    %40 = math.exp %39 : vector<2x256xf32>
    %cst_22 = arith.constant 1.000000e+00 : f32
    %41 = vector.broadcast %cst_22 : f32 to vector<2x256xf32>
    %42 = arith.addf %41, %40 : vector<2x256xf32>
    %43 = arith.divf %41, %42 : vector<2x256xf32>
    %44 = math.tanh %30 : vector<2x256xf32>
    %45 = arith.mulf %43, %44 : vector<2x256xf32>
    %46 = arith.addf %38, %45 : vector<2x256xf32>
    %47 = arith.negf %31 : vector<2x256xf32>
    %48 = math.exp %47 : vector<2x256xf32>
    %cst_23 = arith.constant 1.000000e+00 : f32
    %49 = vector.broadcast %cst_23 : f32 to vector<2x256xf32>
    %50 = arith.addf %49, %48 : vector<2x256xf32>
    %51 = arith.divf %49, %50 : vector<2x256xf32>
    %52 = math.tanh %46 : vector<2x256xf32>
    %53 = arith.mulf %51, %52 : vector<2x256xf32>
    %54 = arith.truncf %53 : vector<2x256xf32> to vector<2x256xbf16>
    %c0_24 = arith.constant 0 : index
    %c0_25 = arith.constant 0 : index
    %55 = vector.load %arg10[%c0_24, %c0_25] : memref<256x512xbf16, #tpu.memory_space<vmem>>, vector<256x512xbf16>
    %cst_26 = arith.constant dense<0.000000e+00> : vector<2x512xf32>
    %56 = tpu.matmul %13, %55, %cst_26 {dimension_numbers = #tpu.dot_dimension_numbers<[1], [0], [0], [1], [0, 0, 1, 1], [], []>} : vector<2x256xbf16>, vector<256x512xbf16>, vector<2x512xf32> -> vector<2x512xf32>
    %c0_27 = arith.constant 0 : index
    %c0_28 = arith.constant 0 : index
    %57 = vector.load %arg11[%c0_27, %c0_28] : memref<256x512xbf16, #tpu.memory_space<vmem>>, vector<256x512xbf16>
    %cst_29 = arith.constant dense<0.000000e+00> : vector<2x512xf32>
    %58 = tpu.matmul %54, %57, %cst_29 {dimension_numbers = #tpu.dot_dimension_numbers<[1], [0], [0], [1], [0, 0, 1, 1], [], []>} : vector<2x256xbf16>, vector<256x512xbf16>, vector<2x512xf32> -> vector<2x512xf32>
    %59 = arith.addf %56, %58 : vector<2x512xf32>
    %c0_30 = arith.constant 0 : index
    %c0_31 = arith.constant 0 : index
    %60 = vector.load %arg12[%c0_30, %c0_31] : memref<1x512xf32, #tpu.memory_space<vmem>>, vector<1x512xf32>
    %61 = vector.broadcast %60 : vector<1x512xf32> to vector<2x512xf32>
    %62 = arith.addf %59, %61 : vector<2x512xf32>
    %cst_32 = arith.constant 0.000000e+00 : f32
    %63 = vector.broadcast %cst_32 : f32 to vector<2x512xf32>
    %64 = arith.maximumf %62, %63 : vector<2x512xf32>
    %65 = vector.extract_strided_slice %64 {offsets = [0, 0], sizes = [2, 256], strides = [1, 1]} : vector<2x512xf32> to vector<2x256xf32>
    %66 = vector.extract_strided_slice %64 {offsets = [0, 256], sizes = [2, 256], strides = [1, 1]} : vector<2x512xf32> to vector<2x256xf32>
    %c0_33 = arith.constant 0 : index
    %c0_34 = arith.constant 0 : index
    %c0_35 = arith.constant 0 : index
    %67 = vector.load %arg3[%c0_33, %c0_34, %c0_35] : memref<1x2x256xf32, #tpu.memory_space<vmem>>, vector<1x2x256xf32>
    %68 = vector.shape_cast %67 : vector<1x2x256xf32> to vector<2x256xf32>
    %69 = arith.truncf %68 : vector<2x256xf32> to vector<2x256xbf16>
    %c0_36 = arith.constant 0 : index
    %c0_37 = arith.constant 0 : index
    %70 = vector.load %arg13[%c0_36, %c0_37] : memref<256x256xbf16, #tpu.memory_space<vmem>>, vector<256x256xbf16>
    %cst_38 = arith.constant dense<0.000000e+00> : vector<2x256xf32>
    %71 = tpu.matmul %69, %70, %cst_38 {dimension_numbers = #tpu.dot_dimension_numbers<[1], [0], [0], [1], [0, 0, 1, 1], [], []>} : vector<2x256xbf16>, vector<256x256xbf16>, vector<2x256xf32> -> vector<2x256xf32>
    %c0_39 = arith.constant 0 : index
    %c0_40 = arith.constant 0 : index
    %72 = vector.load %arg14[%c0_39, %c0_40] : memref<1x256xf32, #tpu.memory_space<vmem>>, vector<1x256xf32>
    %73 = vector.broadcast %72 : vector<1x256xf32> to vector<2x256xf32>
    %74 = arith.addf %71, %73 : vector<2x256xf32>
    %cst_41 = arith.constant 0.000000e+00 : f32
    %75 = vector.broadcast %cst_41 : f32 to vector<2x256xf32>
    %76 = arith.maximumf %74, %75 : vector<2x256xf32>
    %77 = arith.truncf %65 : vector<2x256xf32> to vector<2x256xbf16>
    %c0_42 = arith.constant 0 : index
    %c0_43 = arith.constant 0 : index
    %78 = vector.load %arg15[%c0_42, %c0_43] : memref<256x256xbf16, #tpu.memory_space<vmem>>, vector<256x256xbf16>
    %cst_44 = arith.constant dense<0.000000e+00> : vector<2x256xf32>
    %79 = tpu.matmul %77, %78, %cst_44 {dimension_numbers = #tpu.dot_dimension_numbers<[1], [0], [0], [1], [0, 0, 1, 1], [], []>} : vector<2x256xbf16>, vector<256x256xbf16>, vector<2x256xf32> -> vector<2x256xf32>
    %c0_45 = arith.constant 0 : index
    %c0_46 = arith.constant 0 : index
    %80 = vector.load %arg16[%c0_45, %c0_46] : memref<1x256xf32, #tpu.memory_space<vmem>>, vector<1x256xf32>
    %81 = vector.broadcast %80 : vector<1x256xf32> to vector<2x256xf32>
    %82 = arith.addf %79, %81 : vector<2x256xf32>
    %cst_47 = arith.constant 0.000000e+00 : f32
    %83 = vector.broadcast %cst_47 : f32 to vector<2x256xf32>
    %84 = arith.maximumf %82, %83 : vector<2x256xf32>
    %85 = arith.addf %76, %84 : vector<2x256xf32>
    %86 = math.tanh %85 : vector<2x256xf32>
    %87 = arith.mulf %86, %66 : vector<2x256xf32>
    %88 = arith.truncf %87 : vector<2x256xf32> to vector<2x256xbf16>
    %c0_48 = arith.constant 0 : index
    %c0_49 = arith.constant 0 : index
    %89 = vector.load %arg17[%c0_48, %c0_49] : memref<256x256xbf16, #tpu.memory_space<vmem>>, vector<256x256xbf16>
    %cst_50 = arith.constant dense<0.000000e+00> : vector<2x256xf32>
    %90 = tpu.matmul %88, %89, %cst_50 {dimension_numbers = #tpu.dot_dimension_numbers<[1], [0], [0], [1], [0, 0, 1, 1], [], []>} : vector<2x256xbf16>, vector<256x256xbf16>, vector<2x256xf32> -> vector<2x256xf32>
    %c0_51 = arith.constant 0 : index
    %c0_52 = arith.constant 0 : index
    %91 = vector.load %arg18[%c0_51, %c0_52] : memref<256x256xbf16, #tpu.memory_space<vmem>>, vector<256x256xbf16>
    %cst_53 = arith.constant dense<0.000000e+00> : vector<2x256xf32>
    %92 = tpu.matmul %54, %91, %cst_53 {dimension_numbers = #tpu.dot_dimension_numbers<[1], [0], [0], [1], [0, 0, 1, 1], [], []>} : vector<2x256xbf16>, vector<256x256xbf16>, vector<2x256xf32> -> vector<2x256xf32>
    %93 = arith.addf %90, %92 : vector<2x256xf32>
    %c0_54 = arith.constant 0 : index
    %c0_55 = arith.constant 0 : index
    %94 = vector.load %arg19[%c0_54, %c0_55] : memref<1x256xf32, #tpu.memory_space<vmem>>, vector<1x256xf32>
    %95 = vector.broadcast %94 : vector<1x256xf32> to vector<2x256xf32>
    %96 = arith.addf %93, %95 : vector<2x256xf32>
    %cst_56 = arith.constant 0.000000e+00 : f32
    %97 = vector.broadcast %cst_56 : f32 to vector<2x256xf32>
    %98 = arith.maximumf %96, %97 : vector<2x256xf32>
    %99 = arith.truncf %98 : vector<2x256xf32> to vector<2x256xbf16>
    %c0_57 = arith.constant 0 : index
    %c0_58 = arith.constant 0 : index
    %100 = vector.load %arg20[%c0_57, %c0_58] : memref<256x256xbf16, #tpu.memory_space<vmem>>, vector<256x256xbf16>
    %cst_59 = arith.constant dense<0.000000e+00> : vector<2x256xf32>
    %101 = tpu.matmul %99, %100, %cst_59 {dimension_numbers = #tpu.dot_dimension_numbers<[1], [0], [0], [1], [0, 0, 1, 1], [], []>} : vector<2x256xbf16>, vector<256x256xbf16>, vector<2x256xf32> -> vector<2x256xf32>
    %c0_60 = arith.constant 0 : index
    %c0_61 = arith.constant 0 : index
    %102 = vector.load %arg21[%c0_60, %c0_61] : memref<1x256xf32, #tpu.memory_space<vmem>>, vector<1x256xf32>
    %103 = vector.broadcast %102 : vector<1x256xf32> to vector<2x256xf32>
    %104 = arith.addf %101, %103 : vector<2x256xf32>
    %cst_62 = arith.constant 0.000000e+00 : f32
    %105 = vector.broadcast %cst_62 : f32 to vector<2x256xf32>
    %106 = arith.maximumf %104, %105 : vector<2x256xf32>
    %107 = arith.truncf %106 : vector<2x256xf32> to vector<2x256xbf16>
    %c0_63 = arith.constant 0 : index
    %c0_64 = arith.constant 0 : index
    %108 = vector.load %arg22[%c0_63, %c0_64] : memref<256x128xbf16, #tpu.memory_space<vmem>>, vector<256x128xbf16>
    %cst_65 = arith.constant dense<0.000000e+00> : vector<2x128xf32>
    %109 = tpu.matmul %107, %108, %cst_65 {dimension_numbers = #tpu.dot_dimension_numbers<[1], [0], [0], [1], [0, 0, 1, 1], [], []>} : vector<2x256xbf16>, vector<256x128xbf16>, vector<2x128xf32> -> vector<2x128xf32>
    %c0_66 = arith.constant 0 : index
    %c0_67 = arith.constant 0 : index
    %110 = vector.load %arg23[%c0_66, %c0_67] : memref<1x128xf32, #tpu.memory_space<vmem>>, vector<1x128xf32>
    %111 = vector.broadcast %110 : vector<1x128xf32> to vector<2x128xf32>
    %112 = arith.addf %109, %111 : vector<2x128xf32>
    %cst_68 = arith.constant 0.000000e+00 : f32
    %113 = vector.broadcast %cst_68 : f32 to vector<2x128xf32>
    %114 = arith.maximumf %112, %113 : vector<2x128xf32>
    %115 = arith.truncf %114 : vector<2x128xf32> to vector<2x128xbf16>
    %c0_69 = arith.constant 0 : index
    %c0_70 = arith.constant 0 : index
    %116 = vector.load %arg24[%c0_69, %c0_70] : memref<128x128xbf16, #tpu.memory_space<vmem>>, vector<128x128xbf16>
    %cst_71 = arith.constant dense<0.000000e+00> : vector<2x128xf32>
    %117 = tpu.matmul %115, %116, %cst_71 {dimension_numbers = #tpu.dot_dimension_numbers<[1], [0], [0], [1], [0, 0, 1, 1], [], []>} : vector<2x128xbf16>, vector<128x128xbf16>, vector<2x128xf32> -> vector<2x128xf32>
    %c0_72 = arith.constant 0 : index
    %c0_73 = arith.constant 0 : index
    %118 = vector.load %arg25[%c0_72, %c0_73] : memref<1x128xf32, #tpu.memory_space<vmem>>, vector<1x128xf32>
    %119 = vector.broadcast %118 : vector<1x128xf32> to vector<2x128xf32>
    %120 = arith.addf %117, %119 : vector<2x128xf32>
    %c0_74 = arith.constant 0 : index
    %c0_75 = arith.constant 0 : index
    %c0_76 = arith.constant 0 : index
    %121 = vector.load %arg26[%c0_74, %c0_75, %c0_76] : memref<1x2x128xf32, #tpu.memory_space<vmem>>, vector<1x2x128xf32>
    %122 = vector.shape_cast %121 : vector<1x2x128xf32> to vector<2x128xf32>
    %123 = vector.shape_cast %120 : vector<2x128xf32> to vector<1x2x128xf32>
    tpu.vector_store %arg26[%c0_74, %c0_75, %c0_76], %123 {strides = array<i32>} : memref<1x2x128xf32, #tpu.memory_space<vmem>>, vector<1x2x128xf32>,
    %c0_77 = arith.constant 0 : index
    %c0_78 = arith.constant 0 : index
    %124 = vector.load %arg29[%c0_77, %c0_78] : memref<2x256xf32, #tpu.memory_space<vmem>>, vector<2x256xf32>
    tpu.vector_store %arg29[%c0_77, %c0_78], %53 {strides = array<i32>} : memref<2x256xf32, #tpu.memory_space<vmem>>, vector<2x256xf32>,
    %c0_79 = arith.constant 0 : index
    %c0_80 = arith.constant 0 : index
    %125 = vector.load %arg30[%c0_79, %c0_80] : memref<2x256xf32, #tpu.memory_space<vmem>>, vector<2x256xf32>
    tpu.vector_store %arg30[%c0_79, %c0_80], %46 {strides = array<i32>} : memref<2x256xf32, #tpu.memory_space<vmem>>, vector<2x256xf32>,
    %c0_81 = arith.constant 0 : index
    %c0_82 = arith.constant 0 : index
    %126 = vector.load %arg27[%c0_81, %c0_82] : memref<2x256xf32, #tpu.memory_space<vmem>>, vector<2x256xf32>
    tpu.vector_store %arg27[%c0_81, %c0_82], %53 {strides = array<i32>} : memref<2x256xf32, #tpu.memory_space<vmem>>, vector<2x256xf32>,
    %c0_83 = arith.constant 0 : index
    %c0_84 = arith.constant 0 : index
    %127 = vector.load %arg28[%c0_83, %c0_84] : memref<2x256xf32, #tpu.memory_space<vmem>>, vector<2x256xf32>
    tpu.vector_store %arg28[%c0_83, %c0_84], %46 {strides = array<i32>} : memref<2x256xf32, #tpu.memory_space<vmem>>, vector<2x256xf32>,
    return
  }
  func.func @transform_0(%arg0: i32) -> (i32, i32, i32) {
    %c0_i32 = arith.constant 0 : i32
    %c0_i32_0 = arith.constant 0 : i32
    %c0_i32_1 = arith.constant 0 : i32
    return %arg0, %c0_i32, %c0_i32_0 : i32, i32, i32
  }
  func.func @transform_1(%arg0: i32) -> (i32, i32, i32) {
    %c0_i32 = arith.constant 0 : i32
    %c0_i32_0 = arith.constant 0 : i32
    %c0_i32_1 = arith.constant 0 : i32
    return %arg0, %c0_i32, %c0_i32_0 : i32, i32, i32
  }
  func.func @transform_2(%arg0: i32) -> (i32, i32, i32) {
    %c0_i32 = arith.constant 0 : i32
    %c0_i32_0 = arith.constant 0 : i32
    %c0_i32_1 = arith.constant 0 : i32
    return %arg0, %c0_i32, %c0_i32_0 : i32, i32, i32
  }
  func.func @transform_3(%arg0: i32) -> (i32, i32) {
    %c0_i32 = arith.constant 0 : i32
    %c0_i32_0 = arith.constant 0 : i32
    %c0_i32_1 = arith.constant 0 : i32
    return %c0_i32, %c0_i32_0 : i32, i32
  }
  func.func @transform_4(%arg0: i32) -> (i32, i32) {
    %c0_i32 = arith.constant 0 : i32
    %c0_i32_0 = arith.constant 0 : i32
    %c0_i32_1 = arith.constant 0 : i32
    return %c0_i32, %c0_i32_0 : i32, i32
  }
  func.func @transform_5(%arg0: i32) -> (i32, i32) {
    %c0_i32 = arith.constant 0 : i32
    %c0_i32_0 = arith.constant 0 : i32
    %c0_i32_1 = arith.constant 0 : i32
    return %c0_i32, %c0_i32_0 : i32, i32
  }
  func.func @transform_6(%arg0: i32) -> (i32, i32) {
    %c0_i32 = arith.constant 0 : i32
    %c0_i32_0 = arith.constant 0 : i32
    %c0_i32_1 = arith.constant 0 : i32
    return %c0_i32, %c0_i32_0 : i32, i32
  }
  func.func @transform_7(%arg0: i32) -> (i32, i32) {
    %c0_i32 = arith.constant 0 : i32
    %c0_i32_0 = arith.constant 0 : i32
    %c0_i32_1 = arith.constant 0 : i32
    return %c0_i32, %c0_i32_0 : i32, i32
  }
  func.func @transform_8(%arg0: i32) -> (i32, i32) {
    %c0_i32 = arith.constant 0 : i32
    %c0_i32_0 = arith.constant 0 : i32
    %c0_i32_1 = arith.constant 0 : i32
    return %c0_i32, %c0_i32_0 : i32, i32
  }
  func.func @transform_9(%arg0: i32) -> (i32, i32) {
    %c0_i32 = arith.constant 0 : i32
    %c0_i32_0 = arith.constant 0 : i32
    %c0_i32_1 = arith.constant 0 : i32
    return %c0_i32, %c0_i32_0 : i32, i32
  }
  func.func @transform_10(%arg0: i32) -> (i32, i32) {
    %c0_i32 = arith.constant 0 : i32
    %c0_i32_0 = arith.constant 0 : i32
    %c0_i32_1 = arith.constant 0 : i32
    return %c0_i32, %c0_i32_0 : i32, i32
  }
  func.func @transform_11(%arg0: i32) -> (i32, i32) {
    %c0_i32 = arith.constant 0 : i32
    %c0_i32_0 = arith.constant 0 : i32
    %c0_i32_1 = arith.constant 0 : i32
    return %c0_i32, %c0_i32_0 : i32, i32
  }
  func.func @transform_12(%arg0: i32) -> (i32, i32) {
    %c0_i32 = arith.constant 0 : i32
    %c0_i32_0 = arith.constant 0 : i32
    %c0_i32_1 = arith.constant 0 : i32
    return %c0_i32, %c0_i32_0 : i32, i32
  }
  func.func @transform_13(%arg0: i32) -> (i32, i32) {
    %c0_i32 = arith.constant 0 : i32
    %c0_i32_0 = arith.constant 0 : i32
    %c0_i32_1 = arith.constant 0 : i32
    return %c0_i32, %c0_i32_0 : i32, i32
  }
  func.func @transform_14(%arg0: i32) -> (i32, i32) {
    %c0_i32 = arith.constant 0 : i32
    %c0_i32_0 = arith.constant 0 : i32
    %c0_i32_1 = arith.constant 0 : i32
    return %c0_i32, %c0_i32_0 : i32, i32
  }
  func.func @transform_15(%arg0: i32) -> (i32, i32) {
    %c0_i32 = arith.constant 0 : i32
    %c0_i32_0 = arith.constant 0 : i32
    %c0_i32_1 = arith.constant 0 : i32
    return %c0_i32, %c0_i32_0 : i32, i32
  }
  func.func @transform_16(%arg0: i32) -> (i32, i32) {
    %c0_i32 = arith.constant 0 : i32
    %c0_i32_0 = arith.constant 0 : i32
    %c0_i32_1 = arith.constant 0 : i32
    return %c0_i32, %c0_i32_0 : i32, i32
  }
  func.func @transform_17(%arg0: i32) -> (i32, i32) {
    %c0_i32 = arith.constant 0 : i32
    %c0_i32_0 = arith.constant 0 : i32
    %c0_i32_1 = arith.constant 0 : i32
    return %c0_i32, %c0_i32_0 : i32, i32
  }
  func.func @transform_18(%arg0: i32) -> (i32, i32) {
    %c0_i32 = arith.constant 0 : i32
    %c0_i32_0 = arith.constant 0 : i32
    %c0_i32_1 = arith.constant 0 : i32
    return %c0_i32, %c0_i32_0 : i32, i32
  }
  func.func @transform_19(%arg0: i32) -> (i32, i32) {
    %c0_i32 = arith.constant 0 : i32
    %c0_i32_0 = arith.constant 0 : i32
    %c0_i32_1 = arith.constant 0 : i32
    return %c0_i32, %c0_i32_0 : i32, i32
  }
  func.func @transform_20(%arg0: i32) -> (i32, i32) {
    %c0_i32 = arith.constant 0 : i32
    %c0_i32_0 = arith.constant 0 : i32
    %c0_i32_1 = arith.constant 0 : i32
    return %c0_i32, %c0_i32_0 : i32, i32
  }
  func.func @transform_21(%arg0: i32) -> (i32, i32) {
    %c0_i32 = arith.constant 0 : i32
    %c0_i32_0 = arith.constant 0 : i32
    %c0_i32_1 = arith.constant 0 : i32
    return %c0_i32, %c0_i32_0 : i32, i32
  }
  func.func @transform_22(%arg0: i32) -> (i32, i32) {
    %c0_i32 = arith.constant 0 : i32
    %c0_i32_0 = arith.constant 0 : i32
    %c0_i32_1 = arith.constant 0 : i32
    return %c0_i32, %c0_i32_0 : i32, i32
  }
  func.func @transform_23(%arg0: i32) -> (i32, i32) {
    %c0_i32 = arith.constant 0 : i32
    %c0_i32_0 = arith.constant 0 : i32
    %c0_i32_1 = arith.constant 0 : i32
    return %c0_i32, %c0_i32_0 : i32, i32
  }
  func.func @transform_24(%arg0: i32) -> (i32, i32) {
    %c0_i32 = arith.constant 0 : i32
    %c0_i32_0 = arith.constant 0 : i32
    %c0_i32_1 = arith.constant 0 : i32
    return %c0_i32, %c0_i32_0 : i32, i32
  }
  func.func @transform_25(%arg0: i32) -> (i32, i32, i32) {
    %c0_i32 = arith.constant 0 : i32
    %c0_i32_0 = arith.constant 0 : i32
    %c0_i32_1 = arith.constant 0 : i32
    return %arg0, %c0_i32, %c0_i32_0 : i32, i32, i32
  }
  func.func @transform_26(%arg0: i32) -> (i32, i32) {
    %c0_i32 = arith.constant 0 : i32
    %c0_i32_0 = arith.constant 0 : i32
    %c0_i32_1 = arith.constant 0 : i32
    return %c0_i32, %c0_i32_0 : i32, i32
  }
  func.func @transform_27(%arg0: i32) -> (i32, i32) {
    %c0_i32 = arith.constant 0 : i32
    %c0_i32_0 = arith.constant 0 : i32
    %c0_i32_1 = arith.constant 0 : i32
    return %c0_i32, %c0_i32_0 : i32, i32
  }
}

</mosaic_0001>

<bundles_post_ra>
// kernel: actor_critic_rollout.1
= control target key start
LH: loop header
LB: loop body
LE: loop exit
PB: predicated region body
PF: predicated region fallthrough
CT: control target
= control target key end

     0   :  { %s9970_s0 = inlined_call_operand.vmem [shape: f32[6,2,256], index: 0, kind: input, shape index: {}]   ;;  %s9971_s1 = inlined_call_operand.hbm [shape: f32[6,2,256], index: 1, kind: input, shape index: {}]   ;;  %s9972_s2 = inlined_call_operand.hbm [shape: f32[6,2,256], index: 2, kind: input, shape index: {}]   ;;  %s9973_s3 = inlined_call_operand.vmem [shape: f32[2,256], index: 3, kind: input, shape index: {}, may-alias: {3,26}]   ;;  %s9974_s4 = inlined_call_operand.vmem [shape: f32[2,256], index: 4, kind: input, shape index: {}, may-alias: {4,27}]   ;;  %s9975_s5 = inlined_call_operand.hbm [shape: bf16[256,1024], index: 5, kind: input, shape index: {}]   ;;  %s9976_s6 = inlined_call_operand.hbm [shape: bf16[256,1024], index: 6, kind: input, shape index: {}]   ;;  %s9977_s7 = inlined_call_operand.vmem [shape: f32[1,1024], index: 7, kind: input, shape index: {}]   ;;  %s9978_s8 = inlined_call_operand.hbm [shape: bf16[256,1024], index: 8, kind: input, shape index: {}]   ;;  %s9979_s9 = inlined_call_operand.hbm [shape: bf16[256,512], index: 9, kind: input, shape index: {}]   ;;  %s9980_s10 = inlined_call_operand.hbm [shape: bf16[256,512], index: 10, kind: input, shape index: {}]   ;;  %s9981_s11 = inlined_call_operand.vmem [shape: f32[1,512], index: 11, kind: input, shape index: {}]   ;;  %s9982_s12 = inlined_call_operand.vmem [shape: bf16[256,256], index: 12, kind: input, shape index: {}]   ;;  %s9983_s13 = inlined_call_operand.hbm [shape: f32[1,256], index: 13, kind: input, shape index: {}]   ;;  %s9984_s14 = inlined_call_operand.hbm [shape: bf16[256,256], index: 14, kind: input, shape index: {}]   ;;  %s9985_s15 = inlined_call_operand.hbm [shape: f32[1,256], index: 15, kind: input, shape index: {}]   ;;  %s9986_s16 = inlined_call_operand.hbm [shape: bf16[256,256], index: 16, kind: input, shape index: {}]   ;;  %s9987_s17 = inlined_call_operand.hbm [shape: bf16[256,256], index: 17, kind: input, shape index: {}]   ;;  %s9988_s18 = inlined_call_operand.hbm [shape: f32[1,256], index: 18, kind: input, shape index: {}]   ;;  %s9989_s19 = inlined_call_operand.hbm [shape: bf16[256,256], index: 19, kind: input, shape index: {}]   ;;  %s9990_s20 = inlined_call_operand.hbm [shape: f32[1,256], index: 20, kind: input, shape index: {}]   ;;  %s9991_s21 = inlined_call_operand.vmem [shape: bf16[256,128], index: 21, kind: input, shape index: {}]   ;;  %s9992_s22 = inlined_call_operand.hbm [shape: f32[1,128], index: 22, kind: input, shape index: {}]   ;;  %s9993_s23 = inlined_call_operand.vmem [shape: bf16[128,128], index: 23, kind: input, shape index: {}]   ;;  %s9994_s24 = inlined_call_operand.hbm [shape: f32[1,128], index: 24, kind: input, shape index: {}]   ;;  %s9995_s25 = inlined_call_operand.vmem [shape: f32[6,2,128], index: 25, kind: output, shape index: {0}]   ;;  %s9996_s26 = inlined_call_operand.vmem [shape: f32[2,256], index: 26, kind: output, shape index: {1}, may-alias: {3,26}]   ;;  %s9997_s27 = inlined_call_operand.vmem [shape: f32[2,256], index: 27, kind: output, shape index: {2}, may-alias: {4,27}]  }
   0x1   :  { %10027 = sst [smem:[#allocation44_spill]] %s9970_s0 }
   0x2   :  { %10028 = sst [smem:[#allocation45_spill]] %s9971_s1 }
   0x3   :  { %10029 = sst [smem:[#allocation46_spill]] %s9972_s2 }
   0x4   :  { %10030 = sst [smem:[#allocation47_spill]] %s9973_s3 }
   0x5   :  { %10031 = sst [smem:[#allocation48_spill]] %s9974_s4 }
   0x6   :  { %10032 = sst [smem:[#allocation49_spill]] %s9975_s5 }
   0x7   :  { %10033 = sst [smem:[#allocation50_spill]] %s9976_s6 }
   0x8   :  { %10034 = sst [smem:[#allocation51_spill]] %s9977_s7 }
   0x9   :  { %10035 = sst [smem:[#allocation52_spill]] %s9978_s8 }
   0xa   :  { %10036 = sst [smem:[#allocation53_spill]] %s9979_s9 }
   0xb   :  { %10037 = sst [smem:[#allocation54_spill]] %s9980_s10 }
   0xc   :  { %10038 = sst [smem:[#allocation55_spill]] %s9981_s11 }
   0xd   :  { %10039 = sst [smem:[#allocation56_spill]] %s9982_s12 }
   0xe   :  { %10040 = sst [smem:[#allocation57_spill]] %s9983_s13 }
   0xf   :  { %10041 = sst [smem:[#allocation58_spill]] %s9984_s14 }
  0x10   :  { %10042 = sst [smem:[#allocation59_spill]] %s9985_s15 }
  0x11   :  { %10043 = sst [smem:[#allocation60_spill]] %s9991_s21 }
  0x12   :  { %10044 = sst [smem:[#allocation61_spill]] %s9993_s23 }
  0x13   :  { %10045 = sst [smem:[#allocation62_spill]] %s9995_s25 }
  0x14   :  { %10046 = sst [smem:[#allocation63_spill]] %s9996_s26 }
  0x15   :  { %10047 = sst [smem:[#allocation64_spill]] %s9997_s27 }
  0x16   :  { %33 = vsyncpa [#allocation5], 0 }
  0x17   :  { %35 = vsyncpa [#allocation5 + $0x1], 0 }
  0x18   :  { %36 = vsyncpa [#allocation7], 0 }
  0x19   :  { %38 = vsyncpa [#allocation7 + $0x1], 0 }
  0x1a   :  { %39 = vsyncpa [#allocation10], 0 }
  0x1b   :  { %40 = vsyncpa [#allocation13], 0 }
  0x1c   :  { %41 = vsyncpa [#allocation16], 0 }
  0x1d   :  { %42 = vsyncpa [#allocation19], 0 }
  0x1e   :  { %43 = vsyncpa [#allocation22], 0 }
  0x1f   :  { %44 = vsyncpa [#allocation25], 0 }
  0x20   :  { %45 = vsyncpa [#allocation28], 0  ;;  %s9081_s7 = smov 0   ;;  %s9083_s4 = smov 0  }
  0x21   :  { %s9085_s8 = smov 0   ;;  %s9087_s30 = smov 0  }
  0x22 LB: > { %10048 = sst [smem:[#allocation40_spill]] %s8901_s7  ;;  %s8915_s9 = smov [#allocation8]   ;;  %s8913_s30 = sphi %s9087_s30, %s10116_s30   ;;  %s8909_s8 = sphi %s9085_s8, %s10115_s8   ;;  %s8905_s4 = sphi %s9083_s4, %s10114_s4   ;;  %s8901_s7 = sphi %s9081_s7, %s10113_s7  }
  0x23   : > { %10049 = sst [smem:[#allocation41_spill]] %s8905_s4  ;;  %s682_s5 = sshll.u32 %s8915_s9, 4  ;;  %s9108_s5 = int_to_ptr.vmem [resolvable:$true] %s682_s5 }
  0x24   : > { %s9102_s28 = sadd.s32 4294967295, %s8913_s30   ;;  %p6850_p0 = scmp.ge.s32.totalorder %s8913_s30, 1 }
  0x25   : > { %10050 = sst [smem:[#allocation42_spill]] %s9102_s28  ;;  %p10016_p1 = scmp.eq.s32.totalorder %s9102_s28, 0 }
  0x26   : > { %p664_p2 = scmp.lt.s32.totalorder %s8913_s30, 7  ;;  %s8916_s10 = smov [#allocation9]  }
  0x27   : > { %s695_s29 = sshll.u32 %s8916_s10, 4  ;;  %s8917_s6 = smov [#allocation12]   ;;  %s9122_s29 = int_to_ptr.vmem [resolvable:$true] %s695_s29 }
  0x28   : > { %p9110_p4 = pnand %p6850_p0, %p664_p2  ;;  %s724_s11 = sshll.u32 %s8917_s6, 4  ;;  %s9124_s11 = int_to_ptr.vmem [resolvable:$true] %s724_s11 }
  0x29   : > { %s10054_s9 = sld [smem:[#allocation49_spill]] }
  0x2a   : > { %s10051_s0 = scalar_select %p9110_p4, 1, 0 }
  0x2b   : > { %p7727_p5 = pneg %p9110_p4 }
  0x2c   : > { %10052 = sst [smem:[#allocation43_spill]] %s10051_s0 }
  0x2d   : > { %p9118_p6 = pnand %p7727_p5, %p10016_p1 }
  0x2f   : > { %s8363_s23 = scalar_lea.hbm %s10054_s9, 16384  ;;  %p9134_p8 = pneg %p9118_p6 }
  0x30   : > { %p8364_p7 = scmp.ne.s32.totalorder %s10054_s9, %s8363_s23  ;;  %p8370_p11 = scmp.lt.u32.totalorder %s8363_s23, %s10054_s9 }
  0x32   : > { %p8366_p9 = pnand %p9134_p8, %p8364_p7 }
  0x34   : > { %p8367_p10 = pneg %p8366_p9 }
  0x36   : > { %p8372_p12 = pnand %p8370_p11, %p8367_p10 }
  0x38   : > { %8375 = shalt.err (!%p8372_p12)
}
  0x39   : > { %s8376_s12 = scalar_lea.vmem %s9108_s5, 16384  ;;  %p8384_p5 = scmp.lt.s32.totalorder %s9108_s5, %s9108_s5 }
  0x3a   : > { %p8377_p13 = scmp.ne.s32.totalorder %s9108_s5, %s8376_s12  ;;  %p8385_p3 = scmp.lt.s32.totalorder %s8376_s12, %s8376_s12 }
  0x3c   : > { %p8379_p0 = pnand %p8377_p13, %p9134_p8  ;;  %p8386_p7 = por %p8385_p3, %p8384_p5 }
  0x3e   : > { %p8380_p2 = pneg %p8379_p0 }
  0x40   : > { %p8387_p9 = pnand %p8386_p7, %p8380_p2 }
  0x42   : > { %8390 = shalt.err (!%p8387_p9)
}
  0x43   : > { %s10011_s21 = smov 512   ;;  %s10012_s23 = smov 32  }
  0x44   : > { %7730 = dma.hbm_to_vmem [thread:$0]  (!%p9118_p6), %s10054_s9, 16384, %s9108_s5, [#allocation7], %s10011_s21, %s10011_s21, %s10012_s23  }
  0x45   : > { %s10056_s27 = sld [smem:[#allocation50_spill]] }
  0x4b   : > { %s8391_s12 = scalar_lea.hbm %s10056_s27, 16384 }
  0x4c   : > { %p8392_p3 = scmp.ne.s32.totalorder %s10056_s27, %s8391_s12  ;;  %p8398_p12 = scmp.lt.u32.totalorder %s8391_s12, %s10056_s27 }
  0x4e   : > { %p8394_p10 = pnand %p8392_p3, %p9134_p8 }
  0x50   : > { %p8395_p11 = pneg %p8394_p10 }
  0x52   : > { %p8400_p13 = pnand %p8398_p12, %p8395_p11 }
  0x54   : > { %8403 = shalt.err (!%p8400_p13)
}
  0x55   : > { %s8404_s5 = scalar_lea.vmem %s9122_s29, 16384  ;;  %p8412_p7 = scmp.lt.s32.totalorder %s9122_s29, %s9122_s29 }
  0x56   : > { %p8405_p0 = scmp.ne.s32.totalorder %s9122_s29, %s8404_s5  ;;  %p8413_p9 = scmp.lt.s32.totalorder %s8404_s5, %s8404_s5 }
  0x58   : > { %p8407_p2 = pnand %p8405_p0, %p9134_p8  ;;  %p8414_p3 = por %p8413_p9, %p8412_p7 }
  0x5a   : > { %p8408_p5 = pneg %p8407_p2 }
  0x5c   : > { %p8415_p10 = pnand %p8414_p3, %p8408_p5 }
  0x5e   : > { %8418 = shalt.err (!%p8415_p10)
}
  0x5f   : > { %7733 = dma.hbm_to_vmem [thread:$0]  (!%p9118_p6), %s10056_s27, 16384, %s9122_s29, [#allocation10], %s10011_s21, %s10011_s21, %s10012_s23  }
  0x60   : > { %s10057_s26 = sld [smem:[#allocation53_spill]] }
  0x66   : > { %s8419_s2 = scalar_lea.hbm %s10057_s26, 8192 }
  0x67   : > { %p8420_p11 = scmp.ne.s32.totalorder %s10057_s26, %s8419_s2  ;;  %p8426_p0 = scmp.lt.u32.totalorder %s8419_s2, %s10057_s26 }
  0x69   : > { %p8422_p12 = pnand %p8420_p11, %p9134_p8 }
  0x6b   : > { %p8423_p13 = pneg %p8422_p12 }
  0x6d   : > { %p8428_p2 = pnand %p8426_p0, %p8423_p13 }
  0x6f   : > { %8431 = shalt.err (!%p8428_p2)
}
  0x70   : > { %s8432_s29 = scalar_lea.vmem %s9124_s11, 8192  ;;  %p8440_p3 = scmp.lt.s32.totalorder %s9124_s11, %s9124_s11 }
  0x71   : > { %p8433_p5 = scmp.ne.s32.totalorder %s9124_s11, %s8432_s29  ;;  %p8441_p10 = scmp.lt.s32.totalorder %s8432_s29, %s8432_s29 }
  0x73   : > { %p8435_p7 = pnand %p8433_p5, %p9134_p8  ;;  %p8442_p11 = por %p8441_p10, %p8440_p3 }
  0x75   : > { %p8436_p9 = pneg %p8435_p7 }
  0x77   : > { %p8443_p12 = pnand %p8442_p11, %p8436_p9 }
  0x79   : > { %8446 = shalt.err (!%p8443_p12)
}
  0x7a   : > { %s10018_s25 = smov 256   ;;  %s10023_s7 = smov 16  }
  0x7b   : > { %7739 = dma.hbm_to_vmem [thread:$0]  (!%p9118_p6), %s10057_s26, 8192, %s9124_s11, [#allocation13], %s10018_s25, %s10018_s25, %s10023_s7  }
  0x7c   : > { %s8922_s2 = smov [#allocation15]   ;;  %s8923_s6 = smov [#allocation18]  }
  0x7d   : > { %s757_s3 = sshll.u32 %s8922_s2, 4  ;;  %s781_s12 = sshll.u32 %s8923_s6, 4  ;;  %s758_s3 = int_to_ptr.vmem [resolvable:$true] %s757_s3  ;;  %s782_s12 = int_to_ptr.vmem [resolvable:$true] %s781_s12 }
  0x7e   : > { %s10058_s13 = sld [smem:[#allocation57_spill]] }
  0x84   : > { %s8447_s21 = scalar_lea.hbm %s10058_s13, 32 }
  0x85   : > { %p8448_p13 = scmp.ne.s32.totalorder %s10058_s13, %s8447_s21  ;;  %p8454_p5 = scmp.lt.u32.totalorder %s8447_s21, %s10058_s13 }
  0x87   : > { %p8450_p0 = pnand %p8448_p13, %p9134_p8 }
  0x89   : > { %p8451_p2 = pneg %p8450_p0 }
  0x8b   : > { %p8456_p7 = pnand %p8454_p5, %p8451_p2 }
  0x8d   : > { %8459 = shalt.err (!%p8456_p7)
}
  0x8e   : > { %s8460_s11 = scalar_lea.vmem %s758_s3, 32  ;;  %p8468_p11 = scmp.lt.s32.totalorder %s758_s3, %s758_s3 }
  0x8f   : > { %p8461_p9 = scmp.ne.s32.totalorder %s758_s3, %s8460_s11  ;;  %p8469_p12 = scmp.lt.s32.totalorder %s8460_s11, %s8460_s11 }
  0x91   : > { %p8463_p3 = pnand %p8461_p9, %p9134_p8  ;;  %p8470_p1 = por %p8469_p12, %p8468_p11 }
  0x93   : > { %p8464_p10 = pneg %p8463_p3 }
  0x95   : > { %p8471_p4 = pnand %p8470_p1, %p8464_p10 }
  0x97   : > { %8474 = shalt.err (!%p8471_p4)
}
  0x98   : > { %7745 = dma.hbm_to_vmem [thread:$0]  (!%p9118_p6), %s10058_s13, 32, %s758_s3, [#allocation16]  }
  0x99   : > { %s10059_s15 = sld [smem:[#allocation59_spill]] }
  0x9f   : > { %s8475_s21 = scalar_lea.hbm %s10059_s15, 32 }
  0xa0   : > { %p8476_p13 = scmp.ne.s32.totalorder %s10059_s15, %s8475_s21  ;;  %p8482_p4 = scmp.lt.u32.totalorder %s8475_s21, %s10059_s15 }
  0xa2   : > { %p8478_p0 = pnand %p8476_p13, %p9134_p8 }
  0xa4   : > { %p8479_p1 = pneg %p8478_p0 }
  0xa6   : > { %p8484_p2 = pnand %p8482_p4, %p8479_p1 }
  0xa8   : > { %8487 = shalt.err (!%p8484_p2)
}
  0xa9   : > { %s8488_s5 = scalar_lea.vmem %s782_s12, 32  ;;  %p8496_p3 = scmp.lt.s32.totalorder %s782_s12, %s782_s12 }
  0xaa   : > { %p8489_p5 = scmp.ne.s32.totalorder %s782_s12, %s8488_s5  ;;  %p8497_p10 = scmp.lt.s32.totalorder %s8488_s5, %s8488_s5 }
  0xac   : > { %p8491_p7 = pnand %p8489_p5, %p9134_p8  ;;  %p8498_p11 = por %p8497_p10, %p8496_p3 }
  0xae   : > { %p8492_p9 = pneg %p8491_p7 }
  0xb0   : > { %p8499_p12 = pnand %p8498_p11, %p8492_p9 }
  0xb2   : > { %8502 = shalt.err (!%p8499_p12)
}
  0xb3   : > { %7751 = dma.hbm_to_vmem [thread:$0]  (!%p9118_p6), %s10059_s15, 32, %s782_s12, [#allocation19]  }
  0xb4   : > { %s8924_s11 = smov [#allocation21]   ;;  %s8925_s23 = smov [#allocation24]  }
  0xb5   : > { %s804_s9 = sshll.u32 %s8924_s11, 4  ;;  %s828_s27 = sshll.u32 %s8925_s23, 4  ;;  %s805_s9 = int_to_ptr.vmem [resolvable:$true] %s804_s9  ;;  %s829_s27 = int_to_ptr.vmem [resolvable:$true] %s828_s27 }
  0xb6   : > { %s8503_s28 = scalar_lea.hbm %s9987_s17, 4096 }
  0xb7   : > { %p8504_p13 = scmp.ne.s32.totalorder %s9987_s17, %s8503_s28  ;;  %p8510_p4 = scmp.lt.u32.totalorder %s8503_s28, %s9987_s17 }
  0xb9   : > { %p8506_p0 = pnand %p8504_p13, %p9134_p8 }
  0xbb   : > { %p8507_p1 = pneg %p8506_p0 }
  0xbd   : > { %p8512_p2 = pnand %p8510_p4, %p8507_p1 }
  0xbf   : > { %8515 = shalt.err (!%p8512_p2)
}
  0xc0   : > { %s8516_s12 = scalar_lea.vmem %s805_s9, 4096  ;;  %p8524_p3 = scmp.lt.s32.totalorder %s805_s9, %s805_s9 }
  0xc1   : > { %p8517_p5 = scmp.ne.s32.totalorder %s805_s9, %s8516_s12  ;;  %p8525_p10 = scmp.lt.s32.totalorder %s8516_s12, %s8516_s12 }
  0xc3   : > { %p8519_p7 = pnand %p8517_p5, %p9134_p8  ;;  %p8526_p11 = por %p8525_p10, %p8524_p3 }
  0xc5   : > { %p8520_p9 = pneg %p8519_p7 }
  0xc7   : > { %p8527_p12 = pnand %p8526_p11, %p8520_p9 }
  0xc9   : > { %8530 = shalt.err (!%p8527_p12)
}
  0xca   : > { %s10019_s3 = smov 128   ;;  %s10021_s29 = smov 8  }
  0xcb   : > { %7757 = dma.hbm_to_vmem [thread:$0]  (!%p9118_p6), %s9987_s17, 4096, %s805_s9, [#allocation22], %s10019_s3, %s10019_s3, %s10021_s29  }
  0xcc   : > { %s8531_s28 = scalar_lea.hbm %s9989_s19, 4096 }
  0xcd   : > { %p8532_p13 = scmp.ne.s32.totalorder %s9989_s19, %s8531_s28  ;;  %p8538_p4 = scmp.lt.u32.totalorder %s8531_s28, %s9989_s19 }
  0xcf   : > { %p8534_p0 = pnand %p8532_p13, %p9134_p8 }
  0xd1   : > { %p8535_p1 = pneg %p8534_p0 }
  0xd3   : > { %p8540_p2 = pnand %p8538_p4, %p8535_p1 }
  0xd5   : > { %8543 = shalt.err (!%p8540_p2)
}
  0xd6   : > { %s8544_s12 = scalar_lea.vmem %s829_s27, 4096  ;;  %p8552_p3 = scmp.lt.s32.totalorder %s829_s27, %s829_s27 }
  0xd7   : > { %p8545_p5 = scmp.ne.s32.totalorder %s829_s27, %s8544_s12  ;;  %p8553_p10 = scmp.lt.s32.totalorder %s8544_s12, %s8544_s12 }
  0xd9   : > { %p8547_p7 = pnand %p8545_p5, %p9134_p8  ;;  %p8554_p11 = por %p8553_p10, %p8552_p3 }
  0xdb   : > { %p8548_p9 = pneg %p8547_p7 }
  0xdd   : > { %p8555_p12 = pnand %p8554_p11, %p8548_p9 }
  0xdf   : > { %8558 = shalt.err (!%p8555_p12)
}
  0xe0   : > { %7763 = dma.hbm_to_vmem [thread:$0]  (!%p9118_p6), %s9989_s19, 4096, %s829_s27, [#allocation25], %s10019_s3, %s10019_s3, %s10021_s29  }
  0xe1   : > { %s8928_s23 = smov [#allocation27]   ;;  %s8929_s21 = smov [#allocation11]  }
  0xe2   : > { %s856_s4 = sshll.u32 %s8928_s23, 4  ;;  %s711_s28 = sshll.u32 %s8929_s21, 4  ;;  %s857_s4 = int_to_ptr.vmem [resolvable:$true] %s856_s4  ;;  %s712_s28 = int_to_ptr.vmem [resolvable:$true] %s711_s28 }
  0xe3   : > { %s8559_s6 = scalar_lea.hbm %s9992_s22, 16 }
  0xe4   : > { %p8560_p13 = scmp.ne.s32.totalorder %s9992_s22, %s8559_s6  ;;  %p8566_p4 = scmp.lt.u32.totalorder %s8559_s6, %s9992_s22 }
  0xe6   : > { %p8562_p0 = pnand %p8560_p13, %p9134_p8 }
  0xe8   : > { %p8563_p1 = pneg %p8562_p0 }
  0xea   : > { %p8568_p2 = pnand %p8566_p4, %p8563_p1 }
  0xec   : > { %8571 = shalt.err (!%p8568_p2)
}
  0xed   : > { %s8572_s27 = scalar_lea.vmem %s857_s4, 16  ;;  %s8579_s11 = scalar_lea.vmem %s857_s4, 32 }
  0xee   : > { %p8573_p5 = scmp.ne.s32.totalorder %s857_s4, %s8572_s27  ;;  %p8580_p3 = scmp.lt.s32.totalorder %s857_s4, %s857_s4 }
  0xef   : > { %p8581_p10 = scmp.lt.s32.totalorder %s8579_s11, %s8572_s27 }
  0xf0   : > { %p8575_p7 = pnand %p8573_p5, %p9134_p8 }
  0xf1   : > { %p8582_p11 = por %p8581_p10, %p8580_p3 }
  0xf2   : > { %p8576_p9 = pneg %p8575_p7 }
  0xf4   : > { %p8583_p12 = pnand %p8582_p11, %p8576_p9 }
  0xf6   : > { %8586 = shalt.err (!%p8583_p12)
}
  0xf7   : > { %7769 = dma.hbm_to_vmem [thread:$0]  (!%p9118_p6), %s9992_s22, 16, %s857_s4, [#allocation28]  }
  0xf8   : > { %s10060_s2 = sld [smem:[#allocation52_spill]] }
  0xfe   : > { %s8587_s6 = scalar_lea.hbm %s10060_s2, 16384 }
  0xff   : > { %p8588_p13 = scmp.ne.s32.totalorder %s10060_s2, %s8587_s6  ;;  %p8594_p4 = scmp.lt.u32.totalorder %s8587_s6, %s10060_s2 }
 0x101   : > { %p8590_p0 = pnand %p8588_p13, %p9134_p8 }
 0x103   : > { %p8591_p1 = pneg %p8590_p0 }
 0x105   : > { %p8596_p2 = pnand %p8594_p4, %p8591_p1 }
 0x107   : > { %8599 = shalt.err (!%p8596_p2)
}
 0x108   : > { %s8600_s11 = scalar_lea.vmem %s712_s28, 16384  ;;  %p8608_p3 = scmp.lt.s32.totalorder %s712_s28, %s712_s28 }
 0x109   : > { %p8601_p5 = scmp.ne.s32.totalorder %s712_s28, %s8600_s11  ;;  %p8609_p10 = scmp.lt.s32.totalorder %s8600_s11, %s8600_s11 }
 0x10b   : > { %p8603_p7 = pnand %p8601_p5, %p9134_p8  ;;  %p8610_p11 = por %p8609_p10, %p8608_p3 }
 0x10d   : > { %p8604_p9 = pneg %p8603_p7 }
 0x10f   : > { %p8611_p12 = pnand %p8610_p11, %p8604_p9 }
 0x111   : > { %8614 = shalt.err (!%p8611_p12)
}
 0x112   : > { %s10061_s4 = smov 32   ;;  %s10062_s23 = smov 512  }
 0x113   : > { %7736 = dma.hbm_to_vmem [thread:$0]  (!%p9118_p6), %s10060_s2, 16384, %s712_s28, [#allocation10], %s10062_s23, %s10062_s23, %s10061_s4  }
 0x114   : > { %s8930_s0 = smov [#allocation14]   ;;  %s8931_s5 = smov [#allocation17]  }
 0x115   : > { %s737_s6 = sshll.u32 %s8930_s0, 4  ;;  %s767_s12 = sshll.u32 %s8931_s5, 4  ;;  %s738_s6 = int_to_ptr.vmem [resolvable:$true] %s737_s6  ;;  %s768_s12 = int_to_ptr.vmem [resolvable:$true] %s767_s12 }
 0x116   : > { %s10063_s11 = sld [smem:[#allocation54_spill]] }
 0x11c   : > { %s8615_s3 = scalar_lea.hbm %s10063_s11, 8192 }
 0x11d   : > { %p8616_p13 = scmp.ne.s32.totalorder %s10063_s11, %s8615_s3  ;;  %p8622_p4 = scmp.lt.u32.totalorder %s8615_s3, %s10063_s11 }
 0x11f   : > { %p8618_p0 = pnand %p8616_p13, %p9134_p8 }
 0x121   : > { %p8619_p1 = pneg %p8618_p0 }
 0x123   : > { %p8624_p2 = pnand %p8622_p4, %p8619_p1 }
 0x125   : > { %8627 = shalt.err (!%p8624_p2)
}
 0x126   : > { %s8628_s28 = scalar_lea.vmem %s738_s6, 8192  ;;  %p8636_p3 = scmp.lt.s32.totalorder %s738_s6, %s738_s6 }
 0x127   : > { %p8629_p5 = scmp.ne.s32.totalorder %s738_s6, %s8628_s28  ;;  %p8637_p10 = scmp.lt.s32.totalorder %s8628_s28, %s8628_s28 }
 0x129   : > { %p8631_p7 = pnand %p8629_p5, %p9134_p8  ;;  %p8638_p11 = por %p8637_p10, %p8636_p3 }
 0x12b   : > { %p8632_p9 = pneg %p8631_p7 }
 0x12d   : > { %p8639_p12 = pnand %p8638_p11, %p8632_p9 }
 0x12f   : > { %8642 = shalt.err (!%p8639_p12)
}
 0x130   : > { %s10064_s7 = smov 16   ;;  %s10065_s29 = smov 256  }
 0x131   : > { %7742 = dma.hbm_to_vmem [thread:$0]  (!%p9118_p6), %s10063_s11, 8192, %s738_s6, [#allocation13], %s10065_s29, %s10065_s29, %s10064_s7  }
 0x132   : > { %s10066_s14 = sld [smem:[#allocation58_spill]] }
 0x138   : > { %s8643_s25 = scalar_lea.hbm %s10066_s14, 4096 }
 0x139   : > { %p8644_p13 = scmp.ne.s32.totalorder %s10066_s14, %s8643_s25  ;;  %p8650_p4 = scmp.lt.u32.totalorder %s8643_s25, %s10066_s14 }
 0x13b   : > { %p8646_p0 = pnand %p8644_p13, %p9134_p8 }
 0x13d   : > { %p8647_p1 = pneg %p8646_p0 }
 0x13f   : > { %p8652_p2 = pnand %p8650_p4, %p8647_p1 }
 0x141   : > { %8655 = shalt.err (!%p8652_p2)
}
 0x142   : > { %s8656_s21 = scalar_lea.vmem %s768_s12, 4096  ;;  %p8664_p3 = scmp.lt.s32.totalorder %s768_s12, %s768_s12 }
 0x143   : > { %p8657_p5 = scmp.ne.s32.totalorder %s768_s12, %s8656_s21  ;;  %p8665_p10 = scmp.lt.s32.totalorder %s8656_s21, %s8656_s21 }
 0x145   : > { %p8659_p7 = pnand %p8657_p5, %p9134_p8  ;;  %p8666_p11 = por %p8665_p10, %p8664_p3 }
 0x147   : > { %p8660_p9 = pneg %p8659_p7 }
 0x149   : > { %p8667_p12 = pnand %p8666_p11, %p8660_p9 }
 0x14b   : > { %8670 = shalt.err (!%p8667_p12)
}
 0x14c   : > { %s10067_s6 = smov 8   ;;  %s10068_s28 = smov 128  }
 0x14d   : > { %7748 = dma.hbm_to_vmem [thread:$0]  (!%p9118_p6), %s10066_s14, 4096, %s768_s12, [#allocation16], %s10068_s28, %s10068_s28, %s10067_s6  }
 0x14e   : > { %s8932_s13 = smov [#allocation20]   ;;  %s8933_s4 = smov [#allocation23]  }
 0x14f   : > { %s791_s3 = sshll.u32 %s8932_s13, 4  ;;  %s818_s23 = sshll.u32 %s8933_s4, 4  ;;  %s792_s3 = int_to_ptr.vmem [resolvable:$true] %s791_s3  ;;  %s819_s23 = int_to_ptr.vmem [resolvable:$true] %s818_s23 }
 0x150   : > { %s8671_s5 = scalar_lea.hbm %s9986_s16, 4096 }
 0x151   : > { %p8672_p13 = scmp.ne.s32.totalorder %s9986_s16, %s8671_s5  ;;  %p8678_p4 = scmp.lt.u32.totalorder %s8671_s5, %s9986_s16 }
 0x153   : > { %p8674_p0 = pnand %p8672_p13, %p9134_p8 }
 0x155   : > { %p8675_p1 = pneg %p8674_p0 }
 0x157   : > { %p8680_p2 = pnand %p8678_p4, %p8675_p1 }
 0x159   : > { %8683 = shalt.err (!%p8680_p2)
}
 0x15a   : > { %s8684_s12 = scalar_lea.vmem %s792_s3, 4096  ;;  %p8692_p3 = scmp.lt.s32.totalorder %s792_s3, %s792_s3 }
 0x15b   : > { %p8685_p5 = scmp.ne.s32.totalorder %s792_s3, %s8684_s12  ;;  %p8693_p10 = scmp.lt.s32.totalorder %s8684_s12, %s8684_s12 }
 0x15d   : > { %p8687_p7 = pnand %p8685_p5, %p9134_p8  ;;  %p8694_p11 = por %p8693_p10, %p8692_p3 }
 0x15f   : > { %p8688_p9 = pneg %p8687_p7 }
 0x161   : > { %p8695_p12 = pnand %p8694_p11, %p8688_p9 }
 0x163   : > { %8698 = shalt.err (!%p8695_p12)
}
 0x164   : > { %7754 = dma.hbm_to_vmem [thread:$0]  (!%p9118_p6), %s9986_s16, 4096, %s792_s3, [#allocation19], %s10068_s28, %s10068_s28, %s10067_s6  }
 0x165   : > { %s8699_s0 = scalar_lea.hbm %s9988_s18, 32 }
 0x166   : > { %p8700_p13 = scmp.ne.s32.totalorder %s9988_s18, %s8699_s0  ;;  %p8706_p4 = scmp.lt.u32.totalorder %s8699_s0, %s9988_s18 }
 0x168   : > { %p8702_p0 = pnand %p8700_p13, %p9134_p8 }
 0x16a   : > { %p8703_p1 = pneg %p8702_p0 }
 0x16c   : > { %p8708_p2 = pnand %p8706_p4, %p8703_p1 }
 0x16e   : > { %8711 = shalt.err (!%p8708_p2)
}
 0x16f   : > { %s8712_s7 = scalar_lea.vmem %s819_s23, 32  ;;  %p8720_p3 = scmp.lt.s32.totalorder %s819_s23, %s819_s23 }
 0x170   : > { %p8713_p5 = scmp.ne.s32.totalorder %s819_s23, %s8712_s7  ;;  %p8721_p10 = scmp.lt.s32.totalorder %s8712_s7, %s8712_s7 }
 0x172   : > { %p8715_p7 = pnand %p8713_p5, %p9134_p8  ;;  %p8722_p11 = por %p8721_p10, %p8720_p3 }
 0x174   : > { %p8716_p9 = pneg %p8715_p7 }
 0x176   : > { %p8723_p12 = pnand %p8722_p11, %p8716_p9 }
 0x178   : > { %8726 = shalt.err (!%p8723_p12)
}
 0x179   : > { %7760 = dma.hbm_to_vmem [thread:$0]  (!%p9118_p6), %s9988_s18, 32, %s819_s23, [#allocation22]  }
 0x17a   : > { %s8934_s3 = smov [#allocation26]   ;;  %s8935_s29 = smov [#allocation29]  }
 0x17b   : > { %s842_s12 = sshll.u32 %s8934_s3, 4  ;;  %s870_s13 = sshll.u32 %s8935_s29, 4  ;;  %s843_s12 = int_to_ptr.vmem [resolvable:$true] %s842_s12  ;;  %s871_s13 = int_to_ptr.vmem [resolvable:$true] %s870_s13 }
 0x17c   : > { %s8727_s0 = scalar_lea.hbm %s9990_s20, 32 }
 0x17d   : > { %p8728_p13 = scmp.ne.s32.totalorder %s9990_s20, %s8727_s0  ;;  %p8734_p4 = scmp.lt.u32.totalorder %s8727_s0, %s9990_s20 }
 0x17f   : > { %p8730_p0 = pnand %p8728_p13, %p9134_p8 }
 0x181   : > { %p8731_p1 = pneg %p8730_p0 }
 0x183   : > { %p8736_p2 = pnand %p8734_p4, %p8731_p1 }
 0x185   : > { %8739 = shalt.err (!%p8736_p2)
}
 0x186   : > { %s8740_s23 = scalar_lea.vmem %s843_s12, 32  ;;  %p8748_p3 = scmp.lt.s32.totalorder %s843_s12, %s843_s12 }
 0x187   : > { %p8741_p5 = scmp.ne.s32.totalorder %s843_s12, %s8740_s23  ;;  %p8749_p10 = scmp.lt.s32.totalorder %s8740_s23, %s8740_s23 }
 0x189   : > { %p8743_p7 = pnand %p8741_p5, %p9134_p8  ;;  %p8750_p11 = por %p8749_p10, %p8748_p3 }
 0x18b   : > { %p8744_p9 = pneg %p8743_p7 }
 0x18d   : > { %p8751_p12 = pnand %p8750_p11, %p8744_p9 }
 0x18f   : > { %8754 = shalt.err (!%p8751_p12)
}
 0x190   : > { %7766 = dma.hbm_to_vmem [thread:$0]  (!%p9118_p6), %s9990_s20, 32, %s843_s12, [#allocation25]  }
 0x191   : > { %s8755_s29 = scalar_lea.hbm %s9994_s24, 16 }
 0x192   : > { %p8756_p13 = scmp.ne.s32.totalorder %s9994_s24, %s8755_s29  ;;  %p8762_p4 = scmp.lt.u32.totalorder %s8755_s29, %s9994_s24 }
 0x194   : > { %p8758_p0 = pnand %p8756_p13, %p9134_p8 }
 0x196   : > { %p8759_p1 = pneg %p8758_p0 }
 0x198   : > { %p8764_p2 = pnand %p8762_p4, %p8759_p1 }
 0x19a   : > { %8767 = shalt.err (!%p8764_p2)
}
 0x19b   : > { %s8768_s9 = scalar_lea.vmem %s871_s13, 16  ;;  %s8775_s12 = scalar_lea.vmem %s871_s13, 32 }
 0x19c   : > { %p8769_p5 = scmp.ne.s32.totalorder %s871_s13, %s8768_s9  ;;  %p8776_p3 = scmp.lt.s32.totalorder %s871_s13, %s871_s13 }
 0x19d   : > { %p8777_p10 = scmp.lt.s32.totalorder %s8775_s12, %s8768_s9 }
 0x19e   : > { %p8771_p7 = pnand %p8769_p5, %p9134_p8 }
 0x19f   : > { %p8778_p11 = por %p8777_p10, %p8776_p3 }
 0x1a0   : > { %p8772_p9 = pneg %p8771_p7 }
 0x1a2   : > { %p8779_p12 = pnand %p8778_p11, %p8772_p9 }
 0x1a4   : > { %8782 = shalt.err (!%p8779_p12)
}
 0x1a5   : > { %s10069_s23 = sld [smem:[#allocation41_spill]]  ;;  %s10070_s10 = sld [smem:[#allocation40_spill]] }
 0x1a6   : > { %s10071_s7 = sld [smem:[#allocation42_spill]]  ;;  %s9445_s6 = sadd.s32 1, %s8913_s30  }
 0x1a7   : > { %7772 = dma.hbm_to_vmem [thread:$0]  (!%p9118_p6), %s9994_s24, 16, %s871_s13, [#allocation28]  }
 0x1a8   : > { %s81_s1 = ssub.s32 %s8913_s30, %s9445_s6  ;;  %s84_s28 = sadd.s32 1, %s8909_s8 }
 0x1a9   : > { %p82_p8 = scmp.eq.s32.totalorder %s81_s1, 0  ;;  %p92_p0 = scmp.eq.s32.totalorder %s8913_s30, 0 }
 0x1aa   : > { %p7795_p7 = scmp.lt.s32.totalorder %s8913_s30, 6  ;;  %s889_s13 = sand.u32 1, %s8909_s8  }
 0x1ab   : > { %p91_p13 = scmp.ne.s32.totalorder %s8909_s8, %s10069_s23  ;;  %p97_p1 = scmp.ne.s32.totalorder %s10069_s23, %s10070_s10 }
 0x1ac   : > { %s9456_s3 = scalar_select %p82_p8, %s8909_s8, %s84_s28  }
 0x1ad   : > { %p93_p4 = por %p92_p0, %p91_p13  ;;  %p10072_p2 = scmp.eq.s32.totalorder %s10071_s7, 0 }
 0x1ae   : > { %s9466_s4 = sshll.u32 %s889_s13, 2  ;;  %s7609_s25 = sshll.u32 %s8913_s30, 6 }
 0x1af   : > { %p9460_p5 = por %p10072_p2, %p97_p1  ;;  %s10074_s9 = sld [smem:[#allocation45_spill]] }
 0x1b0   : > { %s893_s27 = scalar_lea.vmem [#allocation4], %s9466_s4  ;;  %p9477_p6 = pnand %p7795_p7, %p93_p4 }
 0x1b1   : > { %s10073_s29 = scalar_select %p9460_p5, 1, 0 }
 0x1b2   : > { %s901_s21 = sshll.u32 %s893_s27, 4  ;;  %s10076_s1 = sld [smem:[#allocation46_spill]]  ;;  %s9475_s21 = int_to_ptr.vmem [resolvable:$true] %s901_s21 }
 0x1b3   : > { %s908_s0 = sand.u32 1, %s8913_s30   ;;  %s890_s5 = scalar_lea.sflag [#allocation5], %s889_s13 }
 0x1b4   : > { %p8785_p3 = pneg %p9477_p6 }
 0x1b5   : > { %s9472_s12 = scalar_lea.hbm %s10074_s9, %s7609_s25  ;;  %s8788_s14 = scalar_lea.hbm %s10074_s9, 384 }
 0x1b6   : > { %s8783_s2 = scalar_lea.hbm %s9472_s12, 64  ;;  %p8789_p12 = scmp.lt.u32.totalorder %s9472_s12, %s10074_s9 }
 0x1b7   : > { %p8784_p9 = scmp.ne.s32.totalorder %s9472_s12, %s8783_s2  ;;  %p8790_p8 = scmp.lt.u32.totalorder %s8788_s14, %s8783_s2 }
 0x1b8   : > { %s9484_s28 = scalar_lea.hbm %s10076_s1, %s7609_s25  ;;  %p8792_p0 = scmp.lt.u32.totalorder %s8783_s2, %s9472_s12 }
 0x1b9   : > { %p8786_p10 = pnand %p8785_p3, %p8784_p9  ;;  %p8791_p13 = por %p8790_p8, %p8789_p12 }
 0x1bb   : > { %p8787_p11 = pneg %p8786_p10  ;;  %p8793_p1 = por %p8792_p0, %p8791_p13 }
 0x1bd   : > { %p8794_p4 = pnand %p8793_p1, %p8787_p11 }
 0x1bf   : > { %8797 = shalt.err (!%p8794_p4)
}
 0x1c0   : > { %s8798_s13 = scalar_lea.vmem %s9475_s21, 64  ;;  %s8936_s11 = smov [#allocation4]  }
 0x1c1   : > { %p8799_p2 = scmp.ne.s32.totalorder %s9475_s21, %s8798_s13  ;;  %s8803_s25 = sshll.u32 %s8936_s11, 4  ;;  %s8804_s25 = int_to_ptr.vmem [resolvable:$false] %s8803_s25 }
 0x1c2   : > { %s8805_s15 = scalar_lea.vmem %s8804_s25, 128  ;;  %p8806_p10 = scmp.lt.s32.totalorder %s9475_s21, %s8804_s25 }
 0x1c3   : > { %p8801_p7 = pnand %p8799_p2, %p8785_p3  ;;  %p8807_p12 = scmp.lt.s32.totalorder %s8805_s15, %s8798_s13 }
 0x1c5   : > { %p8802_p9 = pneg %p8801_p7  ;;  %p8808_p8 = por %p8807_p12, %p8806_p10 }
 0x1c7   : > { %p8809_p13 = pnand %p8808_p8, %p8802_p9 }
 0x1c9   : > { %8812 = shalt.err (!%p8809_p13)
}
 0x1ca   : > { %7776 = dma.hbm_to_vmem [thread:$0]  (!%p9477_p6), %s9472_s12, 64, %s9475_s21, %s890_s5  }
 0x1cb   : > { %s912_s14 = scalar_lea.vmem [#allocation6], %s9466_s4  ;;  %s909_s7 = scalar_lea.sflag [#allocation7], %s908_s0 }
 0x1cc   : > { %s920_s2 = sshll.u32 %s912_s14, 4  ;;  %s8813_s27 = scalar_lea.hbm %s9484_s28, 64  ;;  %s921_s2 = int_to_ptr.vmem [resolvable:$true] %s920_s2 }
 0x1cd   : > { %p8814_p11 = scmp.ne.s32.totalorder %s9484_s28, %s8813_s27  ;;  %s8818_s11 = scalar_lea.hbm %s10076_s1, 384 }
 0x1ce   : > { %p8819_p4 = scmp.lt.u32.totalorder %s9484_s28, %s10076_s1  ;;  %p8820_p2 = scmp.lt.u32.totalorder %s8818_s11, %s8813_s27 }
 0x1cf   : > { %p8816_p0 = pnand %p8814_p11, %p8785_p3  ;;  %p8822_p9 = scmp.lt.u32.totalorder %s8813_s27, %s9484_s28 }
 0x1d0   : > { %p8821_p7 = por %p8820_p2, %p8819_p4 }
 0x1d1   : > { %p8817_p1 = pneg %p8816_p0 }
 0x1d2   : > { %p8823_p10 = por %p8822_p9, %p8821_p7 }
 0x1d4   : > { %p8824_p12 = pnand %p8823_p10, %p8817_p1 }
 0x1d6   : > { %8827 = shalt.err (!%p8824_p12)
}
 0x1d7   : > { %s8828_s30 = scalar_lea.vmem %s921_s2, 64  ;;  %s8937_s4 = smov [#allocation6]  }
 0x1d8   : > { %p8829_p8 = scmp.ne.s32.totalorder %s921_s2, %s8828_s30  ;;  %s8833_s12 = sshll.u32 %s8937_s4, 4  ;;  %s8834_s12 = int_to_ptr.vmem [resolvable:$false] %s8833_s12 }
 0x1d9   : > { %s8835_s21 = scalar_lea.vmem %s8834_s12, 128  ;;  %p8836_p0 = scmp.lt.s32.totalorder %s921_s2, %s8834_s12 }
 0x1da   : > { %p8831_p13 = pnand %p8829_p8, %p8785_p3  ;;  %p8837_p5 = scmp.lt.s32.totalorder %s8835_s21, %s8828_s30 }
 0x1dc   : > { %p8832_p11 = pneg %p8831_p13  ;;  %p8838_p2 = por %p8837_p5, %p8836_p0 }
 0x1de   : > { %p8839_p4 = pnand %p8838_p2, %p8832_p11 }
 0x1e0   : > { %8842 = shalt.err (!%p8839_p4)
}
 0x1e1   : > { %7779 = dma.hbm_to_vmem [thread:$0]  (!%p9477_p6), %s9484_s28, 64, %s921_s2, %s909_s7  }
 0x1e2   : > { %s10077_s0 = sld [smem:[#allocation43_spill]] }
 0x1e8   : > { %p10078_p1 = scmp.ne.s32.totalorder %s10077_s0, 0 }
 0x1e9   : > { %s10079_s5 = sld [smem:[#allocation41_spill]] (!%p10078_p1)  ;;  %p10080_p3 = scmp.ne.s32.totalorder (!%p10078_p1), %s10073_s29, 0 }
 0x1ea   : > { %929 = sbr.rel (%p10078_p1) target bundleno = 2582 (0xa16), region = 120 }
 0x1ef   : > { %s931_s14 = sand.u32 (!%p10078_p1), 1, %s10079_s5  }
 0x1f0   : > { %s9537_s27 = sshll.u32 (!%p10078_p1), %s931_s14, 2  ;;  %s932_s10 = scalar_lea.sflag (!%p10078_p1), [#allocation5], %s931_s14 }
 0x1f1   : > { %8860 = dma.done.wait (%p10080_p3), %s932_s10, 64  }
 0x1f2   : > { %8862 = vsyncadd (%p10080_p3), %s932_s10, 4294967232  ;;  %s10081_s11 = sld [smem:[#allocation42_spill]] }
 0x1f8   : > { %s940_s23 = sand.u32 1, %s10081_s11  }
 0x1f9   : > { %s941_s28 = scalar_lea.sflag [#allocation7], %s940_s23 }
 0x1fa   : > { %8864 = dma.done.wait (%p10080_p3), %s941_s28, 64  }
 0x1fb   : > { %8866 = vsyncadd (%p10080_p3), %s941_s28, 4294967232  ;;  %p10082_p5 = scmp.eq.s32.totalorder %s10081_s11, 0 }
 0x1fd   : > { %8868 = dma.done.wait (%p10082_p5), [#allocation7], 16384   ;;  %p10083_p6 = pmov %p10082_p5 }
 0x1fe   : > { %p10084_p7 = pmov %p10082_p5 }
 0x1ff   : > { %8870 = vsyncadd (%p10083_p6), [#allocation7], 4294950912 }
 0x200   : > { %8872 = dma.done.wait (%p10084_p7), [#allocation10], 32768   ;;  %p10085_p9 = pmov %p10082_p5 }
 0x201   : > { %p10086_p10 = pmov %p10082_p5 }
 0x202   : > { %8874 = vsyncadd (%p10085_p9), [#allocation10], 4294934528 }
 0x203   : > { %8876 = dma.done.wait (%p10086_p10), [#allocation13], 16384   ;;  %p10087_p12 = pmov %p10082_p5 }
 0x204   : > { %p10088_p8 = pmov %p10082_p5 }
 0x205   : > { %8878 = vsyncadd (%p10087_p12), [#allocation13], 4294950912 }
 0x206   : > { %8880 = dma.done.wait (%p10088_p8), [#allocation16], 4128   ;;  %p10089_p13 = pmov %p10082_p5 }
 0x207   : > { %p10090_p11 = pmov %p10082_p5 }
 0x208   : > { %8882 = vsyncadd (%p10089_p13), [#allocation16], 4294963168 }
 0x209   : > { %8884 = dma.done.wait (%p10090_p11), [#allocation19], 4128   ;;  %p10091_p0 = pmov %p10082_p5 }
 0x20b   : > { %8886 = vsyncadd (%p10091_p0), [#allocation19], 4294963168  ;;  %p10092_p2 = pmov %p10091_p0 }
 0x20c   : > { %p10093_p4 = pmov %p10091_p0 }
 0x20d   : > { %8888 = dma.done.wait (%p10092_p2), [#allocation22], 4128  }
 0x20e   : > { %8890 = vsyncadd (%p10093_p4), [#allocation22], 4294963168  ;;  %p10094_p1 = pmov %p10091_p0 }
 0x20f   : > { %p10095_p3 = pmov %p10091_p0 }
 0x210   : > { %8892 = dma.done.wait (%p10094_p1), [#allocation25], 4128  }
 0x211   : > { %8894 = vsyncadd (%p10095_p3), [#allocation25], 4294963168  ;;  %p10096_p5 = pmov %p10091_p0 }
 0x212   : > { %p10097_p6 = pmov %p10091_p0 }
 0x213   : > { %8896 = dma.done.wait (%p10096_p5), [#allocation28], 32  }
 0x214   : > { %8898 = vsyncadd (%p10097_p6), [#allocation28], 4294967264  ;;  %p1084_p7 = scmp.lt.s32.totalorder %s10081_s11, 5  ;;  %s10098_s4 = sld [smem:[#allocation44_spill]] }
 0x215   : > { %s10099_s5 = sld [smem:[#allocation62_spill]]  ;;  %p10100_p9 = scmp.ne.s32.totalorder %s10081_s11, 0 }
 0x216   : > { %s1085_s29 = scalar_select %p1084_p7, %s10081_s11, 5 }
 0x217   : > { %1097 = sbr.rel (%p10100_p9) target bundleno = 545 (0x221), region = 192  ;;  %s10101_s28 = sld [smem:[#allocation47_spill]] (!%p10100_p9) }
 0x218   : > { %s7611_s7 = sshll.u32 %s1085_s29, 2  ;;  %s6893_s25 = sshll.u32 %s1085_s29, 1 }
 0x219   : > { %s10102_s29 = sld [smem:[#allocation48_spill]] (!%p10100_p9) }
 0x21a   : > { %s9587_s12 = scalar_lea.vmem %s10098_s4, %s7611_s7 }
 0x21b   : > { %s9592_s14 = scalar_lea.vmem %s10099_s5, %s6893_s25 }
 0x21d   : > { %v1098_v0 = vld [vmem:[%s10101_s28] sm:$0xf] (!%p10100_p9) }
 0x21e   : > { %1099 = vst [vmem:[#allocation2] sm:$0xf] %v1098_v0 }
 0x21f   : > { %v1100_v1 = vld [vmem:[%s10102_s29] sm:$0xf] }
 0x220   : > { %1101 = vst [vmem:[#allocation3] sm:$0xf] %v1100_v1 }
 0x221 PF: > { %v1279_v2 = vld [vmem:[#allocation9] sm:$0xff]  ;;  %v1280_v4 = vld [vmem:[#allocation9 + $0x8] sm:$0xff]  ;;  %s10103_s13 = scalar_lea.vmem [#allocation4], %s9537_s27  ;;  %s10104_s7 = sld [smem:[#allocation51_spill]]  ;;  %vm8940_vm0 = vmmov 0  }
 0x222   : > { %v1283_v3 = vld [vmem:[#allocation9 + $0x20] sm:$0xff]  ;;  %v1284_v6 = vld [vmem:[#allocation9 + $0x28] sm:$0xff]  ;;  %s10105_s30 = sld [smem:[#allocation64_spill]]  ;;  %s10106_s21 = sld [smem:[#allocation63_spill]] }
 0x223   : > { %v6898_v5 = vcombine.high %v1279_v2, %v1283_v3  ;;  %v6897_v7 = vcombine.low %v1279_v2, %v1283_v3  ;;  %v1287_v8 = vld [vmem:[#allocation9 + $0x40] sm:$0xff]  ;;  %v6900_v10 = vcombine.high %v1280_v4, %v1284_v6  ;;  %v6899_v11 = vcombine.low %v1280_v4, %v1284_v6  ;;  %v1288_v13 = vld [vmem:[#allocation9 + $0x48] sm:$0xff]  ;;  %s10107_s0 = scalar_lea.vmem [#allocation6], %s9537_s27  ;;  %s10108_s23 = sld [smem:[#allocation56_spill]] }
 0x224   : > { %v1291_v9 = vld [vmem:[#allocation9 + $0x60] sm:$0xff]  ;;  %v1292_v14 = vld [vmem:[#allocation9 + $0x68] sm:$0xff]  ;;  %s10109_s28 = sld [smem:[#allocation55_spill]] }
 0x225   : > { %v6906_v12 = vcombine.high %v1287_v8, %v1291_v9  ;;  %v1295_v15 = vld [vmem:[#allocation9 + $0x80] sm:$0xff]  ;;  %2047 = vmatprep.subr.bf16.mxu0 %v6898_v5  ;;  %v6908_v16 = vcombine.high %v1288_v13, %v1292_v14  ;;  %v1296_v18 = vld [vmem:[#allocation9 + $0x88] sm:$0xff]  ;;  %2088 = vmatprep.subr.bf16.mxu1 %v6900_v10  ;;  %v6905_v20 = vcombine.low %v1287_v8, %v1291_v9 }
 0x226   : > { %v1299_v17 = vld [vmem:[#allocation9 + $0xa0] sm:$0xff]  ;;  %v1300_v19 = vld [vmem:[#allocation9 + $0xa8] sm:$0xff]  ;;  %2048 = vmatpush1.bf16.msra.mxu0 %v6897_v7  ;;  %2089 = vmatpush1.bf16.msra.mxu1 %v6899_v11  ;;  %v6907_v21 = vcombine.low %v1288_v13, %v1292_v14 }
 0x227   : > { %2049 = vmatprep.subr.bf16.mxu0 %v6906_v12  ;;  %v6914_v22 = vcombine.high %v1295_v15, %v1299_v17  ;;  %2090 = vmatprep.subr.bf16.mxu1 %v6908_v16  ;;  %v6916_v23 = vcombine.high %v1296_v18, %v1300_v19  ;;  %v1303_v24 = vld [vmem:[#allocation9 + $0xc0] sm:$0xff]  ;;  %v1304_v26 = vld [vmem:[#allocation9 + $0xc8] sm:$0xff]  ;;  %v6913_v28 = vcombine.low %v1295_v15, %v1299_v17 }
 0x228   : > { %v1307_v25 = vld [vmem:[#allocation9 + $0xe0] sm:$0xff]  ;;  %v1308_v27 = vld [vmem:[#allocation9 + $0xe8] sm:$0xff]  ;;  %v6915_v29 = vcombine.low %v1296_v18, %v1300_v19 }
 0x229   : > { %v6922_v30 = vcombine.high %v1303_v24, %v1307_v25  ;;  %v6924_v31 = vcombine.high %v1304_v26, %v1308_v27  ;;  %v1311_v32 = vld [vmem:[#allocation9 + $0x100] sm:$0xff]  ;;  %v1312_v34 = vld [vmem:[#allocation9 + $0x108] sm:$0xff]  ;;  %v6921_v36 = vcombine.low %v1303_v24, %v1307_v25  ;;  %v6923_v37 = vcombine.low %v1304_v26, %v1308_v27 }
 0x22a   : > { %2050 = vmatpush1.bf16.msra.mxu0 %v6905_v20  ;;  %2091 = vmatpush1.bf16.msra.mxu1 %v6907_v21  ;;  %v1315_v33 = vld [vmem:[#allocation9 + $0x120] sm:$0xff]  ;;  %v1316_v35 = vld [vmem:[#allocation9 + $0x128] sm:$0xff]  ;;  %v8938_v25 = vmov 1983009808   ;;  %v1115_v27 = vlaneseq }
 0x22b   : > { %2051 = vmatprep.subr.bf16.mxu0 %v6914_v22  ;;  %2092 = vmatprep.subr.bf16.mxu1 %v6916_v23  ;;  %v6930_v38 = vcombine.high %v1311_v32, %v1315_v33  ;;  %v6932_v39 = vcombine.high %v1312_v34, %v1316_v35  ;;  %v1319_v40 = vld [vmem:[#allocation9 + $0x140] sm:$0xff]  ;;  %v1320_v42 = vld [vmem:[#allocation9 + $0x148] sm:$0xff]  ;;  %v6929_v44 = vcombine.low %v1311_v32, %v1315_v33  ;;  %v1113_v26 = vunpack.c.l.s4 %v8938_v25  ;;  %v1289_v25 = vld [vmem:[#allocation9 + $0x50] sm:$0xff] }
 0x22c   : > { %v1323_v41 = vld [vmem:[#allocation9 + $0x160] sm:$0xff]  ;;  %v1324_v43 = vld [vmem:[#allocation9 + $0x168] sm:$0xff]  ;;  %v6931_v45 = vcombine.low %v1312_v34, %v1316_v35 }
 0x22d   : > { %v6938_v46 = vcombine.high %v1319_v40, %v1323_v41  ;;  %v6940_v47 = vcombine.high %v1320_v42, %v1324_v43  ;;  %v1327_v48 = vld [vmem:[#allocation9 + $0x180] sm:$0xff]  ;;  %v1328_v50 = vld [vmem:[#allocation9 + $0x188] sm:$0xff]  ;;  %v6937_v52 = vcombine.low %v1319_v40, %v1323_v41  ;;  %v6939_v53 = vcombine.low %v1320_v42, %v1324_v43 }
 0x22e   : > { %2052 = vmatpush1.bf16.msra.mxu0 %v6913_v28  ;;  %2093 = vmatpush1.bf16.msra.mxu1 %v6915_v29  ;;  %v1331_v49 = vld [vmem:[#allocation9 + $0x1a0] sm:$0xff]  ;;  %v1332_v51 = vld [vmem:[#allocation9 + $0x1a8] sm:$0xff] }
 0x22f   : > { %2053 = vmatprep.subr.bf16.mxu0 %v6922_v30  ;;  %2094 = vmatprep.subr.bf16.mxu1 %v6924_v31  ;;  %v6946_v54 = vcombine.high %v1327_v48, %v1331_v49  ;;  %v1102_v55 = vld [vmem:[%s9587_s12] sm:$0xf]  ;;  %v6948_v56 = vcombine.high %v1328_v50, %v1332_v51  ;;  %v1335_v57 = vld [vmem:[#allocation9 + $0x1c0] sm:$0xff]  ;;  %v6945_v62 = vcombine.low %v1327_v48, %v1331_v49  ;;  %v1109_v49 = vld [vmem:[%s10103_s13] sm:$0xf]  ;;  %s10110_s13 = sld [smem:[#allocation60_spill]] }
 0x230   : > { %v1339_v58 = vld [vmem:[#allocation9 + $0x1e0] sm:$0xff]  ;;  %v6895_v59 = vmul.f32 -1.442695, %v1102_v55  ;;  %v1336_v60 = vld [vmem:[#allocation9 + $0x1c8] sm:$0xff]  ;;  %v6947_v63 = vcombine.low %v1328_v50, %v1332_v51 }
 0x231   : > { %v1340_v61 = vld [vmem:[#allocation9 + $0x1e8] sm:$0xff]  ;;  %v6954_v0 = vcombine.high %v1335_v57, %v1339_v58  ;;  %v1343_v2 = vld [vmem:[#allocation9 + $0x200] sm:$0xff]  ;;  %v6953_v6 = vcombine.low %v1335_v57, %v1339_v58 }
 0x232   : > { %2054 = vmatpush1.bf16.msra.mxu0 %v6921_v36  ;;  %2095 = vmatpush1.bf16.msra.mxu1 %v6923_v37  ;;  %8323 = vpow2.f32 %v6895_v59  ;;  %v6956_v1 = vcombine.high %v1336_v60, %v1340_v61  ;;  %v1347_v3 = vld [vmem:[#allocation9 + $0x220] sm:$0xff]  ;;  %v1344_v4 = vld [vmem:[#allocation9 + $0x208] sm:$0xff]  ;;  %v6955_v7 = vcombine.low %v1336_v60, %v1340_v61  ;;  %v1114_v36 = vunpack.c.0.s8 %v1113_v26  ;;  %v1293_v26 = vld [vmem:[#allocation9 + $0x70] sm:$0xff] }
 0x233   : > { %2055 = vmatprep.subr.bf16.mxu0 %v6930_v38  ;;  %2096 = vmatprep.subr.bf16.mxu1 %v6932_v39  ;;  %v1348_v5 = vld [vmem:[#allocation9 + $0x228] sm:$0xff]  ;;  %v6962_v8 = vcombine.high %v1343_v2, %v1347_v3  ;;  %v1351_v10 = vld [vmem:[#allocation9 + $0x240] sm:$0xff]  ;;  %v6961_v14 = vcombine.low %v1343_v2, %v1347_v3  ;;  %v9603_v37 = vshrl.u32 %v1115_v27, 7 }
 0x234   : > { %v6964_v9 = vcombine.high %v1344_v4, %v1348_v5  ;;  %v1355_v11 = vld [vmem:[#allocation9 + $0x260] sm:$0xff]  ;;  %v1352_v12 = vld [vmem:[#allocation9 + $0x248] sm:$0xff]  ;;  %v6963_v15 = vcombine.low %v1344_v4, %v1348_v5 }
 0x235   : > { %v1356_v13 = vld [vmem:[#allocation9 + $0x268] sm:$0xff]  ;;  %v6970_v16 = vcombine.high %v1351_v10, %v1355_v11  ;;  %v1359_v19 = vld [vmem:[#allocation9 + $0x280] sm:$0xff]  ;;  %v6969_v24 = vcombine.low %v1351_v10, %v1355_v11 }
 0x236   : > { %2056 = vmatpush1.bf16.msra.mxu0 %v6929_v44  ;;  %2097 = vmatpush1.bf16.msra.mxu1 %v6931_v45  ;;  %v6972_v18 = vcombine.high %v1352_v12, %v1356_v13  ;;  %v1363_v20 = vld [vmem:[#allocation9 + $0x2a0] sm:$0xff]  ;;  %v1360_v21 = vld [vmem:[#allocation9 + $0x288] sm:$0xff]  ;;  %v6971_v28 = vcombine.low %v1352_v12, %v1356_v13 }
 0x237   : > { %2057 = vmatprep.subr.bf16.mxu0 %v6938_v46  ;;  %2098 = vmatprep.subr.bf16.mxu1 %v6940_v47  ;;  %v1364_v22 = vld [vmem:[#allocation9 + $0x2a8] sm:$0xff]  ;;  %v6978_v29 = vcombine.high %v1359_v19, %v1363_v20  ;;  %v1367_v31 = vld [vmem:[#allocation9 + $0x2c0] sm:$0xff]  ;;  %v6977_v35 = vcombine.low %v1359_v19, %v1363_v20  ;;  %v1117_v46 = vsub.s32 %v1114_v36, %v9603_v37  ;;  %v1282_v19 = vld [vmem:[#allocation9 + $0x18] sm:$0xff] }
 0x238   : > { %v6980_v30 = vcombine.high %v1360_v21, %v1364_v22  ;;  %v1371_v32 = vld [vmem:[#allocation9 + $0x2e0] sm:$0xff]  ;;  %v1368_v33 = vld [vmem:[#allocation9 + $0x2c8] sm:$0xff]  ;;  %v6979_v38 = vcombine.low %v1360_v21, %v1364_v22  ;;  %v1286_v20 = vld [vmem:[#allocation9 + $0x38] sm:$0xff] }
 0x239   : > { %v1372_v34 = vld [vmem:[#allocation9 + $0x2e8] sm:$0xff]  ;;  %v6986_v39 = vcombine.high %v1367_v31, %v1371_v32  ;;  %v1375_v41 = vld [vmem:[#allocation9 + $0x300] sm:$0xff]  ;;  %v6985_v45 = vcombine.low %v1367_v31, %v1371_v32  ;;  %v6903_v31 = vcombine.low %v1282_v19, %v1286_v20  ;;  %v6910_v32 = vcombine.high %v1289_v25, %v1293_v26 }
 0x23a   : > { %2058 = vmatpush1.bf16.msra.mxu0 %v6937_v52  ;;  %2099 = vmatpush1.bf16.msra.mxu1 %v6939_v53  ;;  %v6988_v40 = vcombine.high %v1368_v33, %v1372_v34  ;;  %v1379_v42 = vld [vmem:[#allocation9 + $0x320] sm:$0xff]  ;;  %v1376_v43 = vld [vmem:[#allocation9 + $0x308] sm:$0xff]  ;;  %v6987_v47 = vcombine.low %v1368_v33, %v1372_v34  ;;  %v1297_v33 = vld [vmem:[#allocation9 + $0x90] sm:$0xff] }
 0x23b   : > { %2059 = vmatprep.subr.bf16.mxu0 %v6946_v54  ;;  %2100 = vmatprep.subr.bf16.mxu1 %v6948_v56  ;;  %v1380_v44 = vld [vmem:[#allocation9 + $0x328] sm:$0xff]  ;;  %v6994_v48 = vcombine.high %v1375_v41, %v1379_v42  ;;  %v1383_v51 = vld [vmem:[#allocation9 + $0x340] sm:$0xff]  ;;  %v6993_v56 = vcombine.low %v1375_v41, %v1379_v42  ;;  %v1301_v34 = vld [vmem:[#allocation9 + $0xb0] sm:$0xff] }
 0x23c   : > { %v8324_v17 = vpop.eup %8323  ;;  %v6996_v50 = vcombine.high %v1376_v43, %v1380_v44  ;;  %v1387_v52 = vld [vmem:[#allocation9 + $0x360] sm:$0xff]  ;;  %v1384_v54 = vld [vmem:[#allocation9 + $0x348] sm:$0xff]  ;;  %v6995_v59 = vcombine.low %v1376_v43, %v1380_v44  ;;  %v6918_v41 = vcombine.high %v1297_v33, %v1301_v34  ;;  %v1305_v42 = vld [vmem:[#allocation9 + $0xd0] sm:$0xff] }
 0x23d   : > { %v1106_v23 = vadd.f32 1.0, %v8324_v17  ;;  %v1388_v55 = vld [vmem:[#allocation9 + $0x368] sm:$0xff]  ;;  %v7002_v60 = vcombine.high %v1383_v51, %v1387_v52  ;;  %v7001_v4 = vcombine.low %v1383_v51, %v1387_v52  ;;  %v1403_v10 = vld [vmem:[#allocation9 + $0x3e0] sm:$0xff]  ;;  %v1281_v17 = vld [vmem:[#allocation9 + $0x10] sm:$0xff] }
 0x23e   : > { %2060 = vmatpush1.bf16.msra.mxu0 %v6945_v62  ;;  %2101 = vmatpush1.bf16.msra.mxu1 %v6947_v63  ;;  %v7004_v61 = vcombine.high %v1384_v54, %v1388_v55  ;;  %v1391_v62 = vld [vmem:[#allocation9 + $0x380] sm:$0xff]  ;;  %v1392_v2 = vld [vmem:[#allocation9 + $0x388] sm:$0xff]  ;;  %v1309_v43 = vld [vmem:[#allocation9 + $0xf0] sm:$0xff] }
 0x23f   : > { %2061 = vmatprep.subr.bf16.mxu0 %v6954_v0  ;;  %2102 = vmatprep.subr.bf16.mxu1 %v6956_v1  ;;  %8325 = vrcp.f32 %v1106_v23  ;;  %v1395_v63 = vld [vmem:[#allocation9 + $0x3a0] sm:$0xff]  ;;  %v1396_v3 = vld [vmem:[#allocation9 + $0x3a8] sm:$0xff]  ;;  %v1306_v44 = vld [vmem:[#allocation9 + $0xd8] sm:$0xff] }
 0x240   : > { %v1400_v11 = vld [vmem:[#allocation9 + $0x3c8] sm:$0xff]  ;;  %v7009_v13 = vcombine.low %v1391_v62, %v1395_v63  ;;  %v1317_v51 = vld [vmem:[#allocation9 + $0x130] sm:$0xff]  ;;  %v1314_v52 = vld [vmem:[#allocation9 + $0x118] sm:$0xff] }
 0x241   : > { %v1404_v12 = vld [vmem:[#allocation9 + $0x3e8] sm:$0xff] }
 0x242   : > { %2062 = vmatpush1.bf16.msra.mxu0 %v6953_v6  ;;  %2103 = vmatpush1.bf16.msra.mxu1 %v6955_v7  ;;  %v7003_v6 = vcombine.low %v1384_v54, %v1388_v55  ;;  %v7010_v7 = vcombine.high %v1391_v62, %v1395_v63  ;;  %v7019_v22 = vcombine.low %v1400_v11, %v1404_v12  ;;  %v1318_v54 = vld [vmem:[#allocation9 + $0x138] sm:$0xff] }
 0x243   : > { %2063 = vmatprep.subr.bf16.mxu0 %v6962_v8  ;;  %2104 = vmatprep.subr.bf16.mxu1 %v6964_v9  ;;  %v7012_v8 = vcombine.high %v1392_v2, %v1396_v3  ;;  %v1399_v9 = vld [vmem:[#allocation9 + $0x3c0] sm:$0xff]  ;;  %v6925_v55 = vcombine.low %v1305_v42, %v1309_v43  ;;  %v1326_v62 = vld [vmem:[#allocation9 + $0x178] sm:$0xff] }
 0x244   : > { %v7017_v21 = vcombine.low %v1399_v9, %v1403_v10 }
 0x246   : > { %2064 = vmatpush1.bf16.msra.mxu0 %v6961_v14  ;;  %2105 = vmatpush1.bf16.msra.mxu1 %v6963_v15  ;;  %v7011_v14 = vcombine.low %v1392_v2, %v1396_v3  ;;  %v7018_v15 = vcombine.high %v1399_v9, %v1403_v10  ;;  %v1329_v3 = vld [vmem:[#allocation9 + $0x190] sm:$0xff] }
 0x247   : > { %2065 = vmatprep.subr.bf16.mxu0 %v6970_v16  ;;  %2106 = vmatprep.subr.bf16.mxu1 %v6972_v18  ;;  %v7020_v16 = vcombine.high %v1400_v11, %v1404_v12  ;;  %v1285_v18 = vld [vmem:[#allocation9 + $0x30] sm:$0xff] }
 0x248   : > { %v6902_v23 = vcombine.high %v1281_v17, %v1285_v18  ;;  %v1337_v11 = vld [vmem:[#allocation9 + $0x1d0] sm:$0xff] }
 0x249   : > { %v8326_v53 = vpop.eup %8325  ;;  %v1341_v12 = vld [vmem:[#allocation9 + $0x1f0] sm:$0xff] }
 0x24a   : > { %2066 = vmatpush1.bf16.msra.mxu0 %v6969_v24  ;;  %2107 = vmatpush1.bf16.msra.mxu1 %v6971_v28  ;;  %v1110_v57 = vmul.f32 %v8326_v53, %v1109_v49  ;;  %v1131_v58 = vrot.slane %v8326_v53, %v1117_v46  ;;  %v6904_v24 = vcombine.high %v1282_v19, %v1286_v20  ;;  %v1290_v28 = vld [vmem:[#allocation9 + $0x58] sm:$0xff]  ;;  %v1345_v19 = vld [vmem:[#allocation9 + $0x210] sm:$0xff] }
 0x24b   : > { %2067 = vmatprep.subr.bf16.mxu0 %v6978_v29  ;;  %2108 = vmatprep.subr.bf16.mxu1 %v6980_v30  ;;  %v1294_v29 = vld [vmem:[#allocation9 + $0x78] sm:$0xff]  ;;  %v6901_v30 = vcombine.low %v1281_v17, %v1285_v18  ;;  %v6926_v49 = vcombine.high %v1305_v42, %v1309_v43  ;;  %v6958_v18 = vcombine.high %v1337_v11, %v1341_v12  ;;  %v1349_v20 = vld [vmem:[#allocation9 + $0x230] sm:$0xff] }
 0x24c   : > { %v9608_v0 = vrot.slane %v1110_v57, %v1117_v46  ;;  %v1132_v1 = vcombine.high %v1131_v58, %v1131_v58  ;;  %v9614_v27 = vpack.c.bf16 %v1131_v58, %v1131_v58  ;;  %v6912_v36 = vcombine.high %v1290_v28, %v1294_v29  ;;  %v1310_v46 = vld [vmem:[#allocation9 + $0xf8] sm:$0xff]  ;;  %v1321_v58 = vld [vmem:[#allocation9 + $0x150] sm:$0xff] }
 0x24d   : > { %v6928_v53 = vcombine.high %v1306_v44, %v1310_v46 }
 0x24e   : > { %2068 = vmatpush1.bf16.msra.mxu0 %v6977_v35  ;;  %2109 = vmatpush1.bf16.msra.mxu1 %v6979_v38  ;;  %v9610_v5 = vpack.c.bf16 %v1132_v1, %v1132_v1  ;;  %v1298_v35 = vld [vmem:[#allocation9 + $0x98] sm:$0xff]  ;;  %v6935_v1 = vcombine.low %v1314_v52, %v1318_v54 }
 0x24f   : > { %2069 = vmatprep.subr.bf16.mxu0 %v6986_v39  ;;  %2110 = vmatprep.subr.bf16.mxu1 %v6988_v40  ;;  %v1302_v38 = vld [vmem:[#allocation9 + $0xb8] sm:$0xff]  ;;  %v6909_v39 = vcombine.low %v1289_v25, %v1293_v26  ;;  %v6911_v40 = vcombine.low %v1290_v28, %v1294_v29  ;;  %v6966_v26 = vcombine.high %v1345_v19, %v1349_v20  ;;  %v1353_v28 = vld [vmem:[#allocation9 + $0x250] sm:$0xff] }
 0x250   : > { %2079 = vmatprep.mubr.bf16.mxu0 %v9610_v5  ;;  %2120 = vmatprep.mubr.bf16.mxu1 %v9610_v5  ;;  %v1357_v29 = vld [vmem:[#allocation9 + $0x270] sm:$0xff] }
 0x251   : > { %v6973_v42 = vcombine.low %v1353_v28, %v1357_v29 }
 0x252   : > { %2070 = vmatpush1.bf16.msra.mxu0 %v6985_v45  ;;  %2111 = vmatpush1.bf16.msra.mxu1 %v6987_v47  ;;  %v6920_v45 = vcombine.high %v1298_v35, %v1302_v38  ;;  %v6917_v47 = vcombine.low %v1297_v33, %v1301_v34  ;;  %v6965_v33 = vcombine.low %v1345_v19, %v1349_v20 }
 0x253   : > { %2071 = vmatprep.subr.bf16.mxu0 %v6994_v48  ;;  %2112 = vmatprep.subr.bf16.mxu1 %v6996_v50  ;;  %v6919_v48 = vcombine.low %v1298_v35, %v1302_v38  ;;  %v1313_v50 = vld [vmem:[#allocation9 + $0x110] sm:$0xff]  ;;  %v6974_v35 = vcombine.high %v1353_v28, %v1357_v29 }
 0x254   : > { %v6934_v57 = vcombine.high %v1313_v50, %v1317_v51  ;;  %v6933_v63 = vcombine.low %v1313_v50, %v1317_v51  ;;  %v1365_v38 = vld [vmem:[#allocation9 + $0x2b0] sm:$0xff] }
 0x256   : > { %2072 = vmatpush1.bf16.msra.mxu0 %v6993_v56  ;;  %2113 = vmatpush1.bf16.msra.mxu1 %v6995_v59  ;;  %v6927_v56 = vcombine.low %v1306_v44, %v1310_v46  ;;  %v1325_v59 = vld [vmem:[#allocation9 + $0x170] sm:$0xff] }
 0x257   : > { %2073 = vmatprep.subr.bf16.mxu0 %v7002_v60  ;;  %2114 = vmatprep.subr.bf16.mxu1 %v7004_v61  ;;  %v1322_v60 = vld [vmem:[#allocation9 + $0x158] sm:$0xff]  ;;  %v6936_v61 = vcombine.high %v1314_v52, %v1318_v54  ;;  %v6942_v2 = vcombine.high %v1321_v58, %v1325_v59  ;;  %v1373_v46 = vld [vmem:[#allocation9 + $0x2f0] sm:$0xff] }
 0x258   : > { %v6943_v9 = vcombine.low %v1322_v60, %v1326_v62  ;;  %v1381_v54 = vld [vmem:[#allocation9 + $0x330] sm:$0xff] }
 0x25a   : > { %2074 = vmatpush1.bf16.msra.mxu0 %v7001_v4  ;;  %2115 = vmatpush1.bf16.msra.mxu1 %v7003_v6  ;;  %v1333_v4 = vld [vmem:[#allocation9 + $0x1b0] sm:$0xff]  ;;  %v6944_v6 = vcombine.high %v1322_v60, %v1326_v62 }
 0x25b   : > { %2075 = vmatprep.subr.bf16.mxu0 %v7010_v7  ;;  %2116 = vmatprep.subr.bf16.mxu1 %v7012_v8  ;;  %v1334_v7 = vld [vmem:[#allocation9 + $0x1b8] sm:$0xff]  ;;  %v6941_v8 = vcombine.low %v1321_v58, %v1325_v59  ;;  %v6950_v10 = vcombine.high %v1329_v3, %v1333_v4  ;;  %v1389_v62 = vld [vmem:[#allocation9 + $0x370] sm:$0xff] }
 0x25e   : > { %2076 = vmatpush1.bf16.msra.mxu0 %v7009_v13  ;;  %2117 = vmatpush1.bf16.msra.mxu1 %v7011_v14  ;;  %v1338_v13 = vld [vmem:[#allocation9 + $0x1d8] sm:$0xff] }
 0x25f   : > { %2077 = vmatprep.subr.bf16.mxu0 %v7018_v15  ;;  %2118 = vmatprep.subr.bf16.mxu1 %v7020_v16  ;;  %v1342_v15 = vld [vmem:[#allocation9 + $0x1f8] sm:$0xff]  ;;  %v6949_v16 = vcombine.low %v1329_v3, %v1333_v4 }
 0x260   : > { %v6959_v25 = vcombine.low %v1338_v13, %v1342_v15 }
 0x262   : > { %2078 = vmatpush1.bf16.msra.mxu0 %v7017_v21  ;;  %2119 = vmatpush1.bf16.msra.mxu1 %v7019_v22  ;;  %v1346_v21 = vld [vmem:[#allocation9 + $0x218] sm:$0xff]  ;;  %v6960_v22 = vcombine.high %v1338_v13, %v1342_v15  ;;  %v1405_v15 = vld [vmem:[#allocation9 + $0x3f0] sm:$0xff] }
 0x263   : > { %2129 = vmatprep.subr.bf16.mxu0 %v6902_v23  ;;  %2170 = vmatprep.subr.bf16.mxu1 %v6904_v24  ;;  %v1350_v23 = vld [vmem:[#allocation9 + $0x238] sm:$0xff]  ;;  %v6957_v24 = vcombine.low %v1337_v11, %v1341_v12 }
 0x264   : > { %v6967_v34 = vcombine.low %v1346_v21, %v1350_v23 }
 0x265   : > { %2080 = vmatmul.mubr.bf16.vlgmr.msra.gmra.mrb[0].mxu0 %v9614_v27  ;;  %2121 = vmatmul.mubr.bf16.vlgmr.msra.gmra.mrb[0].mxu1 %v9614_v27 }
 0x266   : > { %2130 = vmatpush1.bf16.msra.mxu0 %v6901_v30  ;;  %2171 = vmatpush1.bf16.msra.mxu1 %v6903_v31  ;;  %v1354_v30 = vld [vmem:[#allocation9 + $0x258] sm:$0xff]  ;;  %v6968_v31 = vcombine.high %v1346_v21, %v1350_v23  ;;  %v1155_v23 = vld [vmem:[#allocation8 + $0x20] sm:$0xff] }
 0x267   : > { %2131 = vmatprep.subr.bf16.mxu0 %v6910_v32  ;;  %2172 = vmatprep.subr.bf16.mxu1 %v6912_v36  ;;  %v1358_v32 = vld [vmem:[#allocation9 + $0x278] sm:$0xff]  ;;  %v1361_v36 = vld [vmem:[#allocation9 + $0x290] sm:$0xff] }
 0x268   : > { %2161 = vmatprep.mubr.bf16.mxu0 %v9610_v5  ;;  %2202 = vmatprep.mubr.bf16.mxu1 %v9610_v5  ;;  %v1330_v5 = vld [vmem:[#allocation9 + $0x198] sm:$0xff]  ;;  %v6975_v43 = vcombine.low %v1354_v30, %v1358_v32  ;;  %v6982_v44 = vcombine.high %v1361_v36, %v1365_v38  ;;  %v6981_v50 = vcombine.low %v1361_v36, %v1365_v38  ;;  %v1164_v36 = vld [vmem:[#allocation8 + $0x68] sm:$0xff] }
 0x269   : > { %v6952_v14 = vcombine.high %v1330_v5, %v1334_v7  ;;  %v6951_v17 = vcombine.low %v1330_v5, %v1334_v7  ;;  %v1397_v7 = vld [vmem:[#allocation9 + $0x3b0] sm:$0xff] }
 0x26a   : > { %2132 = vmatpush1.bf16.msra.mxu0 %v6909_v39  ;;  %2173 = vmatpush1.bf16.msra.mxu1 %v6911_v40  ;;  %v1362_v39 = vld [vmem:[#allocation9 + $0x298] sm:$0xff]  ;;  %v6976_v40 = vcombine.high %v1354_v30, %v1358_v32  ;;  %v1163_v32 = vld [vmem:[#allocation8 + $0x60] sm:$0xff] }
 0x26b   : > { %2133 = vmatprep.subr.bf16.mxu0 %v6918_v41  ;;  %2174 = vmatprep.subr.bf16.mxu1 %v6920_v45  ;;  %v1366_v41 = vld [vmem:[#allocation9 + $0x2b8] sm:$0xff]  ;;  %v1369_v45 = vld [vmem:[#allocation9 + $0x2d0] sm:$0xff] }
 0x26c   : > { %v6983_v51 = vcombine.low %v1362_v39, %v1366_v41  ;;  %v6990_v52 = vcombine.high %v1369_v45, %v1373_v46  ;;  %v6989_v58 = vcombine.low %v1369_v45, %v1373_v46  ;;  %v1172_v46 = vld [vmem:[#allocation8 + $0xa8] sm:$0xff] }
 0x26e   : > { %2134 = vmatpush1.bf16.msra.mxu0 %v6917_v47  ;;  %2175 = vmatpush1.bf16.msra.mxu1 %v6919_v48  ;;  %v1370_v47 = vld [vmem:[#allocation9 + $0x2d8] sm:$0xff]  ;;  %v6984_v48 = vcombine.high %v1362_v39, %v1366_v41  ;;  %v1167_v41 = vld [vmem:[#allocation8 + $0x80] sm:$0xff] }
 0x26f   : > { %2135 = vmatprep.subr.bf16.mxu0 %v6926_v49  ;;  %2176 = vmatprep.subr.bf16.mxu1 %v6928_v53  ;;  %v1374_v49 = vld [vmem:[#allocation9 + $0x2f8] sm:$0xff]  ;;  %v1377_v53 = vld [vmem:[#allocation9 + $0x310] sm:$0xff] }
 0x270   : > { %v6991_v59 = vcombine.low %v1370_v47, %v1374_v49  ;;  %v6998_v60 = vcombine.high %v1377_v53, %v1381_v54  ;;  %v6997_v3 = vcombine.low %v1377_v53, %v1381_v54  ;;  %v1180_v54 = vld [vmem:[#allocation8 + $0xe8] sm:$0xff] }
 0x272   : > { %2136 = vmatpush1.bf16.msra.mxu0 %v6925_v55  ;;  %2177 = vmatpush1.bf16.msra.mxu1 %v6927_v56  ;;  %v1378_v55 = vld [vmem:[#allocation9 + $0x318] sm:$0xff]  ;;  %v6992_v56 = vcombine.high %v1370_v47, %v1374_v49 }
 0x273   : > { %2137 = vmatprep.subr.bf16.mxu0 %v6934_v57  ;;  %2178 = vmatprep.subr.bf16.mxu1 %v6936_v61  ;;  %v1382_v57 = vld [vmem:[#allocation9 + $0x338] sm:$0xff]  ;;  %v1385_v61 = vld [vmem:[#allocation9 + $0x350] sm:$0xff] }
 0x274   : > { %v6999_v4 = vcombine.low %v1378_v55, %v1382_v57  ;;  %v7006_v5 = vcombine.high %v1385_v61, %v1389_v62  ;;  %v7005_v11 = vcombine.low %v1385_v61, %v1389_v62  ;;  %v1188_v61 = vld [vmem:[#allocation8 + $0x128] sm:$0xff] }
 0x276   : > { %2138 = vmatpush1.bf16.msra.mxu0 %v6933_v63  ;;  %2179 = vmatpush1.bf16.msra.mxu1 %v6935_v1  ;;  %v1386_v63 = vld [vmem:[#allocation9 + $0x358] sm:$0xff]  ;;  %v7000_v1 = vcombine.high %v1378_v55, %v1382_v57  ;;  %v1183_v57 = vld [vmem:[#allocation8 + $0x100] sm:$0xff] }
 0x277   : > { %2139 = vmatprep.subr.bf16.mxu0 %v6942_v2  ;;  %2180 = vmatprep.subr.bf16.mxu1 %v6944_v6  ;;  %v1390_v2 = vld [vmem:[#allocation9 + $0x378] sm:$0xff]  ;;  %v1393_v6 = vld [vmem:[#allocation9 + $0x390] sm:$0xff] }
 0x278   : > { %v7007_v12 = vcombine.low %v1386_v63, %v1390_v2  ;;  %v7014_v13 = vcombine.high %v1393_v6, %v1397_v7  ;;  %v7013_v19 = vcombine.low %v1393_v6, %v1397_v7  ;;  %v1196_v6 = vld [vmem:[#allocation8 + $0x168] sm:$0xff] }
 0x27a   : > { %2140 = vmatpush1.bf16.msra.mxu0 %v6941_v8  ;;  %2181 = vmatpush1.bf16.msra.mxu1 %v6943_v9  ;;  %v1394_v8 = vld [vmem:[#allocation9 + $0x398] sm:$0xff]  ;;  %v7008_v9 = vcombine.high %v1386_v63, %v1390_v2  ;;  %v1191_v2 = vld [vmem:[#allocation8 + $0x140] sm:$0xff] }
 0x27b   : > { %2141 = vmatprep.subr.bf16.mxu0 %v6950_v10  ;;  %2182 = vmatprep.subr.bf16.mxu1 %v6952_v14  ;;  %v1398_v10 = vld [vmem:[#allocation9 + $0x3b8] sm:$0xff]  ;;  %v1401_v14 = vld [vmem:[#allocation9 + $0x3d0] sm:$0xff] }
 0x27c   : > { %v7015_v20 = vcombine.low %v1394_v8, %v1398_v10  ;;  %v7022_v21 = vcombine.high %v1401_v14, %v1405_v15  ;;  %v7021_v28 = vcombine.low %v1401_v14, %v1405_v15  ;;  %v1204_v14 = vld [vmem:[#allocation8 + $0x1a8] sm:$0xff] }
 0x27e   : > { %2142 = vmatpush1.bf16.msra.mxu0 %v6949_v16  ;;  %2183 = vmatpush1.bf16.msra.mxu1 %v6951_v17  ;;  %v1402_v16 = vld [vmem:[#allocation9 + $0x3d8] sm:$0xff]  ;;  %v7016_v17 = vcombine.high %v1394_v8, %v1398_v10  ;;  %v1199_v10 = vld [vmem:[#allocation8 + $0x180] sm:$0xff] }
 0x27f   : > { %2143 = vmatprep.subr.bf16.mxu0 %v6958_v18  ;;  %2184 = vmatprep.subr.bf16.mxu1 %v6960_v22  ;;  %v1406_v18 = vld [vmem:[#allocation9 + $0x3f8] sm:$0xff]  ;;  %v1151_v22 = vld [vmem:[#allocation8] sm:$0xff] }
 0x280   : > { %v7023_v29 = vcombine.low %v1402_v16, %v1406_v18  ;;  %v7026_v30 = vcombine.high %v1151_v22, %v1155_v23  ;;  %v7025_v38 = vcombine.low %v1151_v22, %v1155_v23  ;;  %v1212_v22 = vld [vmem:[#allocation8 + $0x1e8] sm:$0xff] }
 0x282   : > { %2144 = vmatpush1.bf16.msra.mxu0 %v6957_v24  ;;  %2185 = vmatpush1.bf16.msra.mxu1 %v6959_v25  ;;  %v1152_v24 = vld [vmem:[#allocation8 + $0x8] sm:$0xff]  ;;  %v7024_v25 = vcombine.high %v1402_v16, %v1406_v18  ;;  %v1207_v18 = vld [vmem:[#allocation8 + $0x1c0] sm:$0xff] }
 0x283   : > { %2145 = vmatprep.subr.bf16.mxu0 %v6966_v26  ;;  %2186 = vmatprep.subr.bf16.mxu1 %v6968_v31  ;;  %v1156_v26 = vld [vmem:[#allocation8 + $0x28] sm:$0xff]  ;;  %v1159_v31 = vld [vmem:[#allocation8 + $0x40] sm:$0xff] }
 0x284   : > { %v7027_v39 = vcombine.low %v1152_v24, %v1156_v26  ;;  %v7033_v47 = vcombine.low %v1159_v31, %v1163_v32 }
 0x286   : > { %2146 = vmatpush1.bf16.msra.mxu0 %v6965_v33  ;;  %2187 = vmatpush1.bf16.msra.mxu1 %v6967_v34  ;;  %v1160_v33 = vld [vmem:[#allocation8 + $0x48] sm:$0xff]  ;;  %v1119_v34 = vcombine.high %v9608_v0, %v9608_v0 }
 0x287   : > { %2147 = vmatprep.subr.bf16.mxu0 %v6974_v35  ;;  %2188 = vmatprep.subr.bf16.mxu1 %v6976_v40  ;;  %v7028_v35 = vcombine.high %v1152_v24, %v1156_v26  ;;  %v7034_v40 = vcombine.high %v1159_v31, %v1163_v32  ;;  %v7036_v45 = vcombine.high %v1160_v33, %v1164_v36  ;;  %v1215_v26 = vld [vmem:[#allocation8 + $0x200] sm:$0xff]  ;;  %v1220_v31 = vld [vmem:[#allocation8 + $0x228] sm:$0xff] }
 0x28a   : > { %2148 = vmatpush1.bf16.msra.mxu0 %v6973_v42  ;;  %2189 = vmatpush1.bf16.msra.mxu1 %v6975_v43  ;;  %v1171_v42 = vld [vmem:[#allocation8 + $0xa0] sm:$0xff]  ;;  %v1168_v43 = vld [vmem:[#allocation8 + $0x88] sm:$0xff] }
 0x28b   : > { %2149 = vmatprep.subr.bf16.mxu0 %v6982_v44  ;;  %2190 = vmatprep.subr.bf16.mxu1 %v6984_v48  ;;  %v9622_v44 = vpack.c.bf16 %v1119_v34, %v1119_v34  ;;  %v7035_v48 = vcombine.low %v1160_v33, %v1164_v36  ;;  %v7042_v49 = vcombine.high %v1167_v41, %v1171_v42  ;;  %v1227_v36 = vld [vmem:[#allocation8 + $0x260] sm:$0xff] }
 0x28c   : > { %v7044_v53 = vcombine.high %v1168_v43, %v1172_v46  ;;  %v7041_v55 = vcombine.low %v1167_v41, %v1171_v42 }
 0x28e   : > { %2150 = vmatpush1.bf16.msra.mxu0 %v6981_v50  ;;  %2191 = vmatpush1.bf16.msra.mxu1 %v6983_v51  ;;  %v1175_v50 = vld [vmem:[#allocation8 + $0xc0] sm:$0xff] }
 0x28f   : > { %2151 = vmatprep.subr.bf16.mxu0 %v6990_v52  ;;  %2192 = vmatprep.subr.bf16.mxu1 %v6992_v56  ;;  %v1179_v51 = vld [vmem:[#allocation8 + $0xe0] sm:$0xff]  ;;  %v1176_v52 = vld [vmem:[#allocation8 + $0xc8] sm:$0xff] }
 0x290   : > { %v7050_v56 = vcombine.high %v1175_v50, %v1179_v51  ;;  %v7049_v62 = vcombine.low %v1175_v50, %v1179_v51  ;;  %v7051_v63 = vcombine.low %v1176_v52, %v1180_v54 }
 0x292   : > { %2152 = vmatpush1.bf16.msra.mxu0 %v6989_v58  ;;  %2193 = vmatpush1.bf16.msra.mxu1 %v6991_v59  ;;  %v1187_v58 = vld [vmem:[#allocation8 + $0x120] sm:$0xff]  ;;  %v1184_v59 = vld [vmem:[#allocation8 + $0x108] sm:$0xff] }
 0x293   : > { %2153 = vmatprep.subr.bf16.mxu0 %v6998_v60  ;;  %2194 = vmatprep.subr.bf16.mxu1 %v7000_v1  ;;  %v7052_v60 = vcombine.high %v1176_v52, %v1180_v54  ;;  %v7058_v1 = vcombine.high %v1183_v57, %v1187_v58  ;;  %v7057_v7 = vcombine.low %v1183_v57, %v1187_v58  ;;  %v1243_v54 = vld [vmem:[#allocation8 + $0x2e0] sm:$0xff] }
 0x294   : > { %v7059_v8 = vcombine.low %v1184_v59, %v1188_v61 }
 0x296   : > { %2154 = vmatpush1.bf16.msra.mxu0 %v6997_v3  ;;  %2195 = vmatpush1.bf16.msra.mxu1 %v6999_v4  ;;  %v1195_v3 = vld [vmem:[#allocation8 + $0x160] sm:$0xff]  ;;  %v1192_v4 = vld [vmem:[#allocation8 + $0x148] sm:$0xff] }
 0x297   : > { %2155 = vmatprep.subr.bf16.mxu0 %v7006_v5  ;;  %2196 = vmatprep.subr.bf16.mxu1 %v7008_v9  ;;  %v7060_v5 = vcombine.high %v1184_v59, %v1188_v61  ;;  %v7066_v9 = vcombine.high %v1191_v2, %v1195_v3  ;;  %v7065_v15 = vcombine.low %v1191_v2, %v1195_v3  ;;  %v1251_v61 = vld [vmem:[#allocation8 + $0x320] sm:$0xff] }
 0x298   : > { %v7067_v16 = vcombine.low %v1192_v4, %v1196_v6 }
 0x29a   : > { %2156 = vmatpush1.bf16.msra.mxu0 %v7005_v11  ;;  %2197 = vmatpush1.bf16.msra.mxu1 %v7007_v12  ;;  %v1203_v11 = vld [vmem:[#allocation8 + $0x1a0] sm:$0xff]  ;;  %v1200_v12 = vld [vmem:[#allocation8 + $0x188] sm:$0xff] }
 0x29b   : > { %2157 = vmatprep.subr.bf16.mxu0 %v7014_v13  ;;  %2198 = vmatprep.subr.bf16.mxu1 %v7016_v17  ;;  %v7068_v13 = vcombine.high %v1192_v4, %v1196_v6  ;;  %v7074_v17 = vcombine.high %v1199_v10, %v1203_v11  ;;  %v7073_v23 = vcombine.low %v1199_v10, %v1203_v11  ;;  %v1259_v6 = vld [vmem:[#allocation8 + $0x360] sm:$0xff] }
 0x29c   : > { %v7075_v24 = vcombine.low %v1200_v12, %v1204_v14 }
 0x29e   : > { %2158 = vmatpush1.bf16.msra.mxu0 %v7013_v19  ;;  %2199 = vmatpush1.bf16.msra.mxu1 %v7015_v20  ;;  %v1211_v19 = vld [vmem:[#allocation8 + $0x1e0] sm:$0xff]  ;;  %v1208_v20 = vld [vmem:[#allocation8 + $0x1c8] sm:$0xff] }
 0x29f   : > { %2159 = vmatprep.subr.bf16.mxu0 %v7022_v21  ;;  %2200 = vmatprep.subr.bf16.mxu1 %v7024_v25  ;;  %v7076_v21 = vcombine.high %v1200_v12, %v1204_v14  ;;  %v7082_v25 = vcombine.high %v1207_v18, %v1211_v19  ;;  %v7081_v32 = vcombine.low %v1207_v18, %v1211_v19  ;;  %v1267_v14 = vld [vmem:[#allocation8 + $0x3a0] sm:$0xff] }
 0x2a0   : > { %v7083_v33 = vcombine.low %v1208_v20, %v1212_v22 }
 0x2a2   : > { %2160 = vmatpush1.bf16.msra.mxu0 %v7021_v28  ;;  %2201 = vmatpush1.bf16.msra.mxu1 %v7023_v29  ;;  %v1219_v28 = vld [vmem:[#allocation8 + $0x220] sm:$0xff]  ;;  %v1216_v29 = vld [vmem:[#allocation8 + $0x208] sm:$0xff] }
 0x2a3   : > { %2851 = vmatprep.subr.bf16.mxu0 %v7026_v30  ;;  %2892 = vmatprep.subr.bf16.mxu1 %v7028_v35  ;;  %v7084_v30 = vcombine.high %v1208_v20, %v1212_v22  ;;  %v7090_v34 = vcombine.high %v1215_v26, %v1219_v28  ;;  %v1223_v35 = vld [vmem:[#allocation8 + $0x240] sm:$0xff]  ;;  %v7089_v41 = vcombine.low %v1215_v26, %v1219_v28 }
 0x2a4   : > { %v7091_v42 = vcombine.low %v1216_v29, %v1220_v31  ;;  %v7097_v50 = vcombine.low %v1223_v35, %v1227_v36  ;;  %v1275_v22 = vld [vmem:[#allocation8 + $0x3e0] sm:$0xff] }
 0x2a5   : > { %2162 = vmatmul.mubr.bf16.vlgmr.msra.gmra.mrb[4].mxu0 %v9614_v27  ;;  %2203 = vmatmul.mubr.bf16.vlgmr.msra.gmra.mrb[4].mxu1 %v9614_v27  ;;  %v7043_v27 = vcombine.low %v1168_v43, %v1172_v46  ;;  %v7098_v43 = vcombine.high %v1223_v35, %v1227_v36  ;;  %v1235_v46 = vld [vmem:[#allocation8 + $0x2a0] sm:$0xff] }
 0x2a6   : > { %2852 = vmatpush1.bf16.msra.mxu0 %v7025_v38  ;;  %2893 = vmatpush1.bf16.msra.mxu1 %v7027_v39  ;;  %v1224_v38 = vld [vmem:[#allocation8 + $0x248] sm:$0xff]  ;;  %v7092_v39 = vcombine.high %v1216_v29, %v1220_v31  ;;  %v1157_v31 = vld [vmem:[#allocation8 + $0x30] sm:$0xff] }
 0x2a7   : > { %2853 = vmatprep.subr.bf16.mxu0 %v7034_v40  ;;  %2894 = vmatprep.subr.bf16.mxu1 %v7036_v45  ;;  %v1228_v40 = vld [vmem:[#allocation8 + $0x268] sm:$0xff]  ;;  %v1231_v45 = vld [vmem:[#allocation8 + $0x280] sm:$0xff] }
 0x2a8   : > { %2883 = vmatprep.mubr.bf16.mxu0 %v9622_v44  ;;  %2924 = vmatprep.mubr.bf16.mxu1 %v9622_v44  ;;  %v7099_v51 = vcombine.low %v1224_v38, %v1228_v40  ;;  %v7106_v52 = vcombine.high %v1231_v45, %v1235_v46  ;;  %v7105_v57 = vcombine.low %v1231_v45, %v1235_v46 }
 0x2a9   : > { %v9630_v45 = vpack.c.bf16 %v9608_v0, %v9608_v0 }
 0x2aa   : > { %2854 = vmatpush1.bf16.msra.mxu0 %v7033_v47  ;;  %2895 = vmatpush1.bf16.msra.mxu1 %v7035_v48  ;;  %v1232_v47 = vld [vmem:[#allocation8 + $0x288] sm:$0xff]  ;;  %v7100_v48 = vcombine.high %v1224_v38, %v1228_v40  ;;  %v1165_v40 = vld [vmem:[#allocation8 + $0x70] sm:$0xff] }
 0x2ab   : > { %2855 = vmatprep.subr.bf16.mxu0 %v7042_v49  ;;  %2896 = vmatprep.subr.bf16.mxu1 %v7044_v53  ;;  %v1236_v49 = vld [vmem:[#allocation8 + $0x2a8] sm:$0xff]  ;;  %v1239_v53 = vld [vmem:[#allocation8 + $0x2c0] sm:$0xff] }
 0x2ac   : > { %v7107_v58 = vcombine.low %v1232_v47, %v1236_v49  ;;  %v7114_v59 = vcombine.high %v1239_v53, %v1243_v54  ;;  %v7113_v2 = vcombine.low %v1239_v53, %v1243_v54  ;;  %v1174_v53 = vld [vmem:[#allocation8 + $0xb8] sm:$0xff] }
 0x2ae   : > { %2856 = vmatpush1.bf16.msra.mxu0 %v7041_v55  ;;  %2897 = vmatpush1.bf16.msra.mxu1 %v7043_v27  ;;  %v1240_v55 = vld [vmem:[#allocation8 + $0x2c8] sm:$0xff]  ;;  %v7108_v27 = vcombine.high %v1232_v47, %v1236_v49  ;;  %v1169_v49 = vld [vmem:[#allocation8 + $0x90] sm:$0xff] }
 0x2af   : > { %2857 = vmatprep.subr.bf16.mxu0 %v7050_v56  ;;  %2898 = vmatprep.subr.bf16.mxu1 %v7052_v60  ;;  %v1244_v56 = vld [vmem:[#allocation8 + $0x2e8] sm:$0xff]  ;;  %v1247_v60 = vld [vmem:[#allocation8 + $0x300] sm:$0xff] }
 0x2b0   : > { %v7115_v3 = vcombine.low %v1240_v55, %v1244_v56  ;;  %v7122_v4 = vcombine.high %v1247_v60, %v1251_v61  ;;  %v7121_v10 = vcombine.low %v1247_v60, %v1251_v61 }
 0x2b2   : > { %2858 = vmatpush1.bf16.msra.mxu0 %v7049_v62  ;;  %2899 = vmatpush1.bf16.msra.mxu1 %v7051_v63  ;;  %v1248_v62 = vld [vmem:[#allocation8 + $0x308] sm:$0xff]  ;;  %v7116_v63 = vcombine.high %v1240_v55, %v1244_v56  ;;  %v1181_v56 = vld [vmem:[#allocation8 + $0xf0] sm:$0xff] }
 0x2b3   : > { %2859 = vmatprep.subr.bf16.mxu0 %v7058_v1  ;;  %2900 = vmatprep.subr.bf16.mxu1 %v7060_v5  ;;  %v1252_v1 = vld [vmem:[#allocation8 + $0x328] sm:$0xff]  ;;  %v1255_v5 = vld [vmem:[#allocation8 + $0x340] sm:$0xff] }
 0x2b4   : > { %v7123_v11 = vcombine.low %v1248_v62, %v1252_v1  ;;  %v7130_v12 = vcombine.high %v1255_v5, %v1259_v6  ;;  %v7129_v18 = vcombine.low %v1255_v5, %v1259_v6 }
 0x2b6   : > { %2860 = vmatpush1.bf16.msra.mxu0 %v7057_v7  ;;  %2901 = vmatpush1.bf16.msra.mxu1 %v7059_v8  ;;  %v1256_v7 = vld [vmem:[#allocation8 + $0x348] sm:$0xff]  ;;  %v7124_v8 = vcombine.high %v1248_v62, %v1252_v1  ;;  %v1189_v1 = vld [vmem:[#allocation8 + $0x130] sm:$0xff] }
 0x2b7   : > { %2861 = vmatprep.subr.bf16.mxu0 %v7066_v9  ;;  %2902 = vmatprep.subr.bf16.mxu1 %v7068_v13  ;;  %v1260_v9 = vld [vmem:[#allocation8 + $0x368] sm:$0xff]  ;;  %v1263_v13 = vld [vmem:[#allocation8 + $0x380] sm:$0xff] }
 0x2b8   : > { %v7131_v19 = vcombine.low %v1256_v7, %v1260_v9  ;;  %v7138_v20 = vcombine.high %v1263_v13, %v1267_v14  ;;  %v7137_v26 = vcombine.low %v1263_v13, %v1267_v14 }
 0x2ba   : > { %2862 = vmatpush1.bf16.msra.mxu0 %v7065_v15  ;;  %2903 = vmatpush1.bf16.msra.mxu1 %v7067_v16  ;;  %v1264_v15 = vld [vmem:[#allocation8 + $0x388] sm:$0xff]  ;;  %v7132_v16 = vcombine.high %v1256_v7, %v1260_v9  ;;  %v1197_v9 = vld [vmem:[#allocation8 + $0x170] sm:$0xff] }
 0x2bb   : > { %2863 = vmatprep.subr.bf16.mxu0 %v7074_v17  ;;  %2904 = vmatprep.subr.bf16.mxu1 %v7076_v21  ;;  %v1268_v17 = vld [vmem:[#allocation8 + $0x3a8] sm:$0xff]  ;;  %v1271_v21 = vld [vmem:[#allocation8 + $0x3c0] sm:$0xff] }
 0x2bc   : > { %v7139_v28 = vcombine.low %v1264_v15, %v1268_v17  ;;  %v7146_v29 = vcombine.high %v1271_v21, %v1275_v22  ;;  %v7145_v35 = vcombine.low %v1271_v21, %v1275_v22 }
 0x2be   : > { %2864 = vmatpush1.bf16.msra.mxu0 %v7073_v23  ;;  %2905 = vmatpush1.bf16.msra.mxu1 %v7075_v24  ;;  %v1272_v23 = vld [vmem:[#allocation8 + $0x3c8] sm:$0xff]  ;;  %v7140_v24 = vcombine.high %v1264_v15, %v1268_v17  ;;  %v1205_v17 = vld [vmem:[#allocation8 + $0x1b0] sm:$0xff] }
 0x2bf   : > { %2865 = vmatprep.subr.bf16.mxu0 %v7082_v25  ;;  %2906 = vmatprep.subr.bf16.mxu1 %v7084_v30  ;;  %v1276_v25 = vld [vmem:[#allocation8 + $0x3e8] sm:$0xff]  ;;  %v1153_v30 = vld [vmem:[#allocation8 + $0x10] sm:$0xff] }
 0x2c0   : > { %v7147_v36 = vcombine.low %v1272_v23, %v1276_v25  ;;  %v7030_v38 = vcombine.high %v1153_v30, %v1157_v31  ;;  %v7029_v46 = vcombine.low %v1153_v30, %v1157_v31 }
 0x2c2   : > { %2866 = vmatpush1.bf16.msra.mxu0 %v7081_v32  ;;  %2907 = vmatpush1.bf16.msra.mxu1 %v7083_v33  ;;  %v1154_v32 = vld [vmem:[#allocation8 + $0x18] sm:$0xff]  ;;  %v7148_v33 = vcombine.high %v1272_v23, %v1276_v25  ;;  %v1213_v25 = vld [vmem:[#allocation8 + $0x1f0] sm:$0xff] }
 0x2c3   : > { %2867 = vmatprep.subr.bf16.mxu0 %v7090_v34  ;;  %2908 = vmatprep.subr.bf16.mxu1 %v7092_v39  ;;  %v1158_v34 = vld [vmem:[#allocation8 + $0x38] sm:$0xff]  ;;  %v1161_v39 = vld [vmem:[#allocation8 + $0x50] sm:$0xff] }
 0x2c4   : > { %v7031_v47 = vcombine.low %v1154_v32, %v1158_v34  ;;  %v7037_v54 = vcombine.low %v1161_v39, %v1165_v40 }
 0x2c6   : > { %2868 = vmatpush1.bf16.msra.mxu0 %v7089_v41  ;;  %2909 = vmatpush1.bf16.msra.mxu1 %v7091_v42  ;;  %v7032_v41 = vcombine.high %v1154_v32, %v1158_v34  ;;  %v1162_v42 = vld [vmem:[#allocation8 + $0x58] sm:$0xff]  ;;  %v1221_v34 = vld [vmem:[#allocation8 + $0x230] sm:$0xff] }
 0x2c7   : > { %2869 = vmatprep.subr.bf16.mxu0 %v7098_v43  ;;  %2910 = vmatprep.subr.bf16.mxu1 %v7100_v48  ;;  %v1166_v43 = vld [vmem:[#allocation8 + $0x78] sm:$0xff]  ;;  %v7038_v48 = vcombine.high %v1161_v39, %v1165_v40 }
 0x2c8   : > { %v7039_v0 = vcombine.low %v1162_v42, %v1166_v43 }
 0x2ca   : > { %2870 = vmatpush1.bf16.msra.mxu0 %v7097_v50  ;;  %2911 = vmatpush1.bf16.msra.mxu1 %v7099_v51  ;;  %v1173_v50 = vld [vmem:[#allocation8 + $0xb0] sm:$0xff]  ;;  %v1170_v51 = vld [vmem:[#allocation8 + $0x98] sm:$0xff] }
 0x2cb   : > { %2871 = vmatprep.subr.bf16.mxu0 %v7106_v52  ;;  %2912 = vmatprep.subr.bf16.mxu1 %v7108_v27  ;;  %v7040_v52 = vcombine.high %v1162_v42, %v1166_v43  ;;  %v7046_v55 = vcombine.high %v1169_v49, %v1173_v50  ;;  %v1177_v27 = vld [vmem:[#allocation8 + $0xd0] sm:$0xff]  ;;  %v7045_v60 = vcombine.low %v1169_v49, %v1173_v50 }
 0x2cc   : > { %v7047_v61 = vcombine.low %v1170_v51, %v1174_v53  ;;  %v7054_v62 = vcombine.high %v1177_v27, %v1181_v56  ;;  %v7053_v5 = vcombine.low %v1177_v27, %v1181_v56  ;;  %v1225_v42 = vld [vmem:[#allocation8 + $0x250] sm:$0xff] }
 0x2cd   : > { %v1229_v43 = vld [vmem:[#allocation8 + $0x270] sm:$0xff] }
 0x2ce   : > { %2872 = vmatpush1.bf16.msra.mxu0 %v7105_v57  ;;  %2913 = vmatpush1.bf16.msra.mxu1 %v7107_v58  ;;  %v1178_v57 = vld [vmem:[#allocation8 + $0xd8] sm:$0xff]  ;;  %v7048_v58 = vcombine.high %v1170_v51, %v1174_v53  ;;  %v7102_v51 = vcombine.high %v1225_v42, %v1229_v43  ;;  %v1237_v53 = vld [vmem:[#allocation8 + $0x2b0] sm:$0xff]  ;;  %v7101_v27 = vcombine.low %v1225_v42, %v1229_v43  ;;  %v9636_v42 = vld.sshfl [vmem:[#allocation2] sm:$0x33 pattern:$0x76325410] }
 0x2cf   : > { %2873 = vmatprep.subr.bf16.mxu0 %v7114_v59  ;;  %2914 = vmatprep.subr.bf16.mxu1 %v7116_v63  ;;  %v1182_v59 = vld [vmem:[#allocation8 + $0xf8] sm:$0xff]  ;;  %v1185_v63 = vld [vmem:[#allocation8 + $0x110] sm:$0xff] }
 0x2d0   : > { %v7055_v6 = vcombine.low %v1178_v57, %v1182_v59  ;;  %v7062_v7 = vcombine.high %v1185_v63, %v1189_v1  ;;  %v7061_v13 = vcombine.low %v1185_v63, %v1189_v1 }
 0x2d2   : > { %2874 = vmatpush1.bf16.msra.mxu0 %v7113_v2  ;;  %2915 = vmatpush1.bf16.msra.mxu1 %v7115_v3  ;;  %v1186_v2 = vld [vmem:[#allocation8 + $0x118] sm:$0xff]  ;;  %v7056_v3 = vcombine.high %v1178_v57, %v1182_v59  ;;  %v1245_v59 = vld [vmem:[#allocation8 + $0x2f0] sm:$0xff] }
 0x2d3   : > { %2875 = vmatprep.subr.bf16.mxu0 %v7122_v4  ;;  %2916 = vmatprep.subr.bf16.mxu1 %v7124_v8  ;;  %v1190_v4 = vld [vmem:[#allocation8 + $0x138] sm:$0xff]  ;;  %v1193_v8 = vld [vmem:[#allocation8 + $0x150] sm:$0xff] }
 0x2d4   : > { %v7063_v14 = vcombine.low %v1186_v2, %v1190_v4  ;;  %v7070_v15 = vcombine.high %v1193_v8, %v1197_v9  ;;  %v7069_v21 = vcombine.low %v1193_v8, %v1197_v9 }
 0x2d6   : > { %2876 = vmatpush1.bf16.msra.mxu0 %v7121_v10  ;;  %2917 = vmatpush1.bf16.msra.mxu1 %v7123_v11  ;;  %v1194_v10 = vld [vmem:[#allocation8 + $0x158] sm:$0xff]  ;;  %v7064_v11 = vcombine.high %v1186_v2, %v1190_v4  ;;  %v1249_v4 = vld [vmem:[#allocation8 + $0x310] sm:$0xff] }
 0x2d7   : > { %2877 = vmatprep.subr.bf16.mxu0 %v7130_v12  ;;  %2918 = vmatprep.subr.bf16.mxu1 %v7132_v16  ;;  %v1198_v12 = vld [vmem:[#allocation8 + $0x178] sm:$0xff]  ;;  %v1201_v16 = vld [vmem:[#allocation8 + $0x190] sm:$0xff] }
 0x2d8   : > { %v7071_v22 = vcombine.low %v1194_v10, %v1198_v12  ;;  %v7078_v23 = vcombine.high %v1201_v16, %v1205_v17  ;;  %v7077_v30 = vcombine.low %v1201_v16, %v1205_v17 }
 0x2da   : > { %2878 = vmatpush1.bf16.msra.mxu0 %v7129_v18  ;;  %2919 = vmatpush1.bf16.msra.mxu1 %v7131_v19  ;;  %v1202_v18 = vld [vmem:[#allocation8 + $0x198] sm:$0xff]  ;;  %v7072_v19 = vcombine.high %v1194_v10, %v1198_v12  ;;  %v1257_v12 = vld [vmem:[#allocation8 + $0x350] sm:$0xff] }
 0x2db   : > { %2879 = vmatprep.subr.bf16.mxu0 %v7138_v20  ;;  %2920 = vmatprep.subr.bf16.mxu1 %v7140_v24  ;;  %v1206_v20 = vld [vmem:[#allocation8 + $0x1b8] sm:$0xff]  ;;  %v1209_v24 = vld [vmem:[#allocation8 + $0x1d0] sm:$0xff] }
 0x2dc   : > { %v7079_v31 = vcombine.low %v1202_v18, %v1206_v20  ;;  %v7086_v32 = vcombine.high %v1209_v24, %v1213_v25  ;;  %v7085_v39 = vcombine.low %v1209_v24, %v1213_v25 }
 0x2de   : > { %2880 = vmatpush1.bf16.msra.mxu0 %v7137_v26  ;;  %2921 = vmatpush1.bf16.msra.mxu1 %v7139_v28  ;;  %v1210_v26 = vld [vmem:[#allocation8 + $0x1d8] sm:$0xff]  ;;  %v7080_v28 = vcombine.high %v1202_v18, %v1206_v20  ;;  %v1265_v20 = vld [vmem:[#allocation8 + $0x390] sm:$0xff] }
 0x2df   : > { %2881 = vmatprep.subr.bf16.mxu0 %v7146_v29  ;;  %2922 = vmatprep.subr.bf16.mxu1 %v7148_v33  ;;  %v1214_v29 = vld [vmem:[#allocation8 + $0x1f8] sm:$0xff]  ;;  %v1217_v33 = vld [vmem:[#allocation8 + $0x210] sm:$0xff] }
 0x2e0   : > { %v7087_v40 = vcombine.low %v1210_v26, %v1214_v29  ;;  %v7093_v49 = vcombine.low %v1217_v33, %v1221_v34 }
 0x2e2   : > { %2882 = vmatpush1.bf16.msra.mxu0 %v7145_v35  ;;  %2923 = vmatpush1.bf16.msra.mxu1 %v7147_v36  ;;  %v1218_v35 = vld [vmem:[#allocation8 + $0x218] sm:$0xff]  ;;  %v7088_v36 = vcombine.high %v1210_v26, %v1214_v29  ;;  %v1273_v29 = vld [vmem:[#allocation8 + $0x3d0] sm:$0xff] }
 0x2e3   : > { %2933 = vmatprep.subr.bf16.mxu0 %v7030_v38  ;;  %2974 = vmatprep.subr.bf16.mxu1 %v7032_v41  ;;  %v1222_v38 = vld [vmem:[#allocation8 + $0x238] sm:$0xff]  ;;  %v7094_v41 = vcombine.high %v1217_v33, %v1221_v34 }
 0x2e4   : > { %v7095_v50 = vcombine.low %v1218_v35, %v1222_v38 }
 0x2e5   : > { %2884 = vmatmul.mubr.bf16.vlgmr.msra.gmra.mrb[8].mxu0 %v9630_v45  ;;  %2925 = vmatmul.mubr.bf16.vlgmr.msra.gmra.mrb[8].mxu1 %v9630_v45 }
 0x2e6   : > { %2934 = vmatpush1.bf16.msra.mxu0 %v7029_v46  ;;  %2975 = vmatpush1.bf16.msra.mxu1 %v7031_v47  ;;  %v1226_v46 = vld [vmem:[#allocation8 + $0x258] sm:$0xff]  ;;  %v7096_v47 = vcombine.high %v1218_v35, %v1222_v38  ;;  %v3015_v38 = vld [vmem:[#allocation11] sm:$0xff] }
 0x2e7   : > { %2935 = vmatprep.subr.bf16.mxu0 %v7038_v48  ;;  %2976 = vmatprep.subr.bf16.mxu1 %v7040_v52  ;;  %v1230_v48 = vld [vmem:[#allocation8 + $0x278] sm:$0xff]  ;;  %v1233_v52 = vld [vmem:[#allocation8 + $0x290] sm:$0xff] }
 0x2e8   : > { %2965 = vmatprep.mubr.bf16.mxu0 %v9622_v44  ;;  %3006 = vmatprep.mubr.bf16.mxu1 %v9622_v44  ;;  %v7103_v56 = vcombine.low %v1226_v46, %v1230_v48  ;;  %v7110_v57 = vcombine.high %v1233_v52, %v1237_v53  ;;  %v7109_v63 = vcombine.low %v1233_v52, %v1237_v53  ;;  %v3024_v52 = vld [vmem:[#allocation11 + $0x48] sm:$0xff] }
 0x2e9   : > { %v3028_v53 = vld [vmem:[#allocation11 + $0x68] sm:$0xff] }
 0x2ea   : > { %2936 = vmatpush1.bf16.msra.mxu0 %v7037_v54  ;;  %2977 = vmatpush1.bf16.msra.mxu1 %v7039_v0  ;;  %v1234_v54 = vld [vmem:[#allocation8 + $0x298] sm:$0xff]  ;;  %v7104_v0 = vcombine.high %v1226_v46, %v1230_v48 }
 0x2eb   : > { %2937 = vmatprep.subr.bf16.mxu0 %v7046_v55  ;;  %2978 = vmatprep.subr.bf16.mxu1 %v7048_v58  ;;  %v1238_v55 = vld [vmem:[#allocation8 + $0x2b8] sm:$0xff]  ;;  %v1241_v58 = vld [vmem:[#allocation8 + $0x2d0] sm:$0xff] }
 0x2ec   : > { %v7111_v1 = vcombine.low %v1234_v54, %v1238_v55  ;;  %v7118_v2 = vcombine.high %v1241_v58, %v1245_v59  ;;  %v7117_v8 = vcombine.low %v1241_v58, %v1245_v59  ;;  %v3032_v59 = vld [vmem:[#allocation11 + $0x88] sm:$0xff] }
 0x2ee   : > { %2938 = vmatpush1.bf16.msra.mxu0 %v7045_v60  ;;  %2979 = vmatpush1.bf16.msra.mxu1 %v7047_v61  ;;  %v1242_v60 = vld [vmem:[#allocation8 + $0x2d8] sm:$0xff]  ;;  %v7112_v61 = vcombine.high %v1234_v54, %v1238_v55 }
 0x2ef   : > { %2939 = vmatprep.subr.bf16.mxu0 %v7054_v62  ;;  %2980 = vmatprep.subr.bf16.mxu1 %v7056_v3  ;;  %v1246_v62 = vld [vmem:[#allocation8 + $0x2f8] sm:$0xff] }
 0x2f0   : > { %v7120_v3 = vcombine.high %v1242_v60, %v1246_v62  ;;  %v7119_v9 = vcombine.low %v1242_v60, %v1246_v62  ;;  %v3036_v60 = vld [vmem:[#allocation11 + $0xa8] sm:$0xff]  ;;  %v7163_v62 = vcombine.low %v3024_v52, %v3028_v53 }
 0x2f2   : > { %2940 = vmatpush1.bf16.msra.mxu0 %v7053_v5  ;;  %2981 = vmatpush1.bf16.msra.mxu1 %v7055_v6  ;;  %v1253_v5 = vld [vmem:[#allocation8 + $0x330] sm:$0xff]  ;;  %v1250_v6 = vld [vmem:[#allocation8 + $0x318] sm:$0xff] }
 0x2f3   : > { %2941 = vmatprep.subr.bf16.mxu0 %v7062_v7  ;;  %2982 = vmatprep.subr.bf16.mxu1 %v7064_v11  ;;  %v1254_v7 = vld [vmem:[#allocation8 + $0x338] sm:$0xff]  ;;  %v7126_v10 = vcombine.high %v1249_v4, %v1253_v5  ;;  %v7125_v16 = vcombine.low %v1249_v4, %v1253_v5  ;;  %v3040_v4 = vld [vmem:[#allocation11 + $0xc8] sm:$0xff] }
 0x2f4   : > { %v7128_v11 = vcombine.high %v1250_v6, %v1254_v7  ;;  %v7127_v17 = vcombine.low %v1250_v6, %v1254_v7  ;;  %v3044_v5 = vld [vmem:[#allocation11 + $0xe8] sm:$0xff]  ;;  %v7171_v7 = vcombine.low %v3032_v59, %v3036_v60 }
 0x2f6   : > { %2942 = vmatpush1.bf16.msra.mxu0 %v7061_v13  ;;  %2983 = vmatpush1.bf16.msra.mxu1 %v7063_v14  ;;  %v1261_v13 = vld [vmem:[#allocation8 + $0x370] sm:$0xff]  ;;  %v1258_v14 = vld [vmem:[#allocation8 + $0x358] sm:$0xff] }
 0x2f7   : > { %2943 = vmatprep.subr.bf16.mxu0 %v7070_v15  ;;  %2984 = vmatprep.subr.bf16.mxu1 %v7072_v19  ;;  %v1262_v15 = vld [vmem:[#allocation8 + $0x378] sm:$0xff]  ;;  %v7134_v18 = vcombine.high %v1257_v12, %v1261_v13  ;;  %v7133_v24 = vcombine.low %v1257_v12, %v1261_v13  ;;  %v3048_v12 = vld [vmem:[#allocation11 + $0x108] sm:$0xff] }
 0x2f8   : > { %v7136_v19 = vcombine.high %v1258_v14, %v1262_v15  ;;  %v7135_v25 = vcombine.low %v1258_v14, %v1262_v15  ;;  %v3052_v13 = vld [vmem:[#allocation11 + $0x128] sm:$0xff]  ;;  %v7179_v15 = vcombine.low %v3040_v4, %v3044_v5 }
 0x2fa   : > { %2944 = vmatpush1.bf16.msra.mxu0 %v7069_v21  ;;  %2985 = vmatpush1.bf16.msra.mxu1 %v7071_v22  ;;  %v1269_v21 = vld [vmem:[#allocation8 + $0x3b0] sm:$0xff]  ;;  %v1266_v22 = vld [vmem:[#allocation8 + $0x398] sm:$0xff] }
 0x2fb   : > { %2945 = vmatprep.subr.bf16.mxu0 %v7078_v23  ;;  %2986 = vmatprep.subr.bf16.mxu1 %v7080_v28  ;;  %v1270_v23 = vld [vmem:[#allocation8 + $0x3b8] sm:$0xff]  ;;  %v7142_v26 = vcombine.high %v1265_v20, %v1269_v21  ;;  %v7141_v33 = vcombine.low %v1265_v20, %v1269_v21  ;;  %v3056_v20 = vld [vmem:[#allocation11 + $0x148] sm:$0xff] }
 0x2fc   : > { %v7144_v28 = vcombine.high %v1266_v22, %v1270_v23  ;;  %v7143_v34 = vcombine.low %v1266_v22, %v1270_v23  ;;  %v3060_v21 = vld [vmem:[#allocation11 + $0x168] sm:$0xff]  ;;  %v7187_v23 = vcombine.low %v3048_v12, %v3052_v13 }
 0x2fe   : > { %2946 = vmatpush1.bf16.msra.mxu0 %v7077_v30  ;;  %2987 = vmatpush1.bf16.msra.mxu1 %v7079_v31  ;;  %v1277_v30 = vld [vmem:[#allocation8 + $0x3f0] sm:$0xff]  ;;  %v1274_v31 = vld [vmem:[#allocation8 + $0x3d8] sm:$0xff] }
 0x2ff   : > { %2947 = vmatprep.subr.bf16.mxu0 %v7086_v32  ;;  %2988 = vmatprep.subr.bf16.mxu1 %v7088_v36  ;;  %v1278_v32 = vld [vmem:[#allocation8 + $0x3f8] sm:$0xff]  ;;  %v7150_v35 = vcombine.high %v1273_v29, %v1277_v30  ;;  %v7149_v43 = vcombine.low %v1273_v29, %v1277_v30  ;;  %v3064_v29 = vld [vmem:[#allocation11 + $0x188] sm:$0xff] }
 0x300   : > { %v7152_v36 = vcombine.high %v1274_v31, %v1278_v32  ;;  %v7151_v46 = vcombine.low %v1274_v31, %v1278_v32  ;;  %v3068_v30 = vld [vmem:[#allocation11 + $0x1a8] sm:$0xff]  ;;  %v7195_v32 = vcombine.low %v3056_v20, %v3060_v21 }
 0x302   : > { %2948 = vmatpush1.bf16.msra.mxu0 %v7085_v39  ;;  %2989 = vmatpush1.bf16.msra.mxu1 %v7087_v40  ;;  %v3019_v39 = vld [vmem:[#allocation11 + $0x20] sm:$0xff]  ;;  %v3016_v40 = vld [vmem:[#allocation11 + $0x8] sm:$0xff] }
 0x303   : > { %2949 = vmatprep.subr.bf16.mxu0 %v7094_v41  ;;  %2990 = vmatprep.subr.bf16.mxu1 %v7096_v47  ;;  %v3020_v41 = vld [vmem:[#allocation11 + $0x28] sm:$0xff]  ;;  %v7154_v47 = vcombine.high %v3015_v38, %v3019_v39  ;;  %v7153_v54 = vcombine.low %v3015_v38, %v3019_v39  ;;  %v3075_v38 = vld [vmem:[#allocation11 + $0x1e0] sm:$0xff] }
 0x304   : > { %v7156_v48 = vcombine.high %v3016_v40, %v3020_v41 }
 0x306   : > { %2950 = vmatpush1.bf16.msra.mxu0 %v7093_v49  ;;  %2991 = vmatpush1.bf16.msra.mxu1 %v7095_v50  ;;  %v3023_v49 = vld [vmem:[#allocation11 + $0x40] sm:$0xff] }
 0x307   : > { %2951 = vmatprep.subr.bf16.mxu0 %v7102_v51  ;;  %2992 = vmatprep.subr.bf16.mxu1 %v7104_v0  ;;  %v3027_v50 = vld [vmem:[#allocation11 + $0x60] sm:$0xff]  ;;  %v1146_v51 = vcombine.high %v9636_v42, %v9636_v42  ;;  %v7155_v0 = vcombine.low %v3016_v40, %v3020_v41  ;;  %v3072_v41 = vld [vmem:[#allocation11 + $0x1c8] sm:$0xff] }
 0x308   : > { %v7162_v55 = vcombine.high %v3023_v49, %v3027_v50 }
 0x309   : > { %v9640_v58 = vpack.c.bf16 %v1146_v51, %v1146_v51  ;;  %v7203_v51 = vcombine.low %v3064_v29, %v3068_v30 }
 0x30a   : > { %2952 = vmatpush1.bf16.msra.mxu0 %v7101_v27  ;;  %2993 = vmatpush1.bf16.msra.mxu1 %v7103_v56  ;;  %v7164_v27 = vcombine.high %v3024_v52, %v3028_v53  ;;  %v3031_v56 = vld [vmem:[#allocation11 + $0x80] sm:$0xff] }
 0x30b   : > { %2953 = vmatprep.subr.bf16.mxu0 %v7110_v57  ;;  %2994 = vmatprep.subr.bf16.mxu1 %v7112_v61  ;;  %v3035_v57 = vld [vmem:[#allocation11 + $0xa0] sm:$0xff]  ;;  %v7161_v61 = vcombine.low %v3023_v49, %v3027_v50 }
 0x30c   : > { %v7169_v6 = vcombine.low %v3031_v56, %v3035_v57 }
 0x30e   : > { %2954 = vmatpush1.bf16.msra.mxu0 %v7109_v63  ;;  %2995 = vmatpush1.bf16.msra.mxu1 %v7111_v1  ;;  %v7170_v63 = vcombine.high %v3031_v56, %v3035_v57  ;;  %v7172_v1 = vcombine.high %v3032_v59, %v3036_v60  ;;  %v3084_v56 = vld [vmem:[#allocation11 + $0x228] sm:$0xff] }
 0x30f   : > { %2955 = vmatprep.subr.bf16.mxu0 %v7118_v2  ;;  %2996 = vmatprep.subr.bf16.mxu1 %v7120_v3  ;;  %v3039_v2 = vld [vmem:[#allocation11 + $0xc0] sm:$0xff] }
 0x310   : > { %v3043_v3 = vld [vmem:[#allocation11 + $0xe0] sm:$0xff] }
 0x311   : > { %v7177_v14 = vcombine.low %v3039_v2, %v3043_v3 }
 0x312   : > { %2956 = vmatpush1.bf16.msra.mxu0 %v7117_v8  ;;  %2997 = vmatpush1.bf16.msra.mxu1 %v7119_v9  ;;  %v7178_v8 = vcombine.high %v3039_v2, %v3043_v3  ;;  %v7180_v9 = vcombine.high %v3040_v4, %v3044_v5  ;;  %v3092_v2 = vld [vmem:[#allocation11 + $0x268] sm:$0xff] }
 0x313   : > { %2957 = vmatprep.subr.bf16.mxu0 %v7126_v10  ;;  %2998 = vmatprep.subr.bf16.mxu1 %v7128_v11  ;;  %v3047_v10 = vld [vmem:[#allocation11 + $0x100] sm:$0xff] }
 0x314   : > { %v3051_v11 = vld [vmem:[#allocation11 + $0x120] sm:$0xff] }
 0x315   : > { %v7185_v22 = vcombine.low %v3047_v10, %v3051_v11 }
 0x316   : > { %2958 = vmatpush1.bf16.msra.mxu0 %v7125_v16  ;;  %2999 = vmatpush1.bf16.msra.mxu1 %v7127_v17  ;;  %v7186_v16 = vcombine.high %v3047_v10, %v3051_v11  ;;  %v7188_v17 = vcombine.high %v3048_v12, %v3052_v13  ;;  %v3100_v10 = vld [vmem:[#allocation11 + $0x2a8] sm:$0xff] }
 0x317   : > { %2959 = vmatprep.subr.bf16.mxu0 %v7134_v18  ;;  %3000 = vmatprep.subr.bf16.mxu1 %v7136_v19  ;;  %v3055_v18 = vld [vmem:[#allocation11 + $0x140] sm:$0xff] }
 0x318   : > { %v3059_v19 = vld [vmem:[#allocation11 + $0x160] sm:$0xff] }
 0x319   : > { %v7193_v31 = vcombine.low %v3055_v18, %v3059_v19 }
 0x31a   : > { %2960 = vmatpush1.bf16.msra.mxu0 %v7133_v24  ;;  %3001 = vmatpush1.bf16.msra.mxu1 %v7135_v25  ;;  %v7194_v24 = vcombine.high %v3055_v18, %v3059_v19  ;;  %v7196_v25 = vcombine.high %v3056_v20, %v3060_v21  ;;  %v3108_v18 = vld [vmem:[#allocation11 + $0x2e8] sm:$0xff] }
 0x31b   : > { %2961 = vmatprep.subr.bf16.mxu0 %v7142_v26  ;;  %3002 = vmatprep.subr.bf16.mxu1 %v7144_v28  ;;  %v3063_v26 = vld [vmem:[#allocation11 + $0x180] sm:$0xff] }
 0x31c   : > { %v3067_v28 = vld [vmem:[#allocation11 + $0x1a0] sm:$0xff] }
 0x31e   : > { %2962 = vmatpush1.bf16.msra.mxu0 %v7141_v33  ;;  %3003 = vmatpush1.bf16.msra.mxu1 %v7143_v34  ;;  %v7202_v33 = vcombine.high %v3063_v26, %v3067_v28 }
 0x31f   : > { %2963 = vmatprep.subr.bf16.mxu0 %v7150_v35  ;;  %3004 = vmatprep.subr.bf16.mxu1 %v7152_v36  ;;  %v7204_v35 = vcombine.high %v3064_v29, %v3068_v30  ;;  %v3071_v36 = vld [vmem:[#allocation11 + $0x1c0] sm:$0xff] }
 0x320   : > { %v7210_v52 = vcombine.high %v3071_v36, %v3075_v38  ;;  %v7209_v57 = vcombine.low %v3071_v36, %v3075_v38  ;;  %v3124_v36 = vld [vmem:[#allocation11 + $0x368] sm:$0xff] }
 0x322   : > { %2964 = vmatpush1.bf16.msra.mxu0 %v7149_v43  ;;  %3005 = vmatpush1.bf16.msra.mxu1 %v7151_v46  ;;  %v3076_v43 = vld [vmem:[#allocation11 + $0x1e8] sm:$0xff] }
 0x323   : > { %3783 = vmatprep.subr.bf16.mxu0 %v7154_v47  ;;  %3824 = vmatprep.subr.bf16.mxu1 %v7156_v48  ;;  %v7201_v48 = vcombine.low %v3063_v26, %v3067_v28  ;;  %v7211_v59 = vcombine.low %v3072_v41, %v3076_v43  ;;  %v3116_v26 = vld [vmem:[#allocation11 + $0x328] sm:$0xff] }
 0x325   : > { %2966 = vmatmul.mubr.bf16.vlgmr.msra.gmra.mrb[12].mxu0 %v9630_v45  ;;  %3007 = vmatmul.mubr.bf16.vlgmr.msra.gmra.mrb[12].mxu1 %v9630_v45 }
 0x326   : > { %3784 = vmatpush1.bf16.msra.mxu0 %v7153_v54  ;;  %3825 = vmatpush1.bf16.msra.mxu1 %v7155_v0  ;;  %v7212_v54 = vcombine.high %v3072_v41, %v3076_v43  ;;  %v3079_v0 = vld [vmem:[#allocation11 + $0x200] sm:$0xff] }
 0x327   : > { %3785 = vmatprep.subr.bf16.mxu0 %v7162_v55  ;;  %3826 = vmatprep.subr.bf16.mxu1 %v7164_v27  ;;  %v3083_v55 = vld [vmem:[#allocation11 + $0x220] sm:$0xff]  ;;  %v3080_v27 = vld [vmem:[#allocation11 + $0x208] sm:$0xff] }
 0x328   : > { %3815 = vmatprep.mubr.bf16.mxu0 %v9640_v58  ;;  %3856 = vmatprep.mubr.bf16.mxu1 %v9640_v58  ;;  %v7218_v60 = vcombine.high %v3079_v0, %v3083_v55  ;;  %v7217_v3 = vcombine.low %v3079_v0, %v3083_v55  ;;  %v7219_v4 = vcombine.low %v3080_v27, %v3084_v56  ;;  %v3135_v55 = vld [vmem:[#allocation11 + $0x3c0] sm:$0xff] }
 0x32a   : > { %3786 = vmatpush1.bf16.msra.mxu0 %v7161_v61  ;;  %3827 = vmatpush1.bf16.msra.mxu1 %v7163_v62  ;;  %v7220_v61 = vcombine.high %v3080_v27, %v3084_v56  ;;  %v3087_v62 = vld [vmem:[#allocation11 + $0x240] sm:$0xff]  ;;  %v3136_v56 = vld [vmem:[#allocation11 + $0x3c8] sm:$0xff] }
 0x32b   : > { %3787 = vmatprep.subr.bf16.mxu0 %v7170_v63  ;;  %3828 = vmatprep.subr.bf16.mxu1 %v7172_v1  ;;  %v3091_v63 = vld [vmem:[#allocation11 + $0x260] sm:$0xff]  ;;  %v3088_v1 = vld [vmem:[#allocation11 + $0x248] sm:$0xff] }
 0x32c   : > { %v7226_v5 = vcombine.high %v3087_v62, %v3091_v63  ;;  %v7225_v11 = vcombine.low %v3087_v62, %v3091_v63  ;;  %v7227_v12 = vcombine.low %v3088_v1, %v3092_v2  ;;  %v3139_v27 = vld [vmem:[#allocation11 + $0x3e0] sm:$0xff]  ;;  %v3017_v63 = vld [vmem:[#allocation11 + $0x10] sm:$0xff] }
 0x32e   : > { %3788 = vmatpush1.bf16.msra.mxu0 %v7169_v6  ;;  %3829 = vmatpush1.bf16.msra.mxu1 %v7171_v7  ;;  %v7228_v6 = vcombine.high %v3088_v1, %v3092_v2  ;;  %v3095_v7 = vld [vmem:[#allocation11 + $0x280] sm:$0xff]  ;;  %v3021_v1 = vld [vmem:[#allocation11 + $0x30] sm:$0xff]  ;;  %v3018_v2 = vld [vmem:[#allocation11 + $0x18] sm:$0xff] }
 0x32f   : > { %3789 = vmatprep.subr.bf16.mxu0 %v7178_v8  ;;  %3830 = vmatprep.subr.bf16.mxu1 %v7180_v9  ;;  %v3099_v8 = vld [vmem:[#allocation11 + $0x2a0] sm:$0xff]  ;;  %v3096_v9 = vld [vmem:[#allocation11 + $0x288] sm:$0xff] }
 0x330   : > { %v7234_v13 = vcombine.high %v3095_v7, %v3099_v8  ;;  %v7233_v19 = vcombine.low %v3095_v7, %v3099_v8  ;;  %v7235_v20 = vcombine.low %v3096_v9, %v3100_v10  ;;  %v3025_v8 = vld [vmem:[#allocation11 + $0x50] sm:$0xff] }
 0x332   : > { %3790 = vmatpush1.bf16.msra.mxu0 %v7177_v14  ;;  %3831 = vmatpush1.bf16.msra.mxu1 %v7179_v15  ;;  %v7236_v14 = vcombine.high %v3096_v9, %v3100_v10  ;;  %v3103_v15 = vld [vmem:[#allocation11 + $0x2c0] sm:$0xff]  ;;  %v3029_v9 = vld [vmem:[#allocation11 + $0x70] sm:$0xff]  ;;  %v9656_v10 = vpack.c.bf16 %v9636_v42, %v9636_v42 }
 0x333   : > { %3791 = vmatprep.subr.bf16.mxu0 %v7186_v16  ;;  %3832 = vmatprep.subr.bf16.mxu1 %v7188_v17  ;;  %v3107_v16 = vld [vmem:[#allocation11 + $0x2e0] sm:$0xff]  ;;  %v3104_v17 = vld [vmem:[#allocation11 + $0x2c8] sm:$0xff]  ;;  %v7165_v42 = vcombine.low %v3025_v8, %v3029_v9 }
 0x334   : > { %v7242_v21 = vcombine.high %v3103_v15, %v3107_v16  ;;  %v7241_v28 = vcombine.low %v3103_v15, %v3107_v16  ;;  %v7243_v29 = vcombine.low %v3104_v17, %v3108_v18  ;;  %v7166_v15 = vcombine.high %v3025_v8, %v3029_v9 }
 0x336   : > { %3792 = vmatpush1.bf16.msra.mxu0 %v7185_v22  ;;  %3833 = vmatpush1.bf16.msra.mxu1 %v7187_v23  ;;  %v7244_v22 = vcombine.high %v3104_v17, %v3108_v18  ;;  %v3111_v23 = vld [vmem:[#allocation11 + $0x300] sm:$0xff]  ;;  %v3033_v17 = vld [vmem:[#allocation11 + $0x90] sm:$0xff] }
 0x337   : > { %3793 = vmatprep.subr.bf16.mxu0 %v7194_v24  ;;  %3834 = vmatprep.subr.bf16.mxu1 %v7196_v25  ;;  %v3115_v24 = vld [vmem:[#allocation11 + $0x320] sm:$0xff]  ;;  %v3112_v25 = vld [vmem:[#allocation11 + $0x308] sm:$0xff]  ;;  %v3037_v18 = vld [vmem:[#allocation11 + $0xb0] sm:$0xff] }
 0x338   : > { %v9646_v34 = vpop.f32.mrb[0].mxu0  ;;  %v9648_v39 = vpop.f32.mrb[0].mxu1  ;;  %v7250_v30 = vcombine.high %v3111_v23, %v3115_v24  ;;  %v7249_v38 = vcombine.low %v3111_v23, %v3115_v24  ;;  %v7251_v41 = vcombine.low %v3112_v25, %v3116_v26  ;;  %v3041_v24 = vld [vmem:[#allocation11 + $0xd0] sm:$0xff] }
 0x339   : > { %v9650_v40 = vpop.f32.mrb[1].mxu0  ;;  %v9652_v46 = vpop.f32.mrb[1].mxu1 }
 0x33a   : > { %v2085_v47 = vpop.f32.mrb[2].mxu0  ;;  %3794 = vmatpush1.bf16.msra.mxu0 %v7193_v31  ;;  %v2126_v49 = vpop.f32.mrb[2].mxu1  ;;  %3835 = vmatpush1.bf16.msra.mxu1 %v7195_v32  ;;  %v7252_v31 = vcombine.high %v3112_v25, %v3116_v26  ;;  %v3119_v32 = vld [vmem:[#allocation11 + $0x340] sm:$0xff]  ;;  %v3045_v25 = vld [vmem:[#allocation11 + $0xf0] sm:$0xff]  ;;  %v3042_v26 = vld [vmem:[#allocation11 + $0xd8] sm:$0xff] }
 0x33b   : > { %v2086_v50 = vpop.f32.mrb[3].mxu0  ;;  %3795 = vmatprep.subr.bf16.mxu0 %v7202_v33  ;;  %v2127_v53 = vpop.f32.mrb[3].mxu1  ;;  %3836 = vmatprep.subr.bf16.mxu1 %v7204_v35  ;;  %v3123_v33 = vld [vmem:[#allocation11 + $0x360] sm:$0xff]  ;;  %v3120_v35 = vld [vmem:[#allocation11 + $0x348] sm:$0xff] }
 0x33c   : > { %v7258_v43 = vcombine.high %v3119_v32, %v3123_v33  ;;  %v7260_v47 = vcombine.high %v3120_v35, %v3124_v36  ;;  %v3131_v49 = vld [vmem:[#allocation11 + $0x3a0] sm:$0xff]  ;;  %v3128_v50 = vld [vmem:[#allocation11 + $0x388] sm:$0xff]  ;;  %v7259_v53 = vcombine.low %v3120_v35, %v3124_v36  ;;  %v3053_v35 = vld [vmem:[#allocation11 + $0x130] sm:$0xff] }
 0x33d   : > { %v3050_v36 = vld [vmem:[#allocation11 + $0x118] sm:$0xff] }
 0x33e   : > { %3796 = vmatpush1.bf16.msra.mxu0 %v7201_v48  ;;  %3837 = vmatpush1.bf16.msra.mxu1 %v7203_v51  ;;  %v3127_v48 = vld [vmem:[#allocation11 + $0x380] sm:$0xff]  ;;  %v3132_v51 = vld [vmem:[#allocation11 + $0x3a8] sm:$0xff] }
 0x33f   : > { %3797 = vmatprep.subr.bf16.mxu0 %v7210_v52  ;;  %3838 = vmatprep.subr.bf16.mxu1 %v7212_v54  ;;  %v7257_v52 = vcombine.low %v3119_v32, %v3123_v33  ;;  %v7266_v54 = vcombine.high %v3127_v48, %v3131_v49  ;;  %v7268_v0 = vcombine.high %v3128_v50, %v3132_v51  ;;  %v3049_v33 = vld [vmem:[#allocation11 + $0x110] sm:$0xff] }
 0x342   : > { %3798 = vmatpush1.bf16.msra.mxu0 %v7209_v57  ;;  %3839 = vmatpush1.bf16.msra.mxu1 %v7211_v59  ;;  %v3140_v57 = vld [vmem:[#allocation11 + $0x3e8] sm:$0xff]  ;;  %v7265_v59 = vcombine.low %v3127_v48, %v3131_v49  ;;  %v3057_v48 = vld [vmem:[#allocation11 + $0x150] sm:$0xff] }
 0x343   : > { %3799 = vmatprep.subr.bf16.mxu0 %v7218_v60  ;;  %3840 = vmatprep.subr.bf16.mxu1 %v7220_v61  ;;  %v7267_v60 = vcombine.low %v3128_v50, %v3132_v51  ;;  %v7274_v61 = vcombine.high %v3135_v55, %v3139_v27  ;;  %v7276_v62 = vcombine.high %v3136_v56, %v3140_v57  ;;  %v3061_v49 = vld [vmem:[#allocation11 + $0x170] sm:$0xff]  ;;  %v3058_v50 = vld [vmem:[#allocation11 + $0x158] sm:$0xff] }
 0x344   : > { %v3062_v51 = vld [vmem:[#allocation11 + $0x178] sm:$0xff] }
 0x346   : > { %3800 = vmatpush1.bf16.msra.mxu0 %v7217_v3  ;;  %3841 = vmatpush1.bf16.msra.mxu1 %v7219_v4  ;;  %v3022_v3 = vld [vmem:[#allocation11 + $0x38] sm:$0xff]  ;;  %v7273_v4 = vcombine.low %v3135_v55, %v3139_v27  ;;  %v3065_v55 = vld [vmem:[#allocation11 + $0x190] sm:$0xff] }
 0x347   : > { %3801 = vmatprep.subr.bf16.mxu0 %v7226_v5  ;;  %3842 = vmatprep.subr.bf16.mxu1 %v7228_v6  ;;  %v7275_v5 = vcombine.low %v3136_v56, %v3140_v57  ;;  %v7158_v6 = vcombine.high %v3017_v63, %v3021_v1  ;;  %v7160_v7 = vcombine.high %v3018_v2, %v3022_v3  ;;  %v3069_v27 = vld [vmem:[#allocation11 + $0x1b0] sm:$0xff]  ;;  %v3066_v56 = vld [vmem:[#allocation11 + $0x198] sm:$0xff] }
 0x348   : > { %v3070_v57 = vld [vmem:[#allocation11 + $0x1b8] sm:$0xff]  ;;  %v7205_v9 = vcombine.low %v3065_v55, %v3069_v27 }
 0x34a   : > { %3802 = vmatpush1.bf16.msra.mxu0 %v7225_v11  ;;  %3843 = vmatpush1.bf16.msra.mxu1 %v7227_v12  ;;  %v3026_v11 = vld [vmem:[#allocation11 + $0x58] sm:$0xff] }
 0x34b   : > { %3803 = vmatprep.subr.bf16.mxu0 %v7234_v13  ;;  %3844 = vmatprep.subr.bf16.mxu1 %v7236_v14  ;;  %v3030_v12 = vld [vmem:[#allocation11 + $0x78] sm:$0xff]  ;;  %v7157_v13 = vcombine.low %v3017_v63, %v3021_v1  ;;  %v7159_v14 = vcombine.low %v3018_v2, %v3022_v3  ;;  %v7208_v63 = vcombine.high %v3066_v56, %v3070_v57  ;;  %v3073_v1 = vld [vmem:[#allocation11 + $0x1d0] sm:$0xff] }
 0x34c   : > { %v7168_v16 = vcombine.high %v3026_v11, %v3030_v12  ;;  %v3077_v2 = vld [vmem:[#allocation11 + $0x1f0] sm:$0xff] }
 0x34e   : > { %3804 = vmatpush1.bf16.msra.mxu0 %v7233_v19  ;;  %3845 = vmatpush1.bf16.msra.mxu1 %v7235_v20  ;;  %v3034_v19 = vld [vmem:[#allocation11 + $0x98] sm:$0xff] }
 0x34f   : > { %3805 = vmatprep.subr.bf16.mxu0 %v7242_v21  ;;  %3846 = vmatprep.subr.bf16.mxu1 %v7244_v22  ;;  %v3038_v20 = vld [vmem:[#allocation11 + $0xb8] sm:$0xff]  ;;  %v7167_v21 = vcombine.low %v3026_v11, %v3030_v12  ;;  %v7174_v22 = vcombine.high %v3033_v17, %v3037_v18 }
 0x350   : > { %v7176_v23 = vcombine.high %v3034_v19, %v3038_v20 }
 0x352   : > { %3806 = vmatpush1.bf16.msra.mxu0 %v7241_v28  ;;  %3847 = vmatpush1.bf16.msra.mxu1 %v7243_v29  ;;  %v3046_v28 = vld [vmem:[#allocation11 + $0xf8] sm:$0xff]  ;;  %v7173_v29 = vcombine.low %v3033_v17, %v3037_v18  ;;  %v3081_v17 = vld [vmem:[#allocation11 + $0x210] sm:$0xff] }
 0x353   : > { %3807 = vmatprep.subr.bf16.mxu0 %v7250_v30  ;;  %3848 = vmatprep.subr.bf16.mxu1 %v7252_v31  ;;  %v7175_v30 = vcombine.low %v3034_v19, %v3038_v20  ;;  %v7182_v31 = vcombine.high %v3041_v24, %v3045_v25  ;;  %v7184_v32 = vcombine.high %v3042_v26, %v3046_v28  ;;  %v3085_v18 = vld [vmem:[#allocation11 + $0x230] sm:$0xff]  ;;  %v3082_v19 = vld [vmem:[#allocation11 + $0x218] sm:$0xff] }
 0x354   : > { %v3086_v20 = vld [vmem:[#allocation11 + $0x238] sm:$0xff] }
 0x356   : > { %3808 = vmatpush1.bf16.msra.mxu0 %v7249_v38  ;;  %3849 = vmatpush1.bf16.msra.mxu1 %v7251_v41  ;;  %v3054_v38 = vld [vmem:[#allocation11 + $0x138] sm:$0xff]  ;;  %v7181_v41 = vcombine.low %v3041_v24, %v3045_v25  ;;  %v3089_v24 = vld [vmem:[#allocation11 + $0x250] sm:$0xff] }
 0x357   : > { %3809 = vmatprep.subr.bf16.mxu0 %v7258_v43  ;;  %3850 = vmatprep.subr.bf16.mxu1 %v7260_v47  ;;  %v7183_v43 = vcombine.low %v3042_v26, %v3046_v28  ;;  %v7190_v47 = vcombine.high %v3049_v33, %v3053_v35  ;;  %v3093_v25 = vld [vmem:[#allocation11 + $0x270] sm:$0xff]  ;;  %v3090_v26 = vld [vmem:[#allocation11 + $0x258] sm:$0xff] }
 0x358   : > { %v3094_v28 = vld [vmem:[#allocation11 + $0x278] sm:$0xff] }
 0x35a   : > { %3810 = vmatpush1.bf16.msra.mxu0 %v7257_v52  ;;  %3851 = vmatpush1.bf16.msra.mxu1 %v7259_v53  ;;  %v7189_v52 = vcombine.low %v3049_v33, %v3053_v35  ;;  %v7191_v53 = vcombine.low %v3050_v36, %v3054_v38  ;;  %v3097_v33 = vld [vmem:[#allocation11 + $0x290] sm:$0xff] }
 0x35b   : > { %3811 = vmatprep.subr.bf16.mxu0 %v7266_v54  ;;  %3852 = vmatprep.subr.bf16.mxu1 %v7268_v0  ;;  %v7198_v54 = vcombine.high %v3057_v48, %v3061_v49  ;;  %v7200_v0 = vcombine.high %v3058_v50, %v3062_v51  ;;  %v3101_v35 = vld [vmem:[#allocation11 + $0x2b0] sm:$0xff] }
 0x35e   : > { %3812 = vmatpush1.bf16.msra.mxu0 %v7265_v59  ;;  %3853 = vmatpush1.bf16.msra.mxu1 %v7267_v60  ;;  %v7197_v59 = vcombine.low %v3057_v48, %v3061_v49  ;;  %v7199_v60 = vcombine.low %v3058_v50, %v3062_v51  ;;  %v3105_v48 = vld [vmem:[#allocation11 + $0x2d0] sm:$0xff]  ;;  %v3106_v50 = vld [vmem:[#allocation11 + $0x2d8] sm:$0xff] }
 0x35f   : > { %3813 = vmatprep.subr.bf16.mxu0 %v7274_v61  ;;  %3854 = vmatprep.subr.bf16.mxu1 %v7276_v62  ;;  %v7206_v61 = vcombine.high %v3065_v55, %v3069_v27  ;;  %v3109_v49 = vld [vmem:[#allocation11 + $0x2f0] sm:$0xff]  ;;  %v3110_v51 = vld [vmem:[#allocation11 + $0x2f8] sm:$0xff] }
 0x360   : > { %v3113_v55 = vld [vmem:[#allocation11 + $0x310] sm:$0xff] }
 0x361   : > { %v3117_v27 = vld [vmem:[#allocation11 + $0x330] sm:$0xff] }
 0x362   : > { %3814 = vmatpush1.bf16.msra.mxu0 %v7273_v4  ;;  %3855 = vmatpush1.bf16.msra.mxu1 %v7275_v5  ;;  %v3074_v5 = vld [vmem:[#allocation11 + $0x1d8] sm:$0xff] }
 0x363   : > { %3865 = vmatprep.subr.bf16.mxu0 %v7158_v6  ;;  %3906 = vmatprep.subr.bf16.mxu1 %v7160_v7  ;;  %v3078_v6 = vld [vmem:[#allocation11 + $0x1f8] sm:$0xff] }
 0x365   : > { %3816 = vmatmul.mubr.bf16.vlgmr.msra.gmra.mrb[16].mxu0 %v9656_v10  ;;  %3857 = vmatmul.mubr.bf16.vlgmr.msra.gmra.mrb[16].mxu1 %v9656_v10 }
 0x366   : > { %3866 = vmatpush1.bf16.msra.mxu0 %v7157_v13  ;;  %3907 = vmatpush1.bf16.msra.mxu1 %v7159_v14  ;;  %v7207_v13 = vcombine.low %v3066_v56, %v3070_v57  ;;  %v7214_v14 = vcombine.high %v3073_v1, %v3077_v2  ;;  %v3114_v56 = vld [vmem:[#allocation11 + $0x318] sm:$0xff] }
 0x367   : > { %3867 = vmatprep.subr.bf16.mxu0 %v7166_v15  ;;  %3908 = vmatprep.subr.bf16.mxu1 %v7168_v16  ;;  %v7216_v16 = vcombine.high %v3074_v5, %v3078_v6  ;;  %v3118_v57 = vld [vmem:[#allocation11 + $0x338] sm:$0xff] }
 0x368   : > { %3897 = vmatprep.mubr.bf16.mxu0 %v9640_v58  ;;  %3938 = vmatprep.mubr.bf16.mxu1 %v9640_v58  ;;  %v7192_v58 = vcombine.high %v3050_v36, %v3054_v38  ;;  %v3098_v36 = vld [vmem:[#allocation11 + $0x298] sm:$0xff] }
 0x369   : > { %v3102_v38 = vld [vmem:[#allocation11 + $0x2b8] sm:$0xff] }
 0x36a   : > { %3868 = vmatpush1.bf16.msra.mxu0 %v7165_v42  ;;  %3909 = vmatpush1.bf16.msra.mxu1 %v7167_v21  ;;  %v7213_v42 = vcombine.low %v3073_v1, %v3077_v2  ;;  %v7215_v21 = vcombine.low %v3074_v5, %v3078_v6  ;;  %v3121_v1 = vld [vmem:[#allocation11 + $0x350] sm:$0xff]  ;;  %v3122_v5 = vld [vmem:[#allocation11 + $0x358] sm:$0xff] }
 0x36b   : > { %3869 = vmatprep.subr.bf16.mxu0 %v7174_v22  ;;  %3910 = vmatprep.subr.bf16.mxu1 %v7176_v23  ;;  %v7222_v22 = vcombine.high %v3081_v17, %v3085_v18  ;;  %v7224_v23 = vcombine.high %v3082_v19, %v3086_v20  ;;  %v3125_v2 = vld [vmem:[#allocation11 + $0x370] sm:$0xff]  ;;  %v3126_v6 = vld [vmem:[#allocation11 + $0x378] sm:$0xff] }
 0x36e   : > { %3870 = vmatpush1.bf16.msra.mxu0 %v7173_v29  ;;  %3911 = vmatpush1.bf16.msra.mxu1 %v7175_v30  ;;  %v7221_v29 = vcombine.low %v3081_v17, %v3085_v18  ;;  %v7223_v30 = vcombine.low %v3082_v19, %v3086_v20  ;;  %v7261_v17 = vcombine.low %v3121_v1, %v3125_v2 }
 0x36f   : > { %3871 = vmatprep.subr.bf16.mxu0 %v7182_v31  ;;  %3912 = vmatprep.subr.bf16.mxu1 %v7184_v32  ;;  %v7230_v31 = vcombine.high %v3089_v24, %v3093_v25  ;;  %v7232_v32 = vcombine.high %v3090_v26, %v3094_v28  ;;  %v7263_v18 = vcombine.low %v3122_v5, %v3126_v6 }
 0x372   : > { %3872 = vmatpush1.bf16.msra.mxu0 %v7181_v41  ;;  %3913 = vmatpush1.bf16.msra.mxu1 %v7183_v43  ;;  %v7229_v41 = vcombine.low %v3089_v24, %v3093_v25  ;;  %v7231_v43 = vcombine.low %v3090_v26, %v3094_v28 }
 0x373   : > { %3873 = vmatprep.subr.bf16.mxu0 %v7190_v47  ;;  %3914 = vmatprep.subr.bf16.mxu1 %v7192_v58  ;;  %v7238_v47 = vcombine.high %v3097_v33, %v3101_v35  ;;  %v7240_v58 = vcombine.high %v3098_v36, %v3102_v38 }
 0x376   : > { %3874 = vmatpush1.bf16.msra.mxu0 %v7189_v52  ;;  %3915 = vmatpush1.bf16.msra.mxu1 %v7191_v53  ;;  %v7237_v52 = vcombine.low %v3097_v33, %v3101_v35  ;;  %v7239_v53 = vcombine.low %v3098_v36, %v3102_v38 }
 0x377   : > { %3875 = vmatprep.subr.bf16.mxu0 %v7198_v54  ;;  %3916 = vmatprep.subr.bf16.mxu1 %v7200_v0  ;;  %v7246_v54 = vcombine.high %v3105_v48, %v3109_v49  ;;  %v7248_v0 = vcombine.high %v3106_v50, %v3110_v51 }
 0x378   : > { %v9662_v62 = vpop.f32.mrb[4].mxu0  ;;  %v9664_v3 = vpop.f32.mrb[4].mxu1 }
 0x379   : > { %v9666_v4 = vpop.f32.mrb[5].mxu0  ;;  %v9668_v7 = vpop.f32.mrb[5].mxu1 }
 0x37a   : > { %v2167_v8 = vpop.f32.mrb[6].mxu0  ;;  %3876 = vmatpush1.bf16.msra.mxu0 %v7197_v59  ;;  %v2208_v11 = vpop.f32.mrb[6].mxu1  ;;  %3917 = vmatpush1.bf16.msra.mxu1 %v7199_v60  ;;  %v7245_v59 = vcombine.low %v3105_v48, %v3109_v49  ;;  %v7247_v60 = vcombine.low %v3106_v50, %v3110_v51  ;;  %v7867_v49 = vld [vmem:[#allocation14] ss:$16 sps:$4 sm:$0xff]   ;;  %v7869_v50 = vld [vmem:[#allocation14 + $0x4] ss:$16 sps:$4 sm:$0xff]  }
 0x37b   : > { %v2168_v12 = vpop.f32.mrb[7].mxu0  ;;  %3877 = vmatprep.subr.bf16.mxu0 %v7206_v61  ;;  %v2209_v15 = vpop.f32.mrb[7].mxu1  ;;  %3918 = vmatprep.subr.bf16.mxu1 %v7208_v63  ;;  %v7254_v61 = vcombine.high %v3113_v55, %v3117_v27  ;;  %v7256_v63 = vcombine.high %v3114_v56, %v3118_v57  ;;  %v7253_v8 = vcombine.low %v3113_v55, %v3117_v27  ;;  %v7872_v51 = vld [vmem:[#allocation14 + $0xc] ss:$16 sps:$4 sm:$0xff]   ;;  %v7882_v55 = vld [vmem:[#allocation14 + $0x48] ss:$16 sps:$4 sm:$0xff]  }
 0x37c   : > { %v7262_v11 = vcombine.high %v3121_v1, %v3125_v2  ;;  %v7264_v12 = vcombine.high %v3122_v5, %v3126_v6  ;;  %v3130_v15 = vld [vmem:[#allocation11 + $0x398] sm:$0xff]  ;;  %v7887_v27 = vld [vmem:[#allocation14 + $0x64] ss:$16 sps:$4 sm:$0xff]   ;;  %v7897_v6 = vld [vmem:[#allocation14 + $0xa0] ss:$16 sps:$4 sm:$0xff]  }
 0x37d   : > { %v7894_v1 = vld [vmem:[#allocation14 + $0x88] ss:$16 sps:$4 sm:$0xff]   ;;  %v7899_v2 = vld [vmem:[#allocation14 + $0xa4] ss:$16 sps:$4 sm:$0xff]   ;;  %v7902_v5 = vld [vmem:[#allocation14 + $0xac] ss:$16 sps:$4 sm:$0xff]  }
 0x37e   : > { %3878 = vmatpush1.bf16.msra.mxu0 %v7205_v9  ;;  %3919 = vmatpush1.bf16.msra.mxu1 %v7207_v13  ;;  %v7255_v9 = vcombine.low %v3114_v56, %v3118_v57  ;;  %v3129_v13 = vld [vmem:[#allocation11 + $0x390] sm:$0xff]  ;;  %v7890_v56 = vld [vmem:[#allocation14 + $0x6c] ss:$16 sps:$4 sm:$0xff]  }
 0x37f   : > { %3879 = vmatprep.subr.bf16.mxu0 %v7214_v14  ;;  %3920 = vmatprep.subr.bf16.mxu1 %v7216_v16  ;;  %v3133_v14 = vld [vmem:[#allocation11 + $0x3b0] sm:$0xff]  ;;  %v3134_v16 = vld [vmem:[#allocation11 + $0x3b8] sm:$0xff] }
 0x380   : > { %v7270_v19 = vcombine.high %v3129_v13, %v3133_v14  ;;  %v7272_v20 = vcombine.high %v3130_v15, %v3134_v16  ;;  %v7269_v24 = vcombine.low %v3129_v13, %v3133_v14  ;;  %v7271_v25 = vcombine.low %v3130_v15, %v3134_v16  ;;  %v7885_v57 = vld [vmem:[#allocation14 + $0x60] ss:$16 sps:$4 sm:$0xff]   ;;  %v7906_v13 = vld [vmem:[#allocation14 + $0xc8] ss:$16 sps:$4 sm:$0xff]   ;;  %v7911_v15 = vld [vmem:[#allocation14 + $0xe4] ss:$16 sps:$4 sm:$0xff]  }
 0x381   : > { %v7914_v16 = vld [vmem:[#allocation14 + $0xec] ss:$16 sps:$4 sm:$0xff]  }
 0x382   : > { %3880 = vmatpush1.bf16.msra.mxu0 %v7213_v42  ;;  %3921 = vmatpush1.bf16.msra.mxu1 %v7215_v21  ;;  %v3137_v42 = vld [vmem:[#allocation11 + $0x3d0] sm:$0xff] }
 0x383   : > { %3881 = vmatprep.subr.bf16.mxu0 %v7222_v22  ;;  %3922 = vmatprep.subr.bf16.mxu1 %v7224_v23  ;;  %v3141_v21 = vld [vmem:[#allocation11 + $0x3f0] sm:$0xff]  ;;  %v3138_v22 = vld [vmem:[#allocation11 + $0x3d8] sm:$0xff] }
 0x384   : > { %v3142_v23 = vld [vmem:[#allocation11 + $0x3f8] sm:$0xff]  ;;  %v7278_v26 = vcombine.high %v3137_v42, %v3141_v21 }
 0x385   : > { %v7280_v28 = vcombine.high %v3138_v22, %v3142_v23 }
 0x386   : > { %3882 = vmatpush1.bf16.msra.mxu0 %v7221_v29  ;;  %3923 = vmatpush1.bf16.msra.mxu1 %v7223_v30  ;;  %v7277_v29 = vcombine.low %v3137_v42, %v3141_v21  ;;  %v7279_v30 = vcombine.low %v3138_v22, %v3142_v23 }
 0x387   : > { %3883 = vmatprep.subr.bf16.mxu0 %v7230_v31  ;;  %3924 = vmatprep.subr.bf16.mxu1 %v7232_v32 }
 0x38a   : > { %3884 = vmatpush1.bf16.msra.mxu0 %v7229_v41  ;;  %3925 = vmatpush1.bf16.msra.mxu1 %v7231_v43 }
 0x38b   : > { %3885 = vmatprep.subr.bf16.mxu0 %v7238_v47  ;;  %3926 = vmatprep.subr.bf16.mxu1 %v7240_v58 }
 0x38e   : > { %3886 = vmatpush1.bf16.msra.mxu0 %v7237_v52  ;;  %3927 = vmatpush1.bf16.msra.mxu1 %v7239_v53  ;;  %v7875_v52 = vld [vmem:[#allocation14 + $0x24] ss:$16 sps:$4 sm:$0xff]   ;;  %v7878_v53 = vld [vmem:[#allocation14 + $0x2c] ss:$16 sps:$4 sm:$0xff]  }
 0x38f   : > { %3887 = vmatprep.subr.bf16.mxu0 %v7246_v54  ;;  %3928 = vmatprep.subr.bf16.mxu1 %v7248_v0  ;;  %v7881_v54 = vld [vmem:[#allocation14 + $0x44] ss:$16 sps:$4 sm:$0xff]   ;;  %v7879_v0 = vld [vmem:[#allocation14 + $0x40] ss:$16 sps:$4 sm:$0xff]  }
 0x392   : > { %3888 = vmatpush1.bf16.msra.mxu0 %v7245_v59  ;;  %3929 = vmatpush1.bf16.msra.mxu1 %v7247_v60  ;;  %v7888_v59 = vld [vmem:[#allocation14 + $0x68] ss:$16 sps:$4 sm:$0xff]   ;;  %v7893_v60 = vld [vmem:[#allocation14 + $0x84] ss:$16 sps:$4 sm:$0xff]  }
 0x393   : > { %3889 = vmatprep.subr.bf16.mxu0 %v7254_v61  ;;  %3930 = vmatprep.subr.bf16.mxu1 %v7256_v63  ;;  %v7896_v61 = vld [vmem:[#allocation14 + $0x8c] ss:$16 sps:$4 sm:$0xff]   ;;  %v7891_v63 = vld [vmem:[#allocation14 + $0x80] ss:$16 sps:$4 sm:$0xff]  }
 0x396   : > { %3890 = vmatpush1.bf16.msra.mxu0 %v7253_v8  ;;  %3931 = vmatpush1.bf16.msra.mxu1 %v7255_v9  ;;  %v7900_v8 = vld [vmem:[#allocation14 + $0xa8] ss:$16 sps:$4 sm:$0xff]   ;;  %v7905_v9 = vld [vmem:[#allocation14 + $0xc4] ss:$16 sps:$4 sm:$0xff]  }
 0x397   : > { %3891 = vmatprep.subr.bf16.mxu0 %v7262_v11  ;;  %3932 = vmatprep.subr.bf16.mxu1 %v7264_v12  ;;  %v7908_v11 = vld [vmem:[#allocation14 + $0xcc] ss:$16 sps:$4 sm:$0xff]   ;;  %v7903_v12 = vld [vmem:[#allocation14 + $0xc0] ss:$16 sps:$4 sm:$0xff]  }
 0x39a   : > { %3892 = vmatpush1.bf16.msra.mxu0 %v7261_v17  ;;  %3933 = vmatpush1.bf16.msra.mxu1 %v7263_v18 }
 0x39b   : > { %3893 = vmatprep.subr.bf16.mxu0 %v7270_v19  ;;  %3934 = vmatprep.subr.bf16.mxu1 %v7272_v20  ;;  %v7909_v20 = vld [vmem:[#allocation14 + $0xe0] ss:$16 sps:$4 sm:$0xff]  }
 0x39e   : > { %3894 = vmatpush1.bf16.msra.mxu0 %v7269_v24  ;;  %3935 = vmatpush1.bf16.msra.mxu1 %v7271_v25  ;;  %v7912_v24 = vld [vmem:[#allocation14 + $0xe8] ss:$16 sps:$4 sm:$0xff]  }
 0x39f   : > { %3895 = vmatprep.subr.bf16.mxu0 %v7278_v26  ;;  %3936 = vmatprep.subr.bf16.mxu1 %v7280_v28 }
 0x3a2   : > { %3896 = vmatpush1.bf16.msra.mxu0 %v7277_v29  ;;  %3937 = vmatpush1.bf16.msra.mxu1 %v7279_v30  ;;  %v7917_v29 = vld [vmem:[#allocation14 + $0x104] ss:$16 sps:$4 sm:$0xff]   ;;  %v7920_v30 = vld [vmem:[#allocation14 + $0x10c] ss:$16 sps:$4 sm:$0xff]  }
 0x3a3   : > { %4515 = vmatprep.subr.bf16.mxu0 %v7869_v50  ;;  %4556 = vmatprep.subr.bf16.mxu1 %v7872_v51  ;;  %v7933_v50 = vld [vmem:[#allocation14 + $0x160] ss:$16 sps:$4 sm:$0xff]   ;;  %v7941_v51 = vld [vmem:[#allocation14 + $0x184] ss:$16 sps:$4 sm:$0xff]  }
 0x3a5   : > { %3898 = vmatmul.mubr.bf16.vlgmr.msra.gmra.mrb[20].mxu0 %v9656_v10  ;;  %3939 = vmatmul.mubr.bf16.vlgmr.msra.gmra.mrb[20].mxu1 %v9656_v10 }
 0x3a6   : > { %4516 = vmatpush1.bf16.msra.mxu0 %v7867_v49  ;;  %v7938_v49 = vld [vmem:[#allocation14 + $0x16c] ss:$16 sps:$4 sm:$0xff]  }
 0x3a7   : > { %4517 = vmatprep.subr.bf16.mxu0 %v7875_v52  ;;  %v7944_v52 = vld [vmem:[#allocation14 + $0x18c] ss:$16 sps:$4 sm:$0xff]  }
 0x3b8   : > { %v2885_v31 = vpop.f32.mrb[8].mxu0  ;;  %v2926_v33 = vpop.f32.mrb[8].mxu1 }
 0x3b9   : > { %v9673_v32 = vadd.f32 %v2885_v31, %v9646_v34  ;;  %v2887_v35 = vpop.f32.mrb[9].mxu0  ;;  %v9676_v36 = vadd.f32 %v2926_v33, %v9648_v39  ;;  %v2928_v41 = vpop.f32.mrb[9].mxu1  ;;  %v7870_v34 = vld [vmem:[#allocation14 + $0x8] ss:$16 sps:$4 sm:$0xff]   ;;  %v7873_v39 = vld [vmem:[#allocation14 + $0x20] ss:$16 sps:$4 sm:$0xff]  }
 0x3ba   : > { %v9679_v38 = vadd.f32 %v2887_v35, %v9650_v40  ;;  %v2889_v43 = vpop.f32.mrb[10].mxu0  ;;  %v9682_v47 = vadd.f32 %v2928_v41, %v9652_v46  ;;  %v2930_v58 = vpop.f32.mrb[10].mxu1  ;;  %4557 = vmatpush1.bf16.msra.mxu1 %v7870_v34  ;;  %v7876_v40 = vld [vmem:[#allocation14 + $0x28] ss:$16 sps:$4 sm:$0xff]   ;;  %v7884_v46 = vld [vmem:[#allocation14 + $0x4c] ss:$16 sps:$4 sm:$0xff]   ;;  %4518 = vmatpush1.bf16.msra.mxu0 %v7873_v39 }
 0x3bb   : > { %v2890_v48 = vpop.f32.mrb[11].mxu0  ;;  %v2931_v10 = vpop.f32.mrb[11].mxu1  ;;  %4558 = vmatprep.subr.bf16.mxu1 %v7878_v53  ;;  %4519 = vmatprep.subr.bf16.mxu0 %v7881_v54  ;;  %v7918_v31 = vld [vmem:[#allocation14 + $0x108] ss:$16 sps:$4 sm:$0xff]   ;;  %v7926_v33 = vld [vmem:[#allocation14 + $0x12c] ss:$16 sps:$4 sm:$0xff]  }
 0x3bc   : > { %v7921_v35 = vld [vmem:[#allocation14 + $0x120] ss:$16 sps:$4 sm:$0xff]   ;;  %v7924_v41 = vld [vmem:[#allocation14 + $0x128] ss:$16 sps:$4 sm:$0xff]   ;;  %v7932_v43 = vld [vmem:[#allocation14 + $0x14c] ss:$16 sps:$4 sm:$0xff]  }
 0x3bd   : > { %v7927_v58 = vld [vmem:[#allocation14 + $0x140] ss:$16 sps:$4 sm:$0xff]   ;;  %v7930_v48 = vld [vmem:[#allocation14 + $0x148] ss:$16 sps:$4 sm:$0xff]   ;;  %v7935_v10 = vld [vmem:[#allocation14 + $0x164] ss:$16 sps:$4 sm:$0xff]  }
 0x3be   : > { %4559 = vmatpush1.bf16.msra.mxu1 %v7876_v40  ;;  %4520 = vmatpush1.bf16.msra.mxu0 %v7879_v0  ;;  %v7936_v34 = vld [vmem:[#allocation14 + $0x168] ss:$16 sps:$4 sm:$0xff]   ;;  %v7939_v53 = vld [vmem:[#allocation14 + $0x180] ss:$16 sps:$4 sm:$0xff]   ;;  %v7947_v54 = vld [vmem:[#allocation14 + $0x1a4] ss:$16 sps:$4 sm:$0xff]  }
 0x3bf   : > { %4560 = vmatprep.subr.bf16.mxu1 %v7884_v46  ;;  %4521 = vmatprep.subr.bf16.mxu0 %v7887_v27  ;;  %v7942_v39 = vld [vmem:[#allocation14 + $0x188] ss:$16 sps:$4 sm:$0xff]   ;;  %v7945_v40 = vld [vmem:[#allocation14 + $0x1a0] ss:$16 sps:$4 sm:$0xff]   ;;  %v7950_v0 = vld [vmem:[#allocation14 + $0x1ac] ss:$16 sps:$4 sm:$0xff]  }
 0x3c0   : > { %v7948_v46 = vld [vmem:[#allocation14 + $0x1a8] ss:$16 sps:$4 sm:$0xff]   ;;  %v7956_v27 = vld [vmem:[#allocation14 + $0x1cc] ss:$16 sps:$4 sm:$0xff]  }
 0x3c2   : > { %4561 = vmatpush1.bf16.msra.mxu1 %v7882_v55  ;;  %4522 = vmatpush1.bf16.msra.mxu0 %v7885_v57  ;;  %v7953_v55 = vld [vmem:[#allocation14 + $0x1c4] ss:$16 sps:$4 sm:$0xff]   ;;  %v7954_v57 = vld [vmem:[#allocation14 + $0x1c8] ss:$16 sps:$4 sm:$0xff]  }
 0x3c3   : > { %4562 = vmatprep.subr.bf16.mxu1 %v7890_v56  ;;  %4523 = vmatprep.subr.bf16.mxu0 %v7893_v60  ;;  %v7951_v56 = vld [vmem:[#allocation14 + $0x1c0] ss:$16 sps:$4 sm:$0xff]   ;;  %v7962_v60 = vld [vmem:[#allocation14 + $0x1ec] ss:$16 sps:$4 sm:$0xff]  }
 0x3c6   : > { %4563 = vmatpush1.bf16.msra.mxu1 %v7888_v59  ;;  %4524 = vmatpush1.bf16.msra.mxu0 %v7891_v63  ;;  %v7959_v59 = vld [vmem:[#allocation14 + $0x1e4] ss:$16 sps:$4 sm:$0xff]   ;;  %v7960_v63 = vld [vmem:[#allocation14 + $0x1e8] ss:$16 sps:$4 sm:$0xff]  }
 0x3c7   : > { %4564 = vmatprep.subr.bf16.mxu1 %v7896_v61  ;;  %4525 = vmatprep.subr.bf16.mxu0 %v7899_v2  ;;  %v7957_v61 = vld [vmem:[#allocation14 + $0x1e0] ss:$16 sps:$4 sm:$0xff]   ;;  %v7968_v2 = vld [vmem:[#allocation12 + $0xc] ss:$16 sps:$4 sm:$0xff]  }
 0x3ca   : > { %4565 = vmatpush1.bf16.msra.mxu1 %v7894_v1  ;;  %4526 = vmatpush1.bf16.msra.mxu0 %v7897_v6  ;;  %v7965_v1 = vld [vmem:[#allocation12 + $0x4] ss:$16 sps:$4 sm:$0xff]  }
 0x3cb   : > { %4566 = vmatprep.subr.bf16.mxu1 %v7902_v5  ;;  %4527 = vmatprep.subr.bf16.mxu0 %v7905_v9 }
 0x3ce   : > { %4567 = vmatpush1.bf16.msra.mxu1 %v7900_v8  ;;  %4528 = vmatpush1.bf16.msra.mxu0 %v7903_v12 }
 0x3cf   : > { %4568 = vmatprep.subr.bf16.mxu1 %v7908_v11  ;;  %4529 = vmatprep.subr.bf16.mxu0 %v7911_v15 }
 0x3d2   : > { %4569 = vmatpush1.bf16.msra.mxu1 %v7906_v13  ;;  %4530 = vmatpush1.bf16.msra.mxu0 %v7909_v20  ;;  %v9701_v20 = vsub.s32 0, %v9603_v37 }
 0x3d3   : > { %4570 = vmatprep.subr.bf16.mxu1 %v7914_v16  ;;  %4531 = vmatprep.subr.bf16.mxu0 %v7917_v29 }
 0x3d6   : > { %4571 = vmatpush1.bf16.msra.mxu1 %v7912_v24 }
 0x3d7   : > { %4572 = vmatprep.subr.bf16.mxu1 %v7920_v30 }
 0x3da   : > { %4573 = vmatpush1.bf16.msra.mxu1 %v7918_v31 }
 0x3db   : > { %4574 = vmatprep.subr.bf16.mxu1 %v7926_v33 }
 0x3de   : > { %4575 = vmatpush1.bf16.msra.mxu1 %v7924_v41 }
 0x3df   : > { %4576 = vmatprep.subr.bf16.mxu1 %v7932_v43 }
 0x3e2   : > { %4577 = vmatpush1.bf16.msra.mxu1 %v7930_v48  ;;  %v3979_v48 = vsub.s32 5, %v9603_v37 }
 0x3e3   : > { %4578 = vmatprep.subr.bf16.mxu1 %v7938_v49 }
 0x3e6   : > { %4579 = vmatpush1.bf16.msra.mxu1 %v7936_v34 }
 0x3e7   : > { %4580 = vmatprep.subr.bf16.mxu1 %v7944_v52 }
 0x3ea   : > { %4581 = vmatpush1.bf16.msra.mxu1 %v7942_v39 }
 0x3eb   : > { %4582 = vmatprep.subr.bf16.mxu1 %v7950_v0 }
 0x3ee   : > { %4583 = vmatpush1.bf16.msra.mxu1 %v7948_v46 }
 0x3ef   : > { %4584 = vmatprep.subr.bf16.mxu1 %v7956_v27 }
 0x3f2   : > { %4585 = vmatpush1.bf16.msra.mxu1 %v7954_v57 }
 0x3f3   : > { %4586 = vmatprep.subr.bf16.mxu1 %v7962_v60 }
 0x3f6   : > { %4587 = vmatpush1.bf16.msra.mxu1 %v7960_v63 }
 0x3f7   : > { %4958 = vmatprep.subr.bf16.mxu1 %v7968_v2 }
 0x3f8   : > { %v2967_v14 = vpop.f32.mrb[12].mxu0  ;;  %v3008_v18 = vpop.f32.mrb[12].mxu1 }
 0x3f9   : > { %v9685_v17 = vadd.f32 %v2967_v14, %v9662_v62  ;;  %v2969_v19 = vpop.f32.mrb[13].mxu0  ;;  %v9688_v42 = vadd.f32 %v3008_v18, %v9664_v3  ;;  %v3010_v22 = vpop.f32.mrb[13].mxu1  ;;  %v7915_v3 = vld [vmem:[#allocation14 + $0x100] ss:$16 sps:$4 sm:$0xff]  }
 0x3fa   : > { %v9691_v21 = vadd.f32 %v2969_v19, %v9666_v4  ;;  %v2971_v23 = vpop.f32.mrb[14].mxu0  ;;  %v9694_v25 = vadd.f32 %v3010_v22, %v9668_v7  ;;  %v3012_v26 = vpop.f32.mrb[14].mxu1  ;;  %4532 = vmatpush1.bf16.msra.mxu0 %v7915_v3  ;;  %v7923_v4 = vld [vmem:[#allocation14 + $0x124] ss:$16 sps:$4 sm:$0xff]   ;;  %v3967_v22 = vsub.s32 2, %v9603_v37 }
 0x3fb   : > { %v2972_v62 = vpop.f32.mrb[15].mxu0  ;;  %v3013_v28 = vpop.f32.mrb[15].mxu1  ;;  %4533 = vmatprep.subr.bf16.mxu0 %v7923_v4  ;;  %v7929_v7 = vld [vmem:[#allocation14 + $0x144] ss:$16 sps:$4 sm:$0xff]  }
 0x3fe   : > { %4534 = vmatpush1.bf16.msra.mxu0 %v7921_v35 }
 0x3ff   : > { %4535 = vmatprep.subr.bf16.mxu0 %v7929_v7  ;;  %v3975_v7 = vsub.s32 4, %v9603_v37 }
 0x402   : > { %4536 = vmatpush1.bf16.msra.mxu0 %v7927_v58  ;;  %v3983_v58 = vsub.s32 6, %v9603_v37 }
 0x403   : > { %4537 = vmatprep.subr.bf16.mxu0 %v7935_v10 }
 0x406   : > { %4538 = vmatpush1.bf16.msra.mxu0 %v7933_v50  ;;  %v3987_v50 = vsub.s32 7, %v9603_v37 }
 0x407   : > { %4539 = vmatprep.subr.bf16.mxu0 %v7941_v51 }
 0x40a   : > { %4540 = vmatpush1.bf16.msra.mxu0 %v7939_v53 }
 0x40b   : > { %4541 = vmatprep.subr.bf16.mxu0 %v7947_v54 }
 0x40e   : > { %4542 = vmatpush1.bf16.msra.mxu0 %v7945_v40 }
 0x40f   : > { %4543 = vmatprep.subr.bf16.mxu0 %v7953_v55 }
 0x412   : > { %4544 = vmatpush1.bf16.msra.mxu0 %v7951_v56 }
 0x413   : > { %4545 = vmatprep.subr.bf16.mxu0 %v7959_v59 }
 0x416   : > { %4546 = vmatpush1.bf16.msra.mxu0 %v7957_v61 }
 0x417   : > { %4917 = vmatprep.subr.bf16.mxu0 %v7965_v1 }
 0x438   : > { %v3817_v5 = vpop.f32.mrb[16].mxu0  ;;  %v3858_v8 = vpop.f32.mrb[16].mxu1 }
 0x439   : > { %v3947_v6 = vadd.f32 %v3817_v5, %v9673_v32  ;;  %v3819_v9 = vpop.f32.mrb[17].mxu0  ;;  %v3949_v11 = vadd.f32 %v3858_v8, %v9676_v36  ;;  %v3860_v13 = vpop.f32.mrb[17].mxu1  ;;  %v3955_v32 = vld [vmem:[%s10104_s7] sm:$0xff]  ;;  %v9708_v36 = vsub.s32 1, %v9603_v37  ;;  %s10111_s7 = sld [smem:[#allocation61_spill]] }
 0x43a   : > { %v3948_v12 = vadd.f32 %v3819_v9, %v9679_v38  ;;  %v3821_v14 = vpop.f32.mrb[18].mxu0  ;;  %v3950_v15 = vadd.f32 %v3860_v13, %v9682_v47  ;;  %v3862_v16 = vpop.f32.mrb[18].mxu1  ;;  %v3971_v38 = vsub.s32 3, %v9603_v37  ;;  %v3960_v23 = vrot.slane %v3955_v32, %v9701_v20 }
 0x43b   : > { %v3822_v18 = vpop.f32.mrb[19].mxu0  ;;  %v3863_v19 = vpop.f32.mrb[19].mxu1  ;;  %v3968_v47 = vrot.slane %v3955_v32, %v3967_v22  ;;  %v3964_v24 = vrot.slane %v3955_v32, %v9708_v36  ;;  %v3976_v52 = vrot.slane %v3955_v32, %v3975_v7  ;;  %v3984_v40 = vrot.slane %v3955_v32, %v3983_v58  ;;  %v7963_v58 = vld [vmem:[#allocation12] ss:$16 sps:$4 sm:$0xff]  }
 0x43c   : > { %v3972_v26 = vrot.slane %v3955_v32, %v3971_v38  ;;  %v3997_v62 = vadd.f32 %v3960_v23, %v3947_v6  ;;  %v3980_v54 = vrot.slane %v3955_v32, %v3979_v48  ;;  %v3988_v27 = vrot.slane %v3955_v32, %v3987_v50  ;;  %v7966_v48 = vld [vmem:[#allocation12 + $0x8] ss:$16 sps:$4 sm:$0xff]   ;;  %v7974_v50 = vld [vmem:[#allocation12 + $0x2c] ss:$16 sps:$4 sm:$0xff]  }
 0x43d   : > { %v3999_v28 = vadd.f32 %v3968_v47, %v3949_v11  ;;  %v3998_v29 = vadd.f32 %v3964_v24, %v3948_v12 }
 0x43e   : > { %v4000_v30 = vadd.f32 %v3972_v26, %v3950_v15  ;;  %v7284_v3 = vmul.f32 -1.442695, %v3997_v62 }
 0x43f   : > { %v7281_v31 = vmul.f32 -1.442695, %v3999_v28  ;;  %v7285_v4 = vmul.f32 -1.442695, %v3998_v29  ;;  %s10112_s25 = smov %s10111_s7 }
 0x440   : > { %v7282_v33 = vmul.f32 -1.442695, %v4000_v30  ;;  %8327 = vpow2.f32 %v7284_v3 }
 0x441   : > { %8329 = vpow2.f32 %v7281_v31 }
 0x442   : > { %8331 = vpow2.f32 %v7285_v4 }
 0x443   : > { %8333 = vpow2.f32 %v7282_v33 }
 0x44a   : > { %v8328_v35 = vpop.eup %8327 }
 0x44b   : > { %v8330_v41 = vpop.eup %8329  ;;  %v4037_v49 = vadd.f32 1.0, %v8328_v35 }
 0x44c   : > { %v8332_v43 = vpop.eup %8331  ;;  %v4011_v34 = vadd.f32 1.0, %v8330_v41 }
 0x44d   : > { %v8334_v10 = vpop.eup %8333  ;;  %v4038_v51 = vadd.f32 1.0, %v8332_v43  ;;  %8335 = vrcp.f32 %v4037_v49  ;;  %v7971_v49 = vld [vmem:[#allocation12 + $0x24] ss:$16 sps:$4 sm:$0xff]  }
 0x44e   : > { %v4012_v53 = vadd.f32 1.0, %v8334_v10  ;;  %8337 = vrcp.f32 %v4011_v34  ;;  %v7969_v34 = vld [vmem:[#allocation12 + $0x20] ss:$16 sps:$4 sm:$0xff]  }
 0x44f   : > { %8339 = vrcp.f32 %v4038_v51  ;;  %v7972_v51 = vld [vmem:[#allocation12 + $0x28] ss:$16 sps:$4 sm:$0xff]  }
 0x450   : > { %8341 = vrcp.f32 %v4012_v53  ;;  %v7980_v53 = vld [vmem:[#allocation12 + $0x4c] ss:$16 sps:$4 sm:$0xff]  }
 0x478   : > { %v3899_v39 = vpop.f32.mrb[20].mxu0  ;;  %v3940_v0 = vpop.f32.mrb[20].mxu1 }
 0x479   : > { %v3951_v46 = vadd.f32 %v3899_v39, %v9685_v17  ;;  %v3901_v55 = vpop.f32.mrb[21].mxu0  ;;  %v3953_v56 = vadd.f32 %v3940_v0, %v9688_v42  ;;  %v3942_v59 = vpop.f32.mrb[21].mxu1  ;;  %v7283_v42 = vld.sshfl [vmem:[#allocation3] sm:$0x33 pattern:$0x76325410] }
 0x47a   : > { %v3952_v57 = vadd.f32 %v3901_v55, %v9691_v21  ;;  %v3903_v60 = vpop.f32.mrb[22].mxu0  ;;  %v3954_v63 = vadd.f32 %v3942_v59, %v9694_v25  ;;  %v3944_v1 = vpop.f32.mrb[22].mxu1  ;;  %v4026_v14 = vcombine.high %v7283_v42, %v7283_v42  ;;  %v7975_v39 = vld [vmem:[#allocation12 + $0x40] ss:$16 sps:$4 sm:$0xff]   ;;  %v7984_v55 = vld [vmem:[#allocation12 + $0x68] ss:$16 sps:$4 sm:$0xff]  }
 0x47b   : > { %v4001_v61 = vadd.f32 %v3976_v52, %v3951_v46  ;;  %v3904_v2 = vpop.f32.mrb[23].mxu0  ;;  %v4003_v5 = vadd.f32 %v3984_v40, %v3953_v56  ;;  %v3945_v17 = vpop.f32.mrb[23].mxu1  ;;  %v7977_v52 = vld [vmem:[#allocation12 + $0x44] ss:$16 sps:$4 sm:$0xff]   ;;  %v7978_v40 = vld [vmem:[#allocation12 + $0x48] ss:$16 sps:$4 sm:$0xff]  }
 0x47c   : > { %v4002_v6 = vadd.f32 %v3980_v54, %v3952_v57  ;;  %v4004_v8 = vadd.f32 %v3988_v27, %v3954_v63  ;;  %v8336_v21 = vpop.eup %8335  ;;  %v7983_v54 = vld [vmem:[#allocation12 + $0x64] ss:$16 sps:$4 sm:$0xff]   ;;  %v7986_v46 = vld [vmem:[#allocation12 + $0x6c] ss:$16 sps:$4 sm:$0xff]   ;;  %v7981_v0 = vld [vmem:[#allocation12 + $0x60] ss:$16 sps:$4 sm:$0xff]  }
 0x47d   : > { %8343 = vtanh.f32 %v4001_v61  ;;  %v7286_v9 = vmul.f32 -1.442695, %v4003_v5  ;;  %v8338_v12 = vpop.eup %8337  ;;  %v7989_v27 = vld [vmem:[#allocation12 + $0x84] ss:$16 sps:$4 sm:$0xff]   ;;  %v7992_v56 = vld [vmem:[#allocation12 + $0x8c] ss:$16 sps:$4 sm:$0xff]  }
 0x47e   : > { %8345 = vtanh.f32 %v4002_v6  ;;  %v7287_v11 = vmul.f32 -1.442695, %v4004_v8  ;;  %v8340_v13 = vpop.eup %8339  ;;  %v4029_v18 = vmul.f32 %v8338_v12, %v7283_v42  ;;  %v7987_v57 = vld [vmem:[#allocation12 + $0x80] ss:$16 sps:$4 sm:$0xff]   ;;  %v7995_v59 = vld [vmem:[#allocation12 + $0xa4] ss:$16 sps:$4 sm:$0xff]  }
 0x47f   : > { %8347 = vpow2.f32 %v7286_v9  ;;  %v8342_v15 = vpop.eup %8341  ;;  %v7998_v60 = vld [vmem:[#allocation12 + $0xac] ss:$16 sps:$4 sm:$0xff]   ;;  %v7993_v61 = vld [vmem:[#allocation12 + $0xa0] ss:$16 sps:$4 sm:$0xff]   ;;  %v7996_v63 = vld [vmem:[#allocation12 + $0xa8] ss:$16 sps:$4 sm:$0xff]  }
 0x480   : > { %8349 = vpow2.f32 %v7287_v11  ;;  %v4030_v32 = vmul.f32 %v8342_v15, %v4026_v14  ;;  %v8001_v1 = vld [vmem:[#allocation12 + $0xc4] ss:$16 sps:$4 sm:$0xff]   ;;  %v8004_v2 = vld [vmem:[#allocation12 + $0xcc] ss:$16 sps:$4 sm:$0xff]   ;;  %v7999_v5 = vld [vmem:[#allocation12 + $0xc0] ss:$16 sps:$4 sm:$0xff]  }
 0x481   : > { %v8002_v6 = vld [vmem:[#allocation12 + $0xc8] ss:$16 sps:$4 sm:$0xff]   ;;  %v8007_v17 = vld [vmem:[#allocation12 + $0xe4] ss:$16 sps:$4 sm:$0xff]   ;;  %v8010_v8 = vld [vmem:[#allocation12 + $0xec] ss:$16 sps:$4 sm:$0xff]  }
 0x482   : > { %v8005_v9 = vld [vmem:[#allocation12 + $0xe0] ss:$16 sps:$4 sm:$0xff]   ;;  %v8008_v11 = vld [vmem:[#allocation12 + $0xe8] ss:$16 sps:$4 sm:$0xff]   ;;  %v8013_v42 = vld [vmem:[#allocation12 + $0x104] ss:$16 sps:$4 sm:$0xff]  }
 0x483   : > { %v8011_v12 = vld [vmem:[#allocation12 + $0x100] ss:$16 sps:$4 sm:$0xff]   ;;  %v8019_v14 = vld [vmem:[#allocation12 + $0x124] ss:$16 sps:$4 sm:$0xff]   ;;  %v8022_v15 = vld [vmem:[#allocation12 + $0x12c] ss:$16 sps:$4 sm:$0xff]  }
 0x487   : > { %v8344_v25 = vpop.eup %8343 }
 0x488   : > { %v8346_v16 = vpop.eup %8345  ;;  %v4045_v19 = vmul.f32 %v8344_v25, %v8336_v21  ;;  %v8016_v21 = vld [vmem:[#allocation12 + $0x10c] ss:$16 sps:$4 sm:$0xff]   ;;  %v8017_v25 = vld [vmem:[#allocation12 + $0x120] ss:$16 sps:$4 sm:$0xff]  }
 0x489   : > { %v4046_v23 = vmul.f32 %v8346_v16, %v8340_v13  ;;  %v8348_v47 = vpop.eup %8347  ;;  %v8014_v13 = vld [vmem:[#allocation12 + $0x108] ss:$16 sps:$4 sm:$0xff]  }
 0x48a   : > { %v4047_v24 = vadd.f32 %v4045_v19, %v4029_v18  ;;  %v8350_v26 = vpop.eup %8349  ;;  %v4055_v62 = vadd.f32 1.0, %v8348_v47  ;;  %v8020_v16 = vld [vmem:[#allocation12 + $0x128] ss:$16 sps:$4 sm:$0xff]   ;;  %v8025_v18 = vld [vmem:[#allocation12 + $0x144] ss:$16 sps:$4 sm:$0xff]  }
 0x48b   : > { %v4048_v28 = vadd.f32 %v4046_v23, %v4030_v32  ;;  %v4056_v29 = vadd.f32 1.0, %v8350_v26  ;;  %v8028_v19 = vld [vmem:[#allocation12 + $0x14c] ss:$16 sps:$4 sm:$0xff]   ;;  %v8023_v32 = vld [vmem:[#allocation12 + $0x140] ss:$16 sps:$4 sm:$0xff]  }
 0x48c   : > { %8351 = vtanh.f32 %v4047_v24  ;;  %v8026_v23 = vld [vmem:[#allocation12 + $0x148] ss:$16 sps:$4 sm:$0xff]   ;;  %v8031_v47 = vld [vmem:[#allocation12 + $0x164] ss:$16 sps:$4 sm:$0xff]   ;;  %v8029_v26 = vld [vmem:[#allocation12 + $0x160] ss:$16 sps:$4 sm:$0xff]  }
 0x48d   : > { %8353 = vrcp.f32 %v4055_v62  ;;  %v6583_v30 = vcombine.low %v4047_v24, %v4048_v28  ;;  %v8034_v24 = vld [vmem:[#allocation12 + $0x16c] ss:$16 sps:$4 sm:$0xff]   ;;  %v8032_v62 = vld [vmem:[#allocation12 + $0x168] ss:$16 sps:$4 sm:$0xff]  }
 0x48e   : > { %8355 = vrcp.f32 %v4056_v29  ;;  %v8040_v29 = vld [vmem:[#allocation12 + $0x18c] ss:$16 sps:$4 sm:$0xff]  }
 0x48f   : > { %7604 = vst.sshfl [vmem:[#allocation3] sm:$0x33 pattern:$0x76325410] %v6583_v30  ;;  %8357 = vtanh.f32 %v4048_v28  ;;  %v8037_v28 = vld [vmem:[#allocation12 + $0x184] ss:$16 sps:$4 sm:$0xff]  }
 0x490   : > { %7606 = vst.sshfl [vmem:[%s10105_s30] sm:$0x33 pattern:$0x76325410] %v6583_v30  ;;  %v8035_v30 = vld [vmem:[#allocation12 + $0x180] ss:$16 sps:$4 sm:$0xff]  }
 0x496   : > { %v8352_v3 = vpop.eup %8351 }
 0x497   : > { %v8354_v31 = vpop.eup %8353 }
 0x498   : > { %v8356_v4 = vpop.eup %8355  ;;  %v4063_v33 = vmul.f32 %v8354_v31, %v8352_v3  ;;  %v8038_v3 = vld [vmem:[#allocation12 + $0x188] ss:$16 sps:$4 sm:$0xff]   ;;  %v8043_v31 = vld [vmem:[#allocation12 + $0x1a4] ss:$16 sps:$4 sm:$0xff]  }
 0x499   : > { %v8358_v35 = vpop.eup %8357 }
 0x49a   : > { %v4064_v41 = vmul.f32 %v8358_v35, %v8356_v4  ;;  %v9730_v10 = vpack.c.bf16 %v4063_v33, %v4063_v33  ;;  %v8046_v4 = vld [vmem:[#allocation12 + $0x1ac] ss:$16 sps:$4 sm:$0xff]   ;;  %v8044_v35 = vld [vmem:[#allocation12 + $0x1a8] ss:$16 sps:$4 sm:$0xff]  }
 0x49c   : > { %v9728_v7 = vpack.c.bf16 %v4064_v41, %v4064_v41  ;;  %v6571_v43 = vcombine.low %v4063_v33, %v4064_v41  ;;  %v8041_v33 = vld [vmem:[#allocation12 + $0x1a0] ss:$16 sps:$4 sm:$0xff]   ;;  %v8049_v41 = vld [vmem:[#allocation12 + $0x1c4] ss:$16 sps:$4 sm:$0xff]  }
 0x49e   : > { %4547 = vmatprep.mubr.bf16.mxu0 %v9728_v7  ;;  %7603 = vst.sshfl [vmem:[#allocation2] sm:$0x33 pattern:$0x76325410] %v6571_v43  ;;  %4588 = vmatprep.mubr.bf16.mxu1 %v9728_v7 }
 0x49f   : > { %7605 = vst.sshfl [vmem:[%s10106_s21] sm:$0x33 pattern:$0x76325410] %v6571_v43  ;;  %4548 = vmatmul.mubr.bf16.vlgmr.msra.gmra.mrb[24].mxu0 %v9730_v10  ;;  %4589 = vmatmul.mubr.bf16.vlgmr.msra.gmra.mrb[24].mxu1 %v9730_v10  ;;  %v8052_v43 = vld [vmem:[#allocation12 + $0x1cc] ss:$16 sps:$4 sm:$0xff]  }
 0x4a0   : > { %4918 = vmatpush1.bf16.msra.mxu0 %v7963_v58  ;;  %4959 = vmatpush1.bf16.msra.mxu1 %v7966_v48  ;;  %v8047_v58 = vld [vmem:[#allocation12 + $0x1c0] ss:$16 sps:$4 sm:$0xff]   ;;  %v8050_v48 = vld [vmem:[#allocation12 + $0x1c8] ss:$16 sps:$4 sm:$0xff]  }
 0x4a1   : > { %4919 = vmatprep.subr.bf16.mxu0 %v7971_v49  ;;  %4960 = vmatprep.subr.bf16.mxu1 %v7974_v50  ;;  %v8055_v49 = vld [vmem:[#allocation12 + $0x1e4] ss:$16 sps:$4 sm:$0xff]   ;;  %v8058_v50 = vld [vmem:[#allocation12 + $0x1ec] ss:$16 sps:$4 sm:$0xff]  }
 0x4a2   : > { %4949 = vmatprep.mubr.bf16.mxu0 %v9622_v44  ;;  %4990 = vmatprep.mubr.bf16.mxu1 %v9622_v44  ;;  %v7990_v44 = vld [vmem:[#allocation12 + $0x88] ss:$16 sps:$4 sm:$0xff]  }
 0x4a4   : > { %4920 = vmatpush1.bf16.msra.mxu0 %v7969_v34  ;;  %4961 = vmatpush1.bf16.msra.mxu1 %v7972_v51  ;;  %v9743_v34 = vld.sshfl [vmem:[%s10107_s0] sm:$0x33 pattern:$0x76325410]  ;;  %v8053_v51 = vld [vmem:[#allocation12 + $0x1e0] ss:$16 sps:$4 sm:$0xff]  }
 0x4a5   : > { %4921 = vmatprep.subr.bf16.mxu0 %v7977_v52  ;;  %4962 = vmatprep.subr.bf16.mxu1 %v7980_v53  ;;  %v8056_v52 = vld [vmem:[#allocation12 + $0x1e8] ss:$16 sps:$4 sm:$0xff]   ;;  %v5038_v53 = vcombine.high %v9743_v34, %v9743_v34 }
 0x4a8   : > { %4922 = vmatpush1.bf16.msra.mxu0 %v7975_v39  ;;  %4963 = vmatpush1.bf16.msra.mxu1 %v7978_v40  ;;  %v8061_v39 = vld [vmem:[%s10108_s23 + $0x4] ss:$8 sps:$4 sm:$0xff]   ;;  %v8059_v40 = vld [vmem:[%s10108_s23] ss:$8 sps:$4 sm:$0xff]  }
 0x4a9   : > { %4923 = vmatprep.subr.bf16.mxu0 %v7983_v54  ;;  %4964 = vmatprep.subr.bf16.mxu1 %v7986_v46  ;;  %v5042_v54 = vpack.c.bf16 %v5038_v53, %v5038_v53  ;;  %v8064_v46 = vld [vmem:[%s10108_s23 + $0x14] ss:$8 sps:$4 sm:$0xff]   ;;  %v5041_v53 = vpack.c.bf16 %v9743_v34, %v9743_v34 }
 0x4aa   : > { %v8113_v34 = vld [vmem:[#allocation21 + $0x20] ss:$8 sps:$4 sm:$0xff]  }
 0x4ac   : > { %4924 = vmatpush1.bf16.msra.mxu0 %v7981_v0  ;;  %4965 = vmatpush1.bf16.msra.mxu1 %v7984_v55  ;;  %v8062_v0 = vld [vmem:[%s10108_s23 + $0x10] ss:$8 sps:$4 sm:$0xff]   ;;  %v8067_v55 = vld [vmem:[%s10108_s23 + $0x24] ss:$8 sps:$4 sm:$0xff]  }
 0x4ad   : > { %4925 = vmatprep.subr.bf16.mxu0 %v7989_v27  ;;  %4966 = vmatprep.subr.bf16.mxu1 %v7992_v56  ;;  %v8065_v27 = vld [vmem:[%s10108_s23 + $0x20] ss:$8 sps:$4 sm:$0xff]   ;;  %v8068_v56 = vld [vmem:[%s10108_s23 + $0x30] ss:$8 sps:$4 sm:$0xff]  }
 0x4b0   : > { %4926 = vmatpush1.bf16.msra.mxu0 %v7987_v57  ;;  %4967 = vmatpush1.bf16.msra.mxu1 %v7990_v44  ;;  %v8073_v57 = vld [vmem:[%s10108_s23 + $0x44] ss:$8 sps:$4 sm:$0xff]   ;;  %v8071_v44 = vld [vmem:[%s10108_s23 + $0x40] ss:$8 sps:$4 sm:$0xff]  }
 0x4b1   : > { %4927 = vmatprep.subr.bf16.mxu0 %v7995_v59  ;;  %4968 = vmatprep.subr.bf16.mxu1 %v7998_v60  ;;  %v8076_v59 = vld [vmem:[%s10108_s23 + $0x54] ss:$8 sps:$4 sm:$0xff]   ;;  %v8074_v60 = vld [vmem:[%s10108_s23 + $0x50] ss:$8 sps:$4 sm:$0xff]  }
 0x4b4   : > { %4928 = vmatpush1.bf16.msra.mxu0 %v7993_v61  ;;  %4969 = vmatpush1.bf16.msra.mxu1 %v7996_v63  ;;  %v8079_v61 = vld [vmem:[%s10108_s23 + $0x64] ss:$8 sps:$4 sm:$0xff]   ;;  %v8077_v63 = vld [vmem:[%s10108_s23 + $0x60] ss:$8 sps:$4 sm:$0xff]  }
 0x4b5   : > { %4929 = vmatprep.subr.bf16.mxu0 %v8001_v1  ;;  %4970 = vmatprep.subr.bf16.mxu1 %v8004_v2  ;;  %v8082_v1 = vld [vmem:[%s10108_s23 + $0x74] ss:$8 sps:$4 sm:$0xff]  }
 0x4b6   : > { %v8155_v2 = vld [vmem:[#allocation17] ss:$8 sps:$4 sm:$0xff]  }
 0x4b8   : > { %4930 = vmatpush1.bf16.msra.mxu0 %v7999_v5  ;;  %4971 = vmatpush1.bf16.msra.mxu1 %v8002_v6  ;;  %v8157_v5 = vld [vmem:[#allocation17 + $0x4] ss:$8 sps:$4 sm:$0xff]   ;;  %v8160_v6 = vld [vmem:[#allocation17 + $0x14] ss:$8 sps:$4 sm:$0xff]  }
 0x4b9   : > { %4931 = vmatprep.subr.bf16.mxu0 %v8007_v17  ;;  %4972 = vmatprep.subr.bf16.mxu1 %v8010_v8  ;;  %v8080_v17 = vld [vmem:[%s10108_s23 + $0x70] ss:$8 sps:$4 sm:$0xff]  }
 0x4ba   : > { %v8158_v8 = vld [vmem:[#allocation17 + $0x10] ss:$8 sps:$4 sm:$0xff]  }
 0x4bc   : > { %4932 = vmatpush1.bf16.msra.mxu0 %v8005_v9  ;;  %4973 = vmatpush1.bf16.msra.mxu1 %v8008_v11  ;;  %v8085_v9 = vld [vmem:[%s10108_s23 + $0x84] ss:$8 sps:$4 sm:$0xff]  }
 0x4bd   : > { %4933 = vmatprep.subr.bf16.mxu0 %v8013_v42  ;;  %4974 = vmatprep.subr.bf16.mxu1 %v8016_v21  ;;  %v8163_v11 = vld [vmem:[#allocation17 + $0x24] ss:$8 sps:$4 sm:$0xff]   ;;  %v8161_v21 = vld [vmem:[#allocation17 + $0x20] ss:$8 sps:$4 sm:$0xff]  }
 0x4be   : > { %v8083_v42 = vld [vmem:[%s10108_s23 + $0x80] ss:$8 sps:$4 sm:$0xff]  }
 0x4c0   : > { %4934 = vmatpush1.bf16.msra.mxu0 %v8011_v12  ;;  %4975 = vmatpush1.bf16.msra.mxu1 %v8014_v13  ;;  %v8088_v12 = vld [vmem:[%s10108_s23 + $0x94] ss:$8 sps:$4 sm:$0xff]  }
 0x4c1   : > { %4935 = vmatprep.subr.bf16.mxu0 %v8019_v14  ;;  %4976 = vmatprep.subr.bf16.mxu1 %v8022_v15  ;;  %v8166_v13 = vld [vmem:[#allocation17 + $0x34] ss:$8 sps:$4 sm:$0xff]   ;;  %v8164_v15 = vld [vmem:[#allocation17 + $0x30] ss:$8 sps:$4 sm:$0xff]  }
 0x4c2   : > { %v8086_v14 = vld [vmem:[%s10108_s23 + $0x90] ss:$8 sps:$4 sm:$0xff]  }
 0x4c4   : > { %4936 = vmatpush1.bf16.msra.mxu0 %v8017_v25  ;;  %4977 = vmatpush1.bf16.msra.mxu1 %v8020_v16  ;;  %v8091_v25 = vld [vmem:[%s10108_s23 + $0xa4] ss:$8 sps:$4 sm:$0xff]  }
 0x4c5   : > { %4937 = vmatprep.subr.bf16.mxu0 %v8025_v18  ;;  %4978 = vmatprep.subr.bf16.mxu1 %v8028_v19  ;;  %v8169_v16 = vld [vmem:[#allocation17 + $0x44] ss:$8 sps:$4 sm:$0xff]   ;;  %v8167_v19 = vld [vmem:[#allocation17 + $0x40] ss:$8 sps:$4 sm:$0xff]  }
 0x4c6   : > { %v8089_v18 = vld [vmem:[%s10108_s23 + $0xa0] ss:$8 sps:$4 sm:$0xff]  }
 0x4c8   : > { %4938 = vmatpush1.bf16.msra.mxu0 %v8023_v32  ;;  %4979 = vmatpush1.bf16.msra.mxu1 %v8026_v23  ;;  %v8094_v32 = vld [vmem:[%s10108_s23 + $0xb4] ss:$8 sps:$4 sm:$0xff]  }
 0x4c9   : > { %4939 = vmatprep.subr.bf16.mxu0 %v8031_v47  ;;  %4980 = vmatprep.subr.bf16.mxu1 %v8034_v24  ;;  %v8172_v23 = vld [vmem:[#allocation17 + $0x54] ss:$8 sps:$4 sm:$0xff]   ;;  %v8170_v24 = vld [vmem:[#allocation17 + $0x50] ss:$8 sps:$4 sm:$0xff]  }
 0x4ca   : > { %v8092_v47 = vld [vmem:[%s10108_s23 + $0xb0] ss:$8 sps:$4 sm:$0xff]  }
 0x4cc   : > { %4940 = vmatpush1.bf16.msra.mxu0 %v8029_v26  ;;  %4981 = vmatpush1.bf16.msra.mxu1 %v8032_v62  ;;  %v8097_v26 = vld [vmem:[%s10108_s23 + $0xc4] ss:$8 sps:$4 sm:$0xff]  }
 0x4cd   : > { %4941 = vmatprep.subr.bf16.mxu0 %v8037_v28  ;;  %4982 = vmatprep.subr.bf16.mxu1 %v8040_v29  ;;  %v8175_v62 = vld [vmem:[#allocation17 + $0x64] ss:$8 sps:$4 sm:$0xff]   ;;  %v8173_v29 = vld [vmem:[#allocation17 + $0x60] ss:$8 sps:$4 sm:$0xff]  }
 0x4ce   : > { %v8095_v28 = vld [vmem:[%s10108_s23 + $0xc0] ss:$8 sps:$4 sm:$0xff]  }
 0x4d0   : > { %4942 = vmatpush1.bf16.msra.mxu0 %v8035_v30  ;;  %4983 = vmatpush1.bf16.msra.mxu1 %v8038_v3  ;;  %v8100_v30 = vld [vmem:[%s10108_s23 + $0xd4] ss:$8 sps:$4 sm:$0xff]  }
 0x4d1   : > { %4943 = vmatprep.subr.bf16.mxu0 %v8043_v31  ;;  %4984 = vmatprep.subr.bf16.mxu1 %v8046_v4  ;;  %v8178_v3 = vld [vmem:[#allocation17 + $0x74] ss:$8 sps:$4 sm:$0xff]   ;;  %v8176_v4 = vld [vmem:[#allocation17 + $0x70] ss:$8 sps:$4 sm:$0xff]  }
 0x4d2   : > { %v8098_v31 = vld [vmem:[%s10108_s23 + $0xd0] ss:$8 sps:$4 sm:$0xff]  }
 0x4d4   : > { %4944 = vmatpush1.bf16.msra.mxu0 %v8041_v33  ;;  %4985 = vmatpush1.bf16.msra.mxu1 %v8044_v35  ;;  %v8103_v33 = vld [vmem:[%s10108_s23 + $0xe4] ss:$8 sps:$4 sm:$0xff]  }
 0x4d5   : > { %4945 = vmatprep.subr.bf16.mxu0 %v8049_v41  ;;  %4986 = vmatprep.subr.bf16.mxu1 %v8052_v43  ;;  %v8181_v35 = vld [vmem:[#allocation17 + $0x84] ss:$8 sps:$4 sm:$0xff]   ;;  %v8179_v43 = vld [vmem:[#allocation17 + $0x80] ss:$8 sps:$4 sm:$0xff]  }
 0x4d6   : > { %v8101_v41 = vld [vmem:[%s10108_s23 + $0xe0] ss:$8 sps:$4 sm:$0xff]  }
 0x4d8   : > { %4946 = vmatpush1.bf16.msra.mxu0 %v8047_v58  ;;  %4987 = vmatpush1.bf16.msra.mxu1 %v8050_v48  ;;  %v8106_v58 = vld [vmem:[%s10108_s23 + $0xf4] ss:$8 sps:$4 sm:$0xff]  }
 0x4d9   : > { %4947 = vmatprep.subr.bf16.mxu0 %v8055_v49  ;;  %4988 = vmatprep.subr.bf16.mxu1 %v8058_v50  ;;  %v8184_v48 = vld [vmem:[#allocation17 + $0x94] ss:$8 sps:$4 sm:$0xff]   ;;  %v8182_v50 = vld [vmem:[#allocation17 + $0x90] ss:$8 sps:$4 sm:$0xff]  }
 0x4da   : > { %v8104_v49 = vld [vmem:[%s10108_s23 + $0xf0] ss:$8 sps:$4 sm:$0xff]  }
 0x4dc   : > { %4948 = vmatpush1.bf16.msra.mxu0 %v8053_v51  ;;  %4989 = vmatpush1.bf16.msra.mxu1 %v8056_v52  ;;  %v8109_v51 = vld [vmem:[#allocation21 + $0x4] ss:$8 sps:$4 sm:$0xff]  }
 0x4dd   : > { %5247 = vmatprep.subr.bf16.mxu0 %v8061_v39  ;;  %5496 = vmatprep.subr.bf16.mxu1 %v8157_v5  ;;  %v8187_v52 = vld [vmem:[#allocation17 + $0xa4] ss:$8 sps:$4 sm:$0xff]  }
 0x4de   : > { %v8107_v39 = vld [vmem:[#allocation21] ss:$8 sps:$4 sm:$0xff]  }
 0x4df   : > { %4950 = vmatmul.mubr.bf16.vlgmr.msra.gmra.mrb[28].mxu0 %v9630_v45  ;;  %4991 = vmatmul.mubr.bf16.vlgmr.msra.gmra.mrb[28].mxu1 %v9630_v45  ;;  %v8070_v45 = vld [vmem:[%s10108_s23 + $0x34] ss:$8 sps:$4 sm:$0xff]  }
 0x4e0   : > { %5248 = vmatpush1.bf16.msra.mxu0 %v8059_v40  ;;  %5279 = vmatprep.mubr.bf16.mxu0 %v5042_v54  ;;  %v8112_v40 = vld [vmem:[#allocation21 + $0x14] ss:$8 sps:$4 sm:$0xff]   ;;  %v8199_v5 = vld [vmem:[#allocation17 + $0xe4] ss:$8 sps:$4 sm:$0xff]  }
 0x4e1   : > { %5249 = vmatprep.subr.bf16.mxu0 %v8064_v46  ;;  %5497 = vmatpush1.bf16.msra.mxu1 %v8155_v2  ;;  %v8185_v54 = vld [vmem:[#allocation17 + $0xa0] ss:$8 sps:$4 sm:$0xff]   ;;  %v8190_v46 = vld [vmem:[#allocation17 + $0xb4] ss:$8 sps:$4 sm:$0xff]  }
 0x4e2   : > { %5498 = vmatprep.subr.bf16.mxu1 %v8160_v6  ;;  %v8127_v2 = vld [vmem:[#allocation21 + $0x64] ss:$8 sps:$4 sm:$0xff]   ;;  %v8125_v6 = vld [vmem:[#allocation21 + $0x60] ss:$8 sps:$4 sm:$0xff]  }
 0x4e4   : > { %5250 = vmatpush1.bf16.msra.mxu0 %v8062_v0  ;;  %v8110_v0 = vld [vmem:[#allocation21 + $0x10] ss:$8 sps:$4 sm:$0xff]  }
 0x4e5   : > { %5251 = vmatprep.subr.bf16.mxu0 %v8067_v55  ;;  %5499 = vmatpush1.bf16.msra.mxu1 %v8158_v8  ;;  %v8115_v55 = vld [vmem:[#allocation21 + $0x24] ss:$8 sps:$4 sm:$0xff]   ;;  %v8130_v8 = vld [vmem:[#allocation21 + $0x74] ss:$8 sps:$4 sm:$0xff]  }
 0x4e6   : > { %5500 = vmatprep.subr.bf16.mxu1 %v8163_v11  ;;  %v8128_v11 = vld [vmem:[#allocation21 + $0x70] ss:$8 sps:$4 sm:$0xff]  }
 0x4e8   : > { %5252 = vmatpush1.bf16.msra.mxu0 %v8065_v27  ;;  %v8188_v27 = vld [vmem:[#allocation17 + $0xb0] ss:$8 sps:$4 sm:$0xff]  }
 0x4e9   : > { %5253 = vmatprep.subr.bf16.mxu0 %v8070_v45  ;;  %5501 = vmatpush1.bf16.msra.mxu1 %v8161_v21  ;;  %v8193_v45 = vld [vmem:[#allocation17 + $0xc4] ss:$8 sps:$4 sm:$0xff]  }
 0x4ea   : > { %5502 = vmatprep.subr.bf16.mxu1 %v8166_v13  ;;  %v8133_v21 = vld [vmem:[#allocation21 + $0x84] ss:$8 sps:$4 sm:$0xff]   ;;  %v8136_v13 = vld [vmem:[#allocation21 + $0x94] ss:$8 sps:$4 sm:$0xff]  }
 0x4ec   : > { %5254 = vmatpush1.bf16.msra.mxu0 %v8068_v56  ;;  %v8118_v56 = vld [vmem:[#allocation21 + $0x34] ss:$8 sps:$4 sm:$0xff]  }
 0x4ed   : > { %5255 = vmatprep.subr.bf16.mxu0 %v8073_v57  ;;  %5503 = vmatpush1.bf16.msra.mxu1 %v8164_v15  ;;  %v8191_v57 = vld [vmem:[#allocation17 + $0xc0] ss:$8 sps:$4 sm:$0xff]  }
 0x4ee   : > { %5504 = vmatprep.subr.bf16.mxu1 %v8169_v16  ;;  %v8139_v15 = vld [vmem:[#allocation21 + $0xa4] ss:$8 sps:$4 sm:$0xff]   ;;  %v8142_v16 = vld [vmem:[#allocation21 + $0xb4] ss:$8 sps:$4 sm:$0xff]  }
 0x4f0   : > { %5256 = vmatpush1.bf16.msra.mxu0 %v8071_v44  ;;  %v8196_v44 = vld [vmem:[#allocation17 + $0xd4] ss:$8 sps:$4 sm:$0xff]  }
 0x4f1   : > { %5257 = vmatprep.subr.bf16.mxu0 %v8076_v59  ;;  %5505 = vmatpush1.bf16.msra.mxu1 %v8167_v19  ;;  %v8116_v59 = vld [vmem:[#allocation21 + $0x30] ss:$8 sps:$4 sm:$0xff]   ;;  %v8145_v19 = vld [vmem:[#allocation21 + $0xc4] ss:$8 sps:$4 sm:$0xff]  }
 0x4f2   : > { %5506 = vmatprep.subr.bf16.mxu1 %v8172_v23  ;;  %v8148_v23 = vld [vmem:[#allocation21 + $0xd4] ss:$8 sps:$4 sm:$0xff]  }
 0x4f4   : > { %5258 = vmatpush1.bf16.msra.mxu0 %v8074_v60  ;;  %v8121_v60 = vld [vmem:[#allocation21 + $0x44] ss:$8 sps:$4 sm:$0xff]  }
 0x4f5   : > { %5259 = vmatprep.subr.bf16.mxu0 %v8079_v61  ;;  %5507 = vmatpush1.bf16.msra.mxu1 %v8170_v24  ;;  %v8119_v61 = vld [vmem:[#allocation21 + $0x40] ss:$8 sps:$4 sm:$0xff]   ;;  %v8151_v24 = vld [vmem:[#allocation21 + $0xe4] ss:$8 sps:$4 sm:$0xff]  }
 0x4f6   : > { %5508 = vmatprep.subr.bf16.mxu1 %v8175_v62  ;;  %v8154_v62 = vld [vmem:[#allocation21 + $0xf4] ss:$8 sps:$4 sm:$0xff]  }
 0x4f8   : > { %5260 = vmatpush1.bf16.msra.mxu0 %v8077_v63  ;;  %v8124_v63 = vld [vmem:[#allocation21 + $0x54] ss:$8 sps:$4 sm:$0xff]  }
 0x4f9   : > { %5261 = vmatprep.subr.bf16.mxu0 %v8082_v1  ;;  %5509 = vmatpush1.bf16.msra.mxu1 %v8173_v29  ;;  %v8122_v1 = vld [vmem:[#allocation21 + $0x50] ss:$8 sps:$4 sm:$0xff]  }
 0x4fa   : > { %5510 = vmatprep.subr.bf16.mxu1 %v8178_v3 }
 0x4fc   : > { %5262 = vmatpush1.bf16.msra.mxu0 %v8080_v17  ;;  %v8197_v17 = vld [vmem:[#allocation17 + $0xe0] ss:$8 sps:$4 sm:$0xff]  }
 0x4fd   : > { %5263 = vmatprep.subr.bf16.mxu0 %v8085_v9  ;;  %5511 = vmatpush1.bf16.msra.mxu1 %v8176_v4  ;;  %v8202_v9 = vld [vmem:[#allocation17 + $0xf4] ss:$8 sps:$4 sm:$0xff]  }
 0x4fe   : > { %5512 = vmatprep.subr.bf16.mxu1 %v8181_v35 }
 0x500   : > { %5264 = vmatpush1.bf16.msra.mxu0 %v8083_v42  ;;  %v8200_v42 = vld [vmem:[#allocation17 + $0xf0] ss:$8 sps:$4 sm:$0xff]  }
 0x501   : > { %5265 = vmatprep.subr.bf16.mxu0 %v8088_v12  ;;  %5513 = vmatpush1.bf16.msra.mxu1 %v8179_v43  ;;  %v8131_v12 = vld [vmem:[#allocation21 + $0x80] ss:$8 sps:$4 sm:$0xff]   ;;  %v4999_v43 = vld [vmem:[%s10109_s28] sm:$0xf] }
 0x502   : > { %5514 = vmatprep.subr.bf16.mxu1 %v8184_v48  ;;  %v5012_v48 = vrot.slane %v4999_v43, %v3967_v22 }
 0x504   : > { %5266 = vmatpush1.bf16.msra.mxu0 %v8086_v14  ;;  %v8134_v14 = vld [vmem:[#allocation21 + $0x90] ss:$8 sps:$4 sm:$0xff]  }
 0x505   : > { %5267 = vmatprep.subr.bf16.mxu0 %v8091_v25  ;;  %5515 = vmatpush1.bf16.msra.mxu1 %v8182_v50  ;;  %v8137_v25 = vld [vmem:[#allocation21 + $0xa0] ss:$8 sps:$4 sm:$0xff]  }
 0x506   : > { %5516 = vmatprep.subr.bf16.mxu1 %v8187_v52 }
 0x508   : > { %5268 = vmatpush1.bf16.msra.mxu0 %v8089_v18  ;;  %v8140_v18 = vld [vmem:[#allocation21 + $0xb0] ss:$8 sps:$4 sm:$0xff]  }
 0x509   : > { %5269 = vmatprep.subr.bf16.mxu0 %v8094_v32  ;;  %5517 = vmatpush1.bf16.msra.mxu1 %v8185_v54  ;;  %v8143_v32 = vld [vmem:[#allocation21 + $0xc0] ss:$8 sps:$4 sm:$0xff]  }
 0x50a   : > { %5518 = vmatprep.subr.bf16.mxu1 %v8190_v46 }
 0x50c   : > { %5270 = vmatpush1.bf16.msra.mxu0 %v8092_v47  ;;  %v8146_v47 = vld [vmem:[#allocation21 + $0xd0] ss:$8 sps:$4 sm:$0xff]  }
 0x50d   : > { %5271 = vmatprep.subr.bf16.mxu0 %v8097_v26  ;;  %5519 = vmatpush1.bf16.msra.mxu1 %v8188_v27  ;;  %v8149_v26 = vld [vmem:[#allocation21 + $0xe0] ss:$8 sps:$4 sm:$0xff]  }
 0x50e   : > { %5520 = vmatprep.subr.bf16.mxu1 %v8193_v45 }
 0x510   : > { %5272 = vmatpush1.bf16.msra.mxu0 %v8095_v28  ;;  %v8152_v28 = vld [vmem:[#allocation21 + $0xf0] ss:$8 sps:$4 sm:$0xff]  }
 0x511   : > { %5273 = vmatprep.subr.bf16.mxu0 %v8100_v30  ;;  %5521 = vmatpush1.bf16.msra.mxu1 %v8191_v57 }
 0x512   : > { %5522 = vmatprep.subr.bf16.mxu1 %v8196_v44 }
 0x514   : > { %5274 = vmatpush1.bf16.msra.mxu0 %v8098_v31 }
 0x515   : > { %5275 = vmatprep.subr.bf16.mxu0 %v8103_v33 }
 0x518   : > { %5276 = vmatpush1.bf16.msra.mxu0 %v8101_v41 }
 0x519   : > { %5277 = vmatprep.subr.bf16.mxu0 %v8106_v58  ;;  %v5004_v58 = vrot.slane %v4999_v43, %v9701_v20 }
 0x51c   : > { %5278 = vmatpush1.bf16.msra.mxu0 %v8104_v49 }
 0x51d   : > { %5771 = vmatprep.subr.bf16.mxu0 %v8109_v51  ;;  %v5016_v51 = vrot.slane %v4999_v43, %v3971_v38 }
 0x51f   : > { %5280 = vmatmul.mubr.bf16.vlgmr.msra.gmra.mrb[32].mxu0 %v5041_v53 }
 0x520   : > { %5772 = vmatpush1.bf16.msra.mxu0 %v8107_v39  ;;  %5803 = vmatprep.mubr.bf16.mxu0 %v9728_v7  ;;  %v8194_v7 = vld [vmem:[#allocation17 + $0xd0] ss:$8 sps:$4 sm:$0xff]  }
 0x521   : > { %5773 = vmatprep.subr.bf16.mxu0 %v8112_v40  ;;  %5523 = vmatpush1.bf16.msra.mxu1 %v8194_v7 }
 0x522   : > { %5524 = vmatprep.subr.bf16.mxu1 %v8199_v5  ;;  %v8214_v5 = vld [vmem:[#allocation20 + $0x34] ss:$8 sps:$4 sm:$0xff]  }
 0x524   : > { %5774 = vmatpush1.bf16.msra.mxu0 %v8110_v0 }
 0x525   : > { %5775 = vmatprep.subr.bf16.mxu0 %v8115_v55  ;;  %5525 = vmatpush1.bf16.msra.mxu1 %v8197_v17  ;;  %v8217_v17 = vld [vmem:[#allocation20 + $0x44] ss:$8 sps:$4 sm:$0xff]  }
 0x526   : > { %5526 = vmatprep.subr.bf16.mxu1 %v8202_v9  ;;  %v8220_v9 = vld [vmem:[#allocation20 + $0x54] ss:$8 sps:$4 sm:$0xff]  }
 0x528   : > { %5776 = vmatpush1.bf16.msra.mxu0 %v8113_v34 }
 0x529   : > { %5777 = vmatprep.subr.bf16.mxu0 %v8118_v56  ;;  %5527 = vmatpush1.bf16.msra.mxu1 %v8200_v42  ;;  %v8205_v56 = vld [vmem:[#allocation20 + $0x4] ss:$8 sps:$4 sm:$0xff]  }
 0x52a   : > { %5972 = vmatprep.subr.bf16.mxu1 %v8205_v56  ;;  %v8223_v42 = vld [vmem:[#allocation20 + $0x64] ss:$8 sps:$4 sm:$0xff]   ;;  %v8272_v56 = vld [vmem:[#allocation24 + $0x70] ss:$8 sps:$4 sm:$0xff]  }
 0x52c   : > { %5778 = vmatpush1.bf16.msra.mxu0 %v8116_v59 }
 0x52d   : > { %5779 = vmatprep.subr.bf16.mxu0 %v8121_v60  ;;  %v8203_v60 = vld [vmem:[#allocation20] ss:$8 sps:$4 sm:$0xff]  }
 0x530   : > { %5780 = vmatpush1.bf16.msra.mxu0 %v8119_v61  ;;  %v8208_v61 = vld [vmem:[#allocation20 + $0x14] ss:$8 sps:$4 sm:$0xff]  }
 0x531   : > { %5781 = vmatprep.subr.bf16.mxu0 %v8124_v63  ;;  %v8206_v63 = vld [vmem:[#allocation20 + $0x10] ss:$8 sps:$4 sm:$0xff]  }
 0x534   : > { %5782 = vmatpush1.bf16.msra.mxu0 %v8122_v1  ;;  %v8211_v1 = vld [vmem:[#allocation20 + $0x24] ss:$8 sps:$4 sm:$0xff]  }
 0x535   : > { %5783 = vmatprep.subr.bf16.mxu0 %v8127_v2  ;;  %v8209_v2 = vld [vmem:[#allocation20 + $0x20] ss:$8 sps:$4 sm:$0xff]  }
 0x538   : > { %5784 = vmatpush1.bf16.msra.mxu0 %v8125_v6  ;;  %v8212_v6 = vld [vmem:[#allocation20 + $0x30] ss:$8 sps:$4 sm:$0xff]  }
 0x539   : > { %5785 = vmatprep.subr.bf16.mxu0 %v8130_v8  ;;  %v8215_v8 = vld [vmem:[#allocation20 + $0x40] ss:$8 sps:$4 sm:$0xff]  }
 0x53c   : > { %5786 = vmatpush1.bf16.msra.mxu0 %v8128_v11  ;;  %v8218_v11 = vld [vmem:[#allocation20 + $0x50] ss:$8 sps:$4 sm:$0xff]  }
 0x53d   : > { %5787 = vmatprep.subr.bf16.mxu0 %v8133_v21  ;;  %v8221_v21 = vld [vmem:[#allocation20 + $0x60] ss:$8 sps:$4 sm:$0xff]  }
 0x540   : > { %5788 = vmatpush1.bf16.msra.mxu0 %v8131_v12  ;;  %v8226_v12 = vld [vmem:[#allocation20 + $0x74] ss:$8 sps:$4 sm:$0xff]  }
 0x541   : > { %5789 = vmatprep.subr.bf16.mxu0 %v8136_v13  ;;  %v8224_v13 = vld [vmem:[#allocation20 + $0x70] ss:$8 sps:$4 sm:$0xff]  }
 0x544   : > { %5790 = vmatpush1.bf16.msra.mxu0 %v8134_v14  ;;  %v8229_v14 = vld [vmem:[#allocation20 + $0x84] ss:$8 sps:$4 sm:$0xff]  }
 0x545   : > { %5791 = vmatprep.subr.bf16.mxu0 %v8139_v15  ;;  %v8227_v15 = vld [vmem:[#allocation20 + $0x80] ss:$8 sps:$4 sm:$0xff]  }
 0x548   : > { %5792 = vmatpush1.bf16.msra.mxu0 %v8137_v25  ;;  %v8232_v25 = vld [vmem:[#allocation20 + $0x94] ss:$8 sps:$4 sm:$0xff]  }
 0x549   : > { %5793 = vmatprep.subr.bf16.mxu0 %v8142_v16  ;;  %v8230_v16 = vld [vmem:[#allocation20 + $0x90] ss:$8 sps:$4 sm:$0xff]  }
 0x54c   : > { %5794 = vmatpush1.bf16.msra.mxu0 %v8140_v18 }
 0x54d   : > { %5795 = vmatprep.subr.bf16.mxu0 %v8145_v19 }
 0x550   : > { %5796 = vmatpush1.bf16.msra.mxu0 %v8143_v32 }
 0x551   : > { %5797 = vmatprep.subr.bf16.mxu0 %v8148_v23 }
 0x554   : > { %5798 = vmatpush1.bf16.msra.mxu0 %v8146_v47  ;;  %v8235_v47 = vld [vmem:[#allocation20 + $0xa4] ss:$8 sps:$4 sm:$0xff]  }
 0x555   : > { %5799 = vmatprep.subr.bf16.mxu0 %v8151_v24  ;;  %v8233_v24 = vld [vmem:[#allocation20 + $0xa0] ss:$8 sps:$4 sm:$0xff]  }
 0x558   : > { %5800 = vmatpush1.bf16.msra.mxu0 %v8149_v26  ;;  %v8238_v26 = vld [vmem:[#allocation20 + $0xb4] ss:$8 sps:$4 sm:$0xff]  }
 0x559   : > { %5801 = vmatprep.subr.bf16.mxu0 %v8154_v62  ;;  %v8236_v62 = vld [vmem:[#allocation20 + $0xb0] ss:$8 sps:$4 sm:$0xff]  }
 0x55c   : > { %5802 = vmatpush1.bf16.msra.mxu0 %v8152_v28  ;;  %v8241_v28 = vld [vmem:[#allocation20 + $0xc4] ss:$8 sps:$4 sm:$0xff]  }
 0x55f   : > { %5804 = vmatmul.mubr.bf16.vlgmr.msra.gmra.mrb[36].mxu0 %v9730_v10  ;;  %v5008_v10 = vrot.slane %v4999_v43, %v9708_v36  ;;  %v8253_v43 = vld [vmem:[#allocation24 + $0x4] ss:$8 sps:$4 sm:$0xff]  }
 0x560   : > { %6235 = vmatprep.subr.bf16.mxu0 %v8253_v43  ;;  %v8293_v43 = vld [vmem:[#allocation24 + $0xe0] ss:$8 sps:$4 sm:$0xff]  }
 0x572   : > { %v4549_v29 = vpop.f32.mrb[24].mxu0  ;;  %v4590_v30 = vpop.f32.mrb[24].mxu1 }
 0x573   : > { %v4551_v3 = vpop.f32.mrb[25].mxu0  ;;  %v4592_v31 = vpop.f32.mrb[25].mxu1 }
 0x574   : > { %v4553_v4 = vpop.f32.mrb[26].mxu0  ;;  %v4594_v33 = vpop.f32.mrb[26].mxu1 }
 0x575   : > { %v4554_v35 = vpop.f32.mrb[27].mxu0  ;;  %v4595_v41 = vpop.f32.mrb[27].mxu1  ;;  %v8245_v4 = vld [vmem:[#allocation20 + $0xe0] ss:$8 sps:$4 sm:$0xff]   ;;  %v8250_v33 = vld [vmem:[#allocation20 + $0xf4] ss:$8 sps:$4 sm:$0xff]  }
 0x576   : > { %v8248_v35 = vld [vmem:[#allocation20 + $0xf0] ss:$8 sps:$4 sm:$0xff]   ;;  %v8251_v41 = vld [vmem:[#allocation24] ss:$8 sps:$4 sm:$0xff]  }
 0x577   : > { %6236 = vmatpush1.bf16.msra.mxu0 %v8251_v41  ;;  %v8295_v41 = vld [vmem:[#allocation24 + $0xe4] ss:$8 sps:$4 sm:$0xff]  }
 0x5b2   : > { %v4951_v49 = vpop.f32.mrb[28].mxu0  ;;  %v4992_v50 = vpop.f32.mrb[28].mxu1 }
 0x5b3   : > { %v4952_v52 = vadd.f32 %v4951_v49, %v4549_v29  ;;  %v4993_v53 = vadd.f32 %v4992_v50, %v4590_v30  ;;  %v4953_v39 = vpop.f32.mrb[29].mxu0  ;;  %v4994_v40 = vpop.f32.mrb[29].mxu1  ;;  %v8239_v29 = vld [vmem:[#allocation20 + $0xc0] ss:$8 sps:$4 sm:$0xff]   ;;  %v8244_v30 = vld [vmem:[#allocation20 + $0xd4] ss:$8 sps:$4 sm:$0xff]  }
 0x5b4   : > { %v4954_v54 = vadd.f32 %v4953_v39, %v4551_v3  ;;  %v4995_v46 = vadd.f32 %v4994_v40, %v4592_v31  ;;  %v4955_v0 = vpop.f32.mrb[30].mxu0  ;;  %v4996_v55 = vpop.f32.mrb[30].mxu1  ;;  %v8242_v3 = vld [vmem:[#allocation20 + $0xd0] ss:$8 sps:$4 sm:$0xff]   ;;  %v8247_v31 = vld [vmem:[#allocation20 + $0xe4] ss:$8 sps:$4 sm:$0xff]  }
 0x5b5   : > { %v5021_v27 = vadd.f32 %v5004_v58, %v4952_v52  ;;  %v9858_v45 = vadd.f32 %v5012_v48, %v4993_v53  ;;  %v4956_v34 = vpop.f32.mrb[31].mxu0  ;;  %v4997_v22 = vpop.f32.mrb[31].mxu1  ;;  %v8256_v58 = vld [vmem:[#allocation24 + $0x14] ss:$8 sps:$4 sm:$0xff]   ;;  %v8254_v48 = vld [vmem:[#allocation24 + $0x10] ss:$8 sps:$4 sm:$0xff]  }
 0x5b6   : > { %v5022_v57 = vadd.f32 %v5008_v10, %v4954_v54  ;;  %v9860_v44 = vadd.f32 %v5016_v51, %v4995_v46  ;;  %6237 = vmatprep.subr.bf16.mxu0 %v8256_v58  ;;  %v8259_v49 = vld [vmem:[#allocation24 + $0x24] ss:$8 sps:$4 sm:$0xff]   ;;  %v8257_v50 = vld [vmem:[#allocation24 + $0x20] ss:$8 sps:$4 sm:$0xff]   ;;  %v8262_v10 = vld [vmem:[#allocation24 + $0x34] ss:$8 sps:$4 sm:$0xff]  }
 0x5b7   : > { %v5025_v59 = vmax.f32 %v5021_v27, 0.0  ;;  %6238 = vmatpush1.bf16.msra.mxu0 %v8254_v48  ;;  %v8260_v53 = vld [vmem:[#allocation24 + $0x30] ss:$8 sps:$4 sm:$0xff]   ;;  %v8265_v40 = vld [vmem:[#allocation24 + $0x44] ss:$8 sps:$4 sm:$0xff]  }
 0x5b8   : > { %v5026_v37 = vmax.f32 %v5022_v57, 0.0  ;;  %6239 = vmatprep.subr.bf16.mxu0 %v8259_v49  ;;  %v8263_v46 = vld [vmem:[#allocation24 + $0x40] ss:$8 sps:$4 sm:$0xff]   ;;  %v8268_v0 = vld [vmem:[#allocation24 + $0x54] ss:$8 sps:$4 sm:$0xff]  }
 0x5b9   : > { %v5290_v7 = vpack.c.bf16 %v5025_v59, %v5025_v59  ;;  %v8266_v55 = vld [vmem:[#allocation24 + $0x50] ss:$8 sps:$4 sm:$0xff]   ;;  %v8271_v27 = vld [vmem:[#allocation24 + $0x64] ss:$8 sps:$4 sm:$0xff]   ;;  %v8269_v34 = vld [vmem:[#allocation24 + $0x60] ss:$8 sps:$4 sm:$0xff]  }
 0x5ba   : > { %v5291_v38 = vpack.c.bf16 %v5026_v37, %v5026_v37  ;;  %v8274_v22 = vld [vmem:[#allocation24 + $0x74] ss:$8 sps:$4 sm:$0xff]   ;;  %v8277_v57 = vld [vmem:[#allocation24 + $0x84] ss:$8 sps:$4 sm:$0xff]   ;;  %v8275_v59 = vld [vmem:[#allocation24 + $0x80] ss:$8 sps:$4 sm:$0xff]  }
 0x5bb   : > { %6240 = vmatpush1.bf16.msra.mxu0 %v8257_v50  ;;  %v8280_v37 = vld [vmem:[#allocation24 + $0x94] ss:$8 sps:$4 sm:$0xff]   ;;  %v8296_v48 = vld [vmem:[#allocation24 + $0xf0] ss:$8 sps:$4 sm:$0xff]  }
 0x5bc   : > { %5528 = vmatprep.mubr.bf16.mxu1 %v5291_v38  ;;  %6241 = vmatprep.subr.bf16.mxu0 %v8262_v10  ;;  %v8278_v38 = vld [vmem:[#allocation24 + $0x90] ss:$8 sps:$4 sm:$0xff]   ;;  %v8298_v58 = vld [vmem:[#allocation24 + $0xf4] ss:$8 sps:$4 sm:$0xff]  }
 0x5bd   : > { %5529 = vmatmul.mubr.bf16.vlgmr.msra.gmra.mrb[32].mxu1 %v5290_v7  ;;  %v8281_v7 = vld [vmem:[#allocation24 + $0xa0] ss:$8 sps:$4 sm:$0xff]   ;;  %v8303_v10 = vld [vmem:[%s10110_s13 + $0x50] sm:$0xff]  }
 0x5be   : > { %5973 = vmatpush1.bf16.msra.mxu1 %v8203_v60  ;;  %v8283_v60 = vld [vmem:[#allocation24 + $0xa4] ss:$8 sps:$4 sm:$0xff]  }
 0x5bf   : > { %5974 = vmatprep.subr.bf16.mxu1 %v8208_v61  ;;  %6242 = vmatpush1.bf16.msra.mxu0 %v8260_v53  ;;  %v8286_v61 = vld [vmem:[#allocation24 + $0xb4] ss:$8 sps:$4 sm:$0xff]   ;;  %v8301_v49 = vld [vmem:[%s10110_s13 + $0x48] sm:$0xff]  }
 0x5c0   : > { %6243 = vmatprep.subr.bf16.mxu0 %v8265_v40  ;;  %v8302_v50 = vld [vmem:[%s10110_s13 + $0x8] sm:$0xff]   ;;  %v8304_v53 = vld [vmem:[%s10110_s13 + $0x10] sm:$0xff]   ;;  %v8306_v40 = vld [vmem:[%s10110_s13 + $0x18] sm:$0xff]  }
 0x5c2   : > { %5975 = vmatpush1.bf16.msra.mxu1 %v8206_v63  ;;  %v8284_v63 = vld [vmem:[#allocation24 + $0xb0] ss:$8 sps:$4 sm:$0xff]  }
 0x5c3   : > { %5976 = vmatprep.subr.bf16.mxu1 %v8211_v1  ;;  %6244 = vmatpush1.bf16.msra.mxu0 %v8263_v46  ;;  %v8289_v1 = vld [vmem:[#allocation24 + $0xc4] ss:$8 sps:$4 sm:$0xff]  }
 0x5c4   : > { %6245 = vmatprep.subr.bf16.mxu0 %v8268_v0  ;;  %v8308_v46 = vld [vmem:[%s10110_s13 + $0x20] sm:$0xff]   ;;  %v8309_v0 = vld [vmem:[%s10110_s13 + $0x68] sm:$0xff]  }
 0x5c6   : > { %5977 = vmatpush1.bf16.msra.mxu1 %v8209_v2  ;;  %v8287_v2 = vld [vmem:[#allocation24 + $0xc0] ss:$8 sps:$4 sm:$0xff]  }
 0x5c7   : > { %5978 = vmatprep.subr.bf16.mxu1 %v8214_v5  ;;  %6246 = vmatpush1.bf16.msra.mxu0 %v8266_v55  ;;  %v8292_v5 = vld [vmem:[#allocation24 + $0xd4] ss:$8 sps:$4 sm:$0xff]   ;;  %v8310_v55 = vld [vmem:[%s10110_s13 + $0x28] sm:$0xff]  }
 0x5c8   : > { %6247 = vmatprep.subr.bf16.mxu0 %v8271_v27  ;;  %v6013_v27 = vld [vmem:[#allocation23] sm:$0x3] }
 0x5ca   : > { %5979 = vmatpush1.bf16.msra.mxu1 %v8212_v6  ;;  %v8290_v6 = vld [vmem:[#allocation24 + $0xd0] ss:$8 sps:$4 sm:$0xff]  }
 0x5cb   : > { %5980 = vmatprep.subr.bf16.mxu1 %v8217_v17  ;;  %6248 = vmatpush1.bf16.msra.mxu0 %v8269_v34  ;;  %v5075_v17 = vld [vmem:[#allocation15] sm:$0x3]  ;;  %v6018_v34 = vrot.slane %v6013_v27, %v9701_v20 }
 0x5cc   : > { %6249 = vmatprep.subr.bf16.mxu0 %v8274_v22 }
 0x5ce   : > { %5981 = vmatpush1.bf16.msra.mxu1 %v8215_v8  ;;  %v5080_v8 = vrot.slane %v5075_v17, %v9701_v20 }
 0x5cf   : > { %5982 = vmatprep.subr.bf16.mxu1 %v8220_v9  ;;  %6250 = vmatpush1.bf16.msra.mxu0 %v8272_v56  ;;  %v5084_v9 = vrot.slane %v5075_v17, %v9708_v36  ;;  %v6022_v56 = vrot.slane %v6013_v27, %v9708_v36  ;;  %v8314_v17 = vld [vmem:[%s10110_s13 + $0x38] sm:$0xff]  }
 0x5d0   : > { %6251 = vmatprep.subr.bf16.mxu0 %v8277_v57 }
 0x5d2   : > { %5983 = vmatpush1.bf16.msra.mxu1 %v8218_v11  ;;  %v5324_v11 = vld [vmem:[#allocation18] sm:$0x3] }
 0x5d3   : > { %5984 = vmatprep.subr.bf16.mxu1 %v8223_v42  ;;  %6252 = vmatpush1.bf16.msra.mxu0 %v8275_v59 }
 0x5d4   : > { %6253 = vmatprep.subr.bf16.mxu0 %v8280_v37 }
 0x5d6   : > { %5985 = vmatpush1.bf16.msra.mxu1 %v8221_v21  ;;  %v5329_v21 = vrot.slane %v5324_v11, %v9701_v20 }
 0x5d7   : > { %5986 = vmatprep.subr.bf16.mxu1 %v8226_v12  ;;  %6254 = vmatpush1.bf16.msra.mxu0 %v8278_v38 }
 0x5d8   : > { %6255 = vmatprep.subr.bf16.mxu0 %v8283_v60 }
 0x5da   : > { %5987 = vmatpush1.bf16.msra.mxu1 %v8224_v13  ;;  %v5333_v13 = vrot.slane %v5324_v11, %v9708_v36 }
 0x5db   : > { %5988 = vmatprep.subr.bf16.mxu1 %v8229_v14  ;;  %6256 = vmatpush1.bf16.msra.mxu0 %v8281_v7 }
 0x5dc   : > { %6257 = vmatprep.subr.bf16.mxu0 %v8286_v61 }
 0x5de   : > { %5989 = vmatpush1.bf16.msra.mxu1 %v8227_v15 }
 0x5df   : > { %5990 = vmatprep.subr.bf16.mxu1 %v8232_v25  ;;  %6258 = vmatpush1.bf16.msra.mxu0 %v8284_v63 }
 0x5e0   : > { %6259 = vmatprep.subr.bf16.mxu0 %v8289_v1 }
 0x5e2   : > { %5991 = vmatpush1.bf16.msra.mxu1 %v8230_v16 }
 0x5e3   : > { %5992 = vmatprep.subr.bf16.mxu1 %v8235_v47  ;;  %6260 = vmatpush1.bf16.msra.mxu0 %v8287_v2 }
 0x5e4   : > { %6261 = vmatprep.subr.bf16.mxu0 %v8292_v5 }
 0x5e6   : > { %5993 = vmatpush1.bf16.msra.mxu1 %v8233_v24 }
 0x5e7   : > { %5994 = vmatprep.subr.bf16.mxu1 %v8238_v26  ;;  %6262 = vmatpush1.bf16.msra.mxu0 %v8290_v6  ;;  %v8311_v6 = vld [vmem:[%s10110_s13 + $0x70] sm:$0xff]  }
 0x5e8   : > { %6263 = vmatprep.subr.bf16.mxu0 %v8295_v41 }
 0x5ea   : > { %5995 = vmatpush1.bf16.msra.mxu1 %v8236_v62 }
 0x5eb   : > { %5996 = vmatprep.subr.bf16.mxu1 %v8241_v28  ;;  %6264 = vmatpush1.bf16.msra.mxu0 %v8293_v43 }
 0x5ec   : > { %6265 = vmatprep.subr.bf16.mxu0 %v8298_v58  ;;  %v7594_v58 = vld [vmem:[#allocation29] ss:$0 sm:$0xff] }
 0x5ee   : > { %5997 = vmatpush1.bf16.msra.mxu1 %v8239_v29 }
 0x5ef   : > { %5998 = vmatprep.subr.bf16.mxu1 %v8244_v30  ;;  %6266 = vmatpush1.bf16.msra.mxu0 %v8296_v48 }
 0x5f2   : > { %v9862_v18 = vpop.f32.mrb[32].mxu0  ;;  %5999 = vmatpush1.bf16.msra.mxu1 %v8242_v3 }
 0x5f3   : > { %v9864_v19 = vpop.f32.mrb[33].mxu0  ;;  %6000 = vmatprep.subr.bf16.mxu1 %v8247_v31  ;;  %v5282_v42 = vadd.f32 %v9862_v18, %v5080_v8  ;;  %v5027_v18 = vmax.f32 %v9858_v45, 0.0  ;;  %v8299_v45 = vld [vmem:[%s10110_s13 + $0x40] sm:$0xff]   ;;  %v8939_v8 = vmov 0.0  }
 0x5f4   : > { %v5285_v32 = vpop.f32.mrb[34].mxu0  ;;  %v5284_v12 = vadd.f32 %v9864_v19, %v5084_v9  ;;  %v5028_v19 = vmax.f32 %v9860_v44, 0.0  ;;  %v8300_v44 = vld [vmem:[%s10110_s13] sm:$0xff]   ;;  %v6063_v9 = vld [vmem:[#allocation26] sm:$0x3] }
 0x5f5   : > { %v5286_v23 = vpop.f32.mrb[35].mxu0  ;;  %v5288_v15 = vmax.f32 %v5282_v42, 0.0  ;;  %v6068_v11 = vrot.slane %v6063_v9, %v9701_v20  ;;  %v6072_v42 = vrot.slane %v6063_v9, %v9708_v36  ;;  %v8316_v20 = vld [vmem:[%s10112_s25 + $0x8] sm:$0xff]   ;;  %v8317_v36 = vld [vmem:[%s10112_s25 + $0x10] sm:$0xff]  }
 0x5f6   : > { %6001 = vmatpush1.bf16.msra.mxu1 %v8245_v4  ;;  %v5289_v32 = vmax.f32 %v5284_v12, 0.0 }
 0x5f7   : > { %6002 = vmatprep.subr.bf16.mxu1 %v8250_v33 }
 0x5fa   : > { %6003 = vmatpush1.bf16.msra.mxu1 %v8248_v35 }
 0x5fb   : > { %7612 = vmatprep.subr.bf16.mxu1 %v8299_v45 }
 0x632   : > { %v9866_v51 = vpop.f32.mrb[36].mxu0 }
 0x633   : > { %v9868_v52 = vpop.f32.mrb[37].mxu0 }
 0x634   : > { %v5809_v39 = vpop.f32.mrb[38].mxu0 }
 0x635   : > { %v5810_v54 = vpop.f32.mrb[39].mxu0  ;;  %v8305_v39 = vld [vmem:[%s10110_s13 + $0x58] sm:$0xff]  }
 0x636   : > { %v8307_v54 = vld [vmem:[%s10110_s13 + $0x60] sm:$0xff]  }
 0x690   : > { %v5530_v14 = vpop.f32.mrb[32].mxu1 }
 0x691   : > { %v5531_v25 = vadd.f32 %v5530_v14, %v5329_v21  ;;  %v5532_v16 = vpop.f32.mrb[33].mxu1 }
 0x692   : > { %v5533_v23 = vadd.f32 %v5532_v16, %v5333_v13  ;;  %v5534_v47 = vpop.f32.mrb[34].mxu1 }
 0x693   : > { %v5537_v24 = vmax.f32 %v5531_v25, 0.0  ;;  %v5535_v26 = vpop.f32.mrb[35].mxu1  ;;  %v8315_v47 = vld [vmem:[%s10111_s7] sm:$0xff]  }
 0x694   : > { %v5538_v62 = vmax.f32 %v5533_v23, 0.0  ;;  %v8318_v26 = vld [vmem:[%s10112_s25 + $0x18] sm:$0xff]  }
 0x695   : > { %v5539_v28 = vadd.f32 %v5537_v24, %v5288_v15 }
 0x696   : > { %v5540_v29 = vadd.f32 %v5538_v62, %v5289_v32  ;;  %v8319_v62 = vld [vmem:[%s10112_s25 + $0x20] sm:$0xff]  }
 0x697   : > { %8359 = vtanh.f32 %v5539_v28  ;;  %v8320_v28 = vld [vmem:[%s10112_s25 + $0x28] sm:$0xff]  }
 0x698   : > { %8361 = vtanh.f32 %v5540_v29  ;;  %v8321_v29 = vld [vmem:[%s10112_s25 + $0x30] sm:$0xff]  }
 0x6a1   : > { %v8360_v30 = vpop.eup %8359 }
 0x6a2   : > { %v8362_v3 = vpop.eup %8361  ;;  %v5543_v31 = vmul.f32 %v8360_v30, %v5027_v18  ;;  %v8322_v18 = vld [vmem:[%s10112_s25 + $0x38] sm:$0xff]  }
 0x6a3   : > { %v5544_v4 = vmul.f32 %v8362_v3, %v5028_v19  ;;  %v7577_v19 = vld [vmem:[#allocation27] ss:$0 sm:$0xff] }
 0x6a4   : > { %v5545_v35 = vpack.c.bf16 %v5543_v31, %v5543_v31 }
 0x6a5   : > { %v5546_v33 = vpack.c.bf16 %v5544_v4, %v5544_v4 }
 0x6a7   : > { %6004 = vmatprep.mubr.bf16.mxu1 %v5546_v33 }
 0x6a8   : > { %6005 = vmatmul.mubr.bf16.vlgmr.msra.gmra.mrb[36].mxu1 %v5545_v35 }
 0x6a9   : > { %7613 = vmatpush3.bf16.msra.mxu1 %v8300_v44 }
 0x6aa   : > { %7614 = vmatprep.subr.bf16.mxu1 %v8301_v49 }
 0x6ad   : > { %7615 = vmatpush3.bf16.msra.mxu1 %v8302_v50 }
 0x6ae   : > { %7616 = vmatprep.subr.bf16.mxu1 %v8303_v10 }
 0x6b1   : > { %7617 = vmatpush3.bf16.msra.mxu1 %v8304_v53 }
 0x6b2   : > { %7618 = vmatprep.subr.bf16.mxu1 %v8305_v39 }
 0x6b5   : > { %7619 = vmatpush3.bf16.msra.mxu1 %v8306_v40 }
 0x6b6   : > { %7620 = vmatprep.subr.bf16.mxu1 %v8307_v54 }
 0x6b9   : > { %7621 = vmatpush3.bf16.msra.mxu1 %v8308_v46 }
 0x6ba   : > { %7622 = vmatprep.subr.bf16.mxu1 %v8309_v0 }
 0x6bd   : > { %7623 = vmatpush3.bf16.msra.mxu1 %v8310_v55 }
 0x6be   : > { %7624 = vmatprep.subr.bf16.mxu1 %v8311_v6 }
 0x77b   : > { %v6006_v22 = vpop.f32.mrb[36].mxu1 }
 0x77c   : > { %v6007_v57 = vadd.f32 %v6006_v22, %v9866_v51  ;;  %v6008_v59 = vpop.f32.mrb[37].mxu1  ;;  %v8312_v51 = vld [vmem:[%s10110_s13 + $0x30] sm:$0xff]  }
 0x77d   : > { %v6009_v37 = vadd.f32 %v6008_v59, %v9868_v52  ;;  %v6010_v38 = vpop.f32.mrb[38].mxu1  ;;  %7625 = vmatpush3.bf16.msra.mxu1 %v8312_v51  ;;  %v8313_v52 = vld [vmem:[%s10110_s13 + $0x78] sm:$0xff]  }
 0x77e   : > { %v6025_v60 = vadd.f32 %v6018_v34, %v6007_v57  ;;  %v6011_v7 = vpop.f32.mrb[39].mxu1  ;;  %7626 = vmatprep.subr.bf16.mxu1 %v8313_v52 }
 0x77f   : > { %v6026_v61 = vadd.f32 %v6022_v56, %v6009_v37 }
 0x780   : > { %v6027_v63 = vmax.f32 %v6025_v60, 0.0 }
 0x781   : > { %v6028_v1 = vmax.f32 %v6026_v61, 0.0  ;;  %7627 = vmatpush3.bf16.msra.mxu1 %v8314_v17 }
 0x782   : > { %v6029_v5 = vpack.c.bf16 %v6027_v63, %v6027_v63  ;;  %7643 = vmatprep.subr.bf16.mxu1 %v8939_v8 }
 0x783   : > { %v6030_v2 = vpack.c.bf16 %v6028_v1, %v6028_v1 }
 0x785   : > { %6267 = vmatprep.mubr.bf16.mxu0 %v6030_v2 }
 0x786   : > { %6268 = vmatmul.mubr.bf16.vlgmr.msra.gmra.mrb[40].mxu0 %v6029_v5 }
 0x859   : > { %v6269_v21 = vpop.f32.mrb[40].mxu0 }
 0x85a   : > { %v6270_v12 = vadd.f32 %v6269_v21, %v6068_v11  ;;  %v6271_v13 = vpop.f32.mrb[41].mxu0 }
 0x85b   : > { %v6272_v14 = vadd.f32 %v6271_v13, %v6072_v42  ;;  %v6273_v15 = vpop.f32.mrb[42].mxu0 }
 0x85c   : > { %v6276_v25 = vmax.f32 %v6270_v12, 0.0  ;;  %v6274_v16 = vpop.f32.mrb[43].mxu0 }
 0x85d   : > { %v6277_v32 = vmax.f32 %v6272_v14, 0.0 }
 0x85e   : > { %v6278_v24 = vpack.c.bf16 %v6276_v25, %v6276_v25 }
 0x85f   : > { %v6279_v23 = vpack.c.bf16 %v6277_v32, %v6277_v32 }
 0x861   : > { %6447 = vmatprep.mubr.bf16.mxu1 %v6279_v23 }
 0x862   : > { %6448 = vmatmul.mubr.bf16.vlgmr.msra.gmra.mrb[40].mxu1 %v6278_v24 }
 0x863   : > { %7644 = vmatpush3.bf16.msra.mxu1 %v8315_v47  ;;  %7659 = vmatprep.mubr.msk.bf16.mxu1 %vm8940_vm0, %v8939_v8 }
 0x864   : > { %7645 = vmatprep.subr.bf16.mxu1 %v8939_v8 }
 0x867   : > { %7646 = vmatpush3.bf16.msra.mxu1 %v8316_v20 }
 0x868   : > { %7647 = vmatprep.subr.bf16.mxu1 %v8939_v8 }
 0x86b   : > { %7648 = vmatpush3.bf16.msra.mxu1 %v8317_v36 }
 0x86c   : > { %7649 = vmatprep.subr.bf16.mxu1 %v8939_v8 }
 0x86f   : > { %7650 = vmatpush3.bf16.msra.mxu1 %v8318_v26 }
 0x870   : > { %7651 = vmatprep.subr.bf16.mxu1 %v8939_v8 }
 0x873   : > { %7652 = vmatpush3.bf16.msra.mxu1 %v8319_v62 }
 0x874   : > { %7653 = vmatprep.subr.bf16.mxu1 %v8939_v8 }
 0x877   : > { %7654 = vmatpush3.bf16.msra.mxu1 %v8320_v28 }
 0x878   : > { %7655 = vmatprep.subr.bf16.mxu1 %v8939_v8 }
 0x87b   : > { %7656 = vmatpush3.bf16.msra.mxu1 %v8321_v29 }
 0x87c   : > { %7657 = vmatprep.subr.bf16.mxu1 %v8939_v8 }
 0x87f   : > { %7658 = vmatpush3.bf16.msra.mxu1 %v8322_v18 }
 0x935   : > { %v7628_v30 = vpop.f32.mrb[40].mxu1 }
 0x936   : > { %v7629_v3 = vpop.f32.mrb[41].mxu1 }
 0x937   : > { %v7630_v31 = vadd.f32 %v7629_v3, %v7628_v30  ;;  %v7631_v4 = vpop.f32.mrb[42].mxu1 }
 0x938   : > { %v7632_v33 = vpop.f32.mrb[43].mxu1 }
 0x939   : > { %v6450_v35 = vadd.f32 %v7630_v31, %v7577_v19 }
 0x93b   : > { %v6455_v41 = vmax.f32 %v6450_v35, 0.0 }
 0x93d   : > { %v6456_v43 = vpack.c.bf16 %v6455_v41, %v6455_v41 }
 0x93f   : > { %7660 = vmatmul.mubr.bf16.vlgmr.msra.gmra.mrb[44].mxu1 %v6456_v43 }
 0xa12   : > { %v6562_v48 = vpop.f32.mrb[44].mxu1 }
 0xa13   : > { %v6563_v45 = vadd.f32 %v7594_v58, %v6562_v48  ;;  %v7661_v44 = vpop.f32.mrb[45].mxu1 }
 0xa14   : > { %v6565_v49 = vpop.f32.mrb[46].mxu1 }
 0xa15   : > { %6568 = vst [vmem:[%s9592_s14] sm:$0x3] %v6563_v45  ;;  %v7662_v50 = vpop.f32.mrb[47].mxu1 }
 0xa16 PF: > { %s10113_s7 = sld [smem:[#allocation41_spill]]  ;;  %p48_p10 = scmp.ge.s32.totalorder %s9445_s6, 8  }
 0xa17   : > { %s10114_s4 = smov %s8909_s8  ;;  %s10115_s8 = smov %s9456_s3 }
 0xa18   : > { %s10116_s30 = smov %s9445_s6  ;;  %50 = sbr.rel (!%p48_p10) target bundleno = 34 (0x22), region = 256 }
 0xa1f   :  { %6626 = vsyncpa [#allocation5], 1 }
 0xa20   :  { %6628 = vsyncpa [#allocation5 + $0x1], 1 }
 0xa21   :  { %6629 = vsyncpa [#allocation7], 1 }
 0xa22   :  { %6631 = vsyncpa [#allocation7 + $0x1], 1 }
 0xa23   :  { %6632 = vsyncpa [#allocation10], 1 }
 0xa24   :  { %6633 = vsyncpa [#allocation13], 1 }
 0xa25   :  { %6634 = vsyncpa [#allocation16], 1 }
 0xa26   :  { %6635 = vsyncpa [#allocation19], 1 }
 0xa27   :  { %6636 = vsyncpa [#allocation22], 1 }
 0xa28   :  { %6637 = vsyncpa [#allocation25], 1 }
 0xa29   :  { %6638 = vsyncpa [#allocation28], 1 }

</bundles_post_ra>
